<compile_context>
chip_gen: v5e
topology: v5e:2x2
jax: 0.10.0
libtpu: 0.0.40
codegen_flags: <defaults>
</compile_context>

<pallas_src>
import jax
import jax.numpy as jnp
from jax.experimental import pallas as pl
from jax.experimental.pallas import tpu as pltpu

IN_DIM = 3 * 32 * 32   # 3072
H1_DIM = 512
H2_DIM = 128
OUT_DIM = 10
OUT_PAD = 128          # lane-dense padded output width


def _round_up(x, m):
    return (x + m - 1) // m * m


def fnn_kernel(x_ref, w1_ref, b1_ref, w2_ref, b2_ref, w3_ref, b3_ref, o_ref):
    # One batch tile per grid step. Weights are VMEM-resident (constant block
    # index across the grid), the x/out tiles are double-buffered by Pallas.
    x = x_ref[...]
    h1 = jnp.dot(x, w1_ref[...], preferred_element_type=jnp.float32) + b1_ref[...]
    h1 = jnp.maximum(h1, 0.0)
    h2 = jnp.dot(h1, w2_ref[...], preferred_element_type=jnp.float32) + b2_ref[...]
    h2 = jnp.maximum(h2, 0.0)
    o_ref[...] = jnp.dot(h2, w3_ref[...], preferred_element_type=jnp.float32) + b3_ref[...]


def simple_fnn_forward(x_nchw, kernel_params, *, batch_tile=256):
    """x_nchw: (B, 3, 32, 32) float32 -> logits (B, 10) float32.

    kernel_params: (w1 (3072,512), b1 (1,512), w2 (512,128), b2 (1,128),
                    w3p (128,128) zero-padded, b3p (1,128) zero-padded).
    """
    w1, b1, w2, b2, w3p, b3p = kernel_params
    B = x_nchw.shape[0]
    # Flatten exactly like torch .view(-1, 3*32*32) (NCHW row-major).
    x = x_nchw.reshape(B, IN_DIM)

    # Batch tile: at least a multiple of 8 sublanes, at most `batch_tile`.
    tb = min(batch_tile, _round_up(B, 8))
    b_pad = _round_up(B, tb)
    if b_pad != B:
        x = jnp.pad(x, ((0, b_pad - B), (0, 0)))

    grid = (b_pad // tb,)

    const_spec = lambda shape: pl.BlockSpec(shape, lambda i: tuple(0 for _ in shape))

    flops = 2 * b_pad * (IN_DIM * H1_DIM + H1_DIM * H2_DIM + H2_DIM * OUT_PAD)
    bytes_accessed = 4 * (
        b_pad * IN_DIM                                   # x
        + IN_DIM * H1_DIM + H1_DIM * H2_DIM + H2_DIM * OUT_PAD  # weights
        + H1_DIM + H2_DIM + OUT_PAD                      # biases
        + b_pad * OUT_PAD                                # output
    )
    cost = pl.CostEstimate(flops=flops, transcendentals=0,
                           bytes_accessed=bytes_accessed)

    out = pl.pallas_call(
        fnn_kernel,
        out_shape=jax.ShapeDtypeStruct((b_pad, OUT_PAD), jnp.float32),
        grid=grid,
        in_specs=[
            pl.BlockSpec((tb, IN_DIM), lambda i: (i, 0)),   # x tile (pipelined)
            const_spec(w1.shape), const_spec(b1.shape),     # resident weights
            const_spec(w2.shape), const_spec(b2.shape),
            const_spec(w3p.shape), const_spec(b3p.shape),
        ],
        out_specs=pl.BlockSpec((tb, OUT_PAD), lambda i: (i, 0)),
        compiler_params=pltpu.CompilerParams(
            dimension_semantics=("parallel",),
        ),
        cost_estimate=cost,
    )(x, w1, b1, w2, b2, w3p, b3p)

    # Strip batch padding and the 118 zero logit columns.
    return out[:B, :OUT_DIM]


def init_params(key):
    """Deterministic init mirroring nn.Linear default (uniform +/- 1/sqrt(fan_in)).

    Weights stored as (in_features, out_features). Returns the *logical* params
    (unpadded fc3)."""
    dims = [(IN_DIM, H1_DIM), (H1_DIM, H2_DIM), (H2_DIM, OUT_DIM)]
    params = []
    for (fan_in, fan_out) in dims:
        key, kw, kb = jax.random.split(key, 3)
        bound = 1.0 / jnp.sqrt(fan_in)
        w = jax.random.uniform(kw, (fan_in, fan_out), jnp.float32, -bound, bound)
        b = jax.random.uniform(kb, (1, fan_out), jnp.float32, -bound, bound)
        params += [w, b]
    return tuple(params)


def pad_params_for_kernel(params):
    """Zero-pad fc3 to a lane-dense 128-wide output (done once, up front)."""
    w1, b1, w2, b2, w3, b3 = params
    w3p = jnp.pad(w3, ((0, 0), (0, OUT_PAD - OUT_DIM)))
    b3p = jnp.pad(b3, ((0, 0), (0, OUT_PAD - OUT_DIM)))
    return (w1, b1, w2, b2, w3p, b3p)


if __name__ == "__main__":
    key = jax.random.PRNGKey(0)
    key, kx = jax.random.split(key)

    B = 8
    x = jax.random.normal(kx, (B, 3, 32, 32), jnp.float32)
    params = init_params(key)
    kernel_params = pad_params_for_kernel(params)

    logits = simple_fnn_forward(x, kernel_params)
    jax.block_until_ready(logits)

    # Reference check in plain JAX (same math).
    w1, b1, w2, b2, w3, b3 = params
    xf = x.reshape(B, -1)
    ref = jnp.maximum(xf @ w1 + b1, 0.0)
    ref = jnp.maximum(ref @ w2 + b2, 0.0)
    ref = ref @ w3 + b3
    assert logits.shape == (B, OUT_DIM)
    assert jnp.allclose(logits, ref, atol=1e-4, rtol=1e-4)

    print("KERNEL_OK")
</pallas_src>

<mosaic_0001>
module attributes {stable_mosaic.version = 11 : i64} {
  func.func @fnn_kernel(%arg0: i32, %arg1: memref<8x3072xf32, #tpu.memory_space<vmem>>, %arg2: memref<3072x512xf32, #tpu.memory_space<vmem>>, %arg3: memref<1x512xf32, #tpu.memory_space<vmem>>, %arg4: memref<512x128xf32, #tpu.memory_space<vmem>>, %arg5: memref<1x128xf32, #tpu.memory_space<vmem>>, %arg6: memref<128x128xf32, #tpu.memory_space<vmem>>, %arg7: memref<1x128xf32, #tpu.memory_space<vmem>>, %arg8: memref<8x128xf32, #tpu.memory_space<vmem>>) attributes {dimension_semantics = [#tpu.dimension_semantics<parallel>], iteration_bounds = array<i64: 1>, scalar_prefetch = 0 : i64, scratch_operands = 0 : i64, tpu.core_type = #tpu.core_type<tc>, window_params = [{transform_indices = @transform_0, window_bounds = array<i64: 8, 3072>}, {pipeline_mode = #tpu.pipeline_mode<synchronous>, transform_indices = @transform_1, window_bounds = array<i64: 3072, 512>}, {pipeline_mode = #tpu.pipeline_mode<synchronous>, transform_indices = @transform_2, window_bounds = array<i64: 1, 512>}, {pipeline_mode = #tpu.pipeline_mode<synchronous>, transform_indices = @transform_3, window_bounds = array<i64: 512, 128>}, {pipeline_mode = #tpu.pipeline_mode<synchronous>, transform_indices = @transform_4, window_bounds = array<i64: 1, 128>}, {pipeline_mode = #tpu.pipeline_mode<synchronous>, transform_indices = @transform_5, window_bounds = array<i64: 128, 128>}, {pipeline_mode = #tpu.pipeline_mode<synchronous>, transform_indices = @transform_6, window_bounds = array<i64: 1, 128>}, {transform_indices = @transform_7, window_bounds = array<i64: 8, 128>}]} {
    %c0 = arith.constant 0 : index
    %c0_0 = arith.constant 0 : index
    %0 = vector.load %arg1[%c0, %c0_0] : memref<8x3072xf32, #tpu.memory_space<vmem>>, vector<8x3072xf32>
    %c0_1 = arith.constant 0 : index
    %c0_2 = arith.constant 0 : index
    %1 = vector.load %arg2[%c0_1, %c0_2] : memref<3072x512xf32, #tpu.memory_space<vmem>>, vector<3072x512xf32>
    %cst = arith.constant dense<0.000000e+00> : vector<8x512xf32>
    %2 = tpu.matmul %0, %1, %cst {dimension_numbers = #tpu.dot_dimension_numbers<[1], [0], [0], [1], [0, 0, 1, 1], [], []>} : vector<8x3072xf32>, vector<3072x512xf32>, vector<8x512xf32> -> vector<8x512xf32>
    %c0_3 = arith.constant 0 : index
    %c0_4 = arith.constant 0 : index
    %3 = vector.load %arg3[%c0_3, %c0_4] : memref<1x512xf32, #tpu.memory_space<vmem>>, vector<1x512xf32>
    %4 = vector.broadcast %3 : vector<1x512xf32> to vector<8x512xf32>
    %5 = arith.addf %2, %4 : vector<8x512xf32>
    %cst_5 = arith.constant 0.000000e+00 : f32
    %6 = vector.broadcast %cst_5 : f32 to vector<8x512xf32>
    %7 = arith.maximumf %5, %6 : vector<8x512xf32>
    %c0_6 = arith.constant 0 : index
    %c0_7 = arith.constant 0 : index
    %8 = vector.load %arg4[%c0_6, %c0_7] : memref<512x128xf32, #tpu.memory_space<vmem>>, vector<512x128xf32>
    %cst_8 = arith.constant dense<0.000000e+00> : vector<8x128xf32>
    %9 = tpu.matmul %7, %8, %cst_8 {dimension_numbers = #tpu.dot_dimension_numbers<[1], [0], [0], [1], [0, 0, 1, 1], [], []>} : vector<8x512xf32>, vector<512x128xf32>, vector<8x128xf32> -> vector<8x128xf32>
    %c0_9 = arith.constant 0 : index
    %c0_10 = arith.constant 0 : index
    %10 = vector.load %arg5[%c0_9, %c0_10] : memref<1x128xf32, #tpu.memory_space<vmem>>, vector<1x128xf32>
    %11 = vector.broadcast %10 : vector<1x128xf32> to vector<8x128xf32>
    %12 = arith.addf %9, %11 : vector<8x128xf32>
    %cst_11 = arith.constant 0.000000e+00 : f32
    %13 = vector.broadcast %cst_11 : f32 to vector<8x128xf32>
    %14 = arith.maximumf %12, %13 : vector<8x128xf32>
    %c0_12 = arith.constant 0 : index
    %c0_13 = arith.constant 0 : index
    %15 = vector.load %arg6[%c0_12, %c0_13] : memref<128x128xf32, #tpu.memory_space<vmem>>, vector<128x128xf32>
    %cst_14 = arith.constant dense<0.000000e+00> : vector<8x128xf32>
    %16 = tpu.matmul %14, %15, %cst_14 {dimension_numbers = #tpu.dot_dimension_numbers<[1], [0], [0], [1], [0, 0, 1, 1], [], []>} : vector<8x128xf32>, vector<128x128xf32>, vector<8x128xf32> -> vector<8x128xf32>
    %c0_15 = arith.constant 0 : index
    %c0_16 = arith.constant 0 : index
    %17 = vector.load %arg7[%c0_15, %c0_16] : memref<1x128xf32, #tpu.memory_space<vmem>>, vector<1x128xf32>
    %18 = vector.broadcast %17 : vector<1x128xf32> to vector<8x128xf32>
    %19 = arith.addf %16, %18 : vector<8x128xf32>
    %c0_17 = arith.constant 0 : index
    %c0_18 = arith.constant 0 : index
    %20 = vector.load %arg8[%c0_17, %c0_18] : memref<8x128xf32, #tpu.memory_space<vmem>>, vector<8x128xf32>
    tpu.vector_store %arg8[%c0_17, %c0_18], %19 {strides = array<i32>} : memref<8x128xf32, #tpu.memory_space<vmem>>, vector<8x128xf32>,
    return
  }
  func.func @transform_0(%arg0: i32) -> (i32, i32) {
    %c0_i32 = arith.constant 0 : i32
    %c0_i32_0 = arith.constant 0 : i32
    return %arg0, %c0_i32 : i32, i32
  }
  func.func @transform_1(%arg0: i32) -> (i32, i32) {
    %c0_i32 = arith.constant 0 : i32
    %c0_i32_0 = arith.constant 0 : i32
    %c0_i32_1 = arith.constant 0 : i32
    return %c0_i32, %c0_i32_0 : i32, i32
  }
  func.func @transform_2(%arg0: i32) -> (i32, i32) {
    %c0_i32 = arith.constant 0 : i32
    %c0_i32_0 = arith.constant 0 : i32
    %c0_i32_1 = arith.constant 0 : i32
    return %c0_i32, %c0_i32_0 : i32, i32
  }
  func.func @transform_3(%arg0: i32) -> (i32, i32) {
    %c0_i32 = arith.constant 0 : i32
    %c0_i32_0 = arith.constant 0 : i32
    %c0_i32_1 = arith.constant 0 : i32
    return %c0_i32, %c0_i32_0 : i32, i32
  }
  func.func @transform_4(%arg0: i32) -> (i32, i32) {
    %c0_i32 = arith.constant 0 : i32
    %c0_i32_0 = arith.constant 0 : i32
    %c0_i32_1 = arith.constant 0 : i32
    return %c0_i32, %c0_i32_0 : i32, i32
  }
  func.func @transform_5(%arg0: i32) -> (i32, i32) {
    %c0_i32 = arith.constant 0 : i32
    %c0_i32_0 = arith.constant 0 : i32
    %c0_i32_1 = arith.constant 0 : i32
    return %c0_i32, %c0_i32_0 : i32, i32
  }
  func.func @transform_6(%arg0: i32) -> (i32, i32) {
    %c0_i32 = arith.constant 0 : i32
    %c0_i32_0 = arith.constant 0 : i32
    %c0_i32_1 = arith.constant 0 : i32
    return %c0_i32, %c0_i32_0 : i32, i32
  }
  func.func @transform_7(%arg0: i32) -> (i32, i32) {
    %c0_i32 = arith.constant 0 : i32
    %c0_i32_0 = arith.constant 0 : i32
    return %arg0, %c0_i32 : i32, i32
  }
}

</mosaic_0001>

<bundles_post_ra>
// kernel: tpu_custom_call.1
= control target key start
LH: loop header
LB: loop body
LE: loop exit
PB: predicated region body
PF: predicated region fallthrough
CT: control target
= control target key end

     0   :  { %12 = vsyncpa [#allocation3], 0  ;;  %s4295_s0 = inlined_call_operand.hbm [shape: f32[8,3072], index: 0, kind: input, shape index: {}]   ;;  %s4296_s1 = inlined_call_operand.hbm [shape: f32[3072,512], index: 1, kind: input, shape index: {}]   ;;  %s4297_s2 = inlined_call_operand.hbm [shape: f32[1,512], index: 2, kind: input, shape index: {}]   ;;  %s4298_s3 = inlined_call_operand.hbm [shape: f32[512,128], index: 3, kind: input, shape index: {}]   ;;  %s4299_s4 = inlined_call_operand.hbm [shape: f32[1,128], index: 4, kind: input, shape index: {}]   ;;  %s4300_s5 = inlined_call_operand.hbm [shape: f32[128,128], index: 5, kind: input, shape index: {}]   ;;  %s4301_s6 = inlined_call_operand.hbm [shape: f32[1,128], index: 6, kind: input, shape index: {}]   ;;  %s4302_s7 = inlined_call_operand.hbm [shape: f32[8,128], index: 7, kind: output, shape index: {}]  }
   0x1   :  { %13 = vsyncpa [#allocation6], 0 }
   0x2   :  { %14 = vsyncpa [#allocation9], 0 }
   0x3   :  { %15 = vsyncpa [#allocation12], 0  ;;  %s32_s26 = sshll.u32 %s4296_s1, 4  ;;  %s33_s26 = int_to_ptr.hbm [resolvable:$true] %s32_s26 }
   0x4   :  { %16 = vsyncpa [#allocation4], 0  ;;  %s4121_s27 = smov [#allocation5]   ;;  %s56_s8 = sshll.u32 %s4298_s3, 4  ;;  %s57_s8 = int_to_ptr.hbm [resolvable:$true] %s56_s8 }
   0x5   :  { %s34_s28 = sshll.u32 %s4121_s27, 4  ;;  %s4122_s9 = smov 512   ;;  %s35_s28 = int_to_ptr.vmem [resolvable:$true] %s34_s28 }
   0x6   :  { %s4123_s10 = smov 32   ;;  %s4124_s11 = smov [#allocation8]  }
   0x7   :  { %40 = dma.hbm_to_vmem [thread:$0]  %s33_s26, 196608, %s35_s28, [#allocation6], %s4122_s9, %s4122_s9, %s4123_s10  }
   0x8   :  { %s58_s12 = sshll.u32 %s4124_s11, 4  ;;  %s4125_s13 = smov 128   ;;  %s59_s12 = int_to_ptr.vmem [resolvable:$true] %s58_s12 }
   0x9   :  { %s4126_s14 = smov 8   ;;  %s80_s16 = sshll.u32 %s4300_s5, 4  ;;  %s81_s16 = int_to_ptr.hbm [resolvable:$true] %s80_s16 }
   0xa   :  { %64 = dma.hbm_to_vmem [thread:$0]  %s57_s8, 8192, %s59_s12, [#allocation9], %s4125_s13, %s4125_s13, %s4126_s14  }
   0xb   :  { %s4127_s17 = smov [#allocation11]   ;;  %s22_s20 = sshll.u32 %s4295_s0, 4  ;;  %s23_s20 = int_to_ptr.hbm [resolvable:$true] %s22_s20 }
   0xc   :  { %s82_s18 = sshll.u32 %s4127_s17, 4  ;;  %s4128_s21 = smov [#allocation2]   ;;  %s83_s18 = int_to_ptr.vmem [resolvable:$true] %s82_s18 }
   0xd   :  { %88 = dma.hbm_to_vmem [thread:$0]  %s81_s16, 2048, %s83_s18, [#allocation12], %s4125_s13, %s4125_s13, %s4126_s14  }
   0xe   :  { %s24_s22 = sshll.u32 %s4128_s21, 4  ;;  %s46_s25 = sshll.u32 %s4297_s2, 4  ;;  %s25_s22 = int_to_ptr.vmem [resolvable:$true] %s24_s22  ;;  %s47_s25 = int_to_ptr.hbm [resolvable:$true] %s46_s25 }
   0xf   :  { %27 = dma.hbm_to_vmem [thread:$0]  %s23_s20, 3072, %s25_s22, [#allocation3]  }
  0x10   :  { %s70_s27 = sshll.u32 %s4299_s4, 4  ;;  %s4129_s28 = smov [#allocation7]   ;;  %s71_s27 = int_to_ptr.hbm [resolvable:$true] %s70_s27 }
  0x11   :  { %s48_s29 = sshll.u32 %s4129_s28, 4  ;;  %s4130_s0 = smov [#allocation10]   ;;  %s49_s29 = int_to_ptr.vmem [resolvable:$true] %s48_s29 }
  0x12   :  { %51 = dma.hbm_to_vmem [thread:$0]  %s47_s25, 64, %s49_s29, [#allocation6]  }
  0x13   :  { %s72_s30 = sshll.u32 %s4130_s0, 4  ;;  %s94_s10 = sshll.u32 %s4301_s6, 4  ;;  %s73_s30 = int_to_ptr.vmem [resolvable:$true] %s72_s30  ;;  %s95_s10 = int_to_ptr.hbm [resolvable:$true] %s94_s10 }
  0x14   :  { %75 = dma.hbm_to_vmem [thread:$0]  %s71_s27, 16, %s73_s30, [#allocation9]  }
  0x15   :  { %s4131_s2 = smov [#allocation13]  }
  0x16   :  { %s96_s11 = sshll.u32 %s4131_s2, 4  ;;  %s97_s11 = int_to_ptr.vmem [resolvable:$true] %s96_s11 }
  0x17   :  { %99 = dma.hbm_to_vmem [thread:$0]  %s95_s10, 16, %s97_s11, [#allocation12]  }
  0x18   :  { %4111 = dma.done.wait [#allocation3], 3072  }
  0x19   :  { %4112 = vsyncadd [#allocation3], 4294964224 }
  0x1a   :  { %4113 = dma.done.wait [#allocation6], 196672  }
  0x1b   :  { %4114 = vsyncadd [#allocation6], 4294770624 }
  0x1c   :  { %4115 = dma.done.wait [#allocation9], 8208  }
  0x1d   :  { %4116 = vsyncadd [#allocation9], 4294959088 }
  0x1e   :  { %4117 = dma.done.wait [#allocation12], 2064  }
  0x1f   :  { %4118 = vsyncadd [#allocation12], 4294965232  ;;  %v212_v0 = vld [vmem:[#allocation5 + $0x1e0] sm:$0xff]  ;;  %s4132_s4 = smov [#allocation14]   ;;  %s3819_s14 = sshll.u32 %s4302_s7, 4  ;;  %s3820_s14 = int_to_ptr.hbm [resolvable:$true] %s3819_s14 }
  0x20   :  { %v276_v1 = vld [vmem:[#allocation5 + $0x3e0] sm:$0xff]  ;;  %1698 = vmatpush.msra.mxu0 %v212_v0  ;;  %s3817_s6 = sshll.u32 %s4132_s4, 4  ;;  %s3818_s6 = int_to_ptr.vmem [resolvable:$true] %s3817_s6 }
  0x21   :  { %v340_v2 = vld [vmem:[#allocation5 + $0x5e0] sm:$0xff]  ;;  %1718 = vmatpush.msra.mxu1 %v276_v1 }
  0x22   :  { %v208_v3 = vld [vmem:[#allocation5 + $0x1c0] sm:$0xff]  ;;  %1738 = vmatpush.msra.mxu2 %v340_v2 }
  0x23   :  { %v272_v4 = vld [vmem:[#allocation5 + $0x3c0] sm:$0xff]  ;;  %1699 = vmatpush.msra.mxu0 %v208_v3 }
  0x24   :  { %v336_v5 = vld [vmem:[#allocation5 + $0x5c0] sm:$0xff]  ;;  %1719 = vmatpush.msra.mxu1 %v272_v4 }
  0x25   :  { %v404_v6 = vld [vmem:[#allocation5 + $0x7e0] sm:$0xff]  ;;  %1739 = vmatpush.msra.mxu2 %v336_v5 }
  0x26   :  { %v204_v7 = vld [vmem:[#allocation5 + $0x1a0] sm:$0xff]  ;;  %1758 = vmatpush.msra.mxu3 %v404_v6 }
  0x27   :  { %v268_v8 = vld [vmem:[#allocation5 + $0x3a0] sm:$0xff]  ;;  %1700 = vmatpush.msra.mxu0 %v204_v7 }
  0x28   :  { %v332_v9 = vld [vmem:[#allocation5 + $0x5a0] sm:$0xff]  ;;  %1720 = vmatpush.msra.mxu1 %v268_v8 }
  0x29   :  { %v400_v10 = vld [vmem:[#allocation5 + $0x7c0] sm:$0xff]  ;;  %1740 = vmatpush.msra.mxu2 %v332_v9 }
  0x2a   :  { %v200_v11 = vld [vmem:[#allocation5 + $0x180] sm:$0xff]  ;;  %1759 = vmatpush.msra.mxu3 %v400_v10 }
  0x2b   :  { %v264_v12 = vld [vmem:[#allocation5 + $0x380] sm:$0xff]  ;;  %1701 = vmatpush.msra.mxu0 %v200_v11 }
  0x2c   :  { %v328_v13 = vld [vmem:[#allocation5 + $0x580] sm:$0xff]  ;;  %1721 = vmatpush.msra.mxu1 %v264_v12 }
  0x2d   :  { %v396_v14 = vld [vmem:[#allocation5 + $0x7a0] sm:$0xff]  ;;  %1741 = vmatpush.msra.mxu2 %v328_v13 }
  0x2e   :  { %v196_v15 = vld [vmem:[#allocation5 + $0x160] sm:$0xff]  ;;  %1760 = vmatpush.msra.mxu3 %v396_v14 }
  0x2f   :  { %v260_v16 = vld [vmem:[#allocation5 + $0x360] sm:$0xff]  ;;  %1702 = vmatpush.msra.mxu0 %v196_v15 }
  0x30   :  { %v324_v17 = vld [vmem:[#allocation5 + $0x560] sm:$0xff]  ;;  %1722 = vmatpush.msra.mxu1 %v260_v16 }
  0x31   :  { %v392_v18 = vld [vmem:[#allocation5 + $0x780] sm:$0xff]  ;;  %1742 = vmatpush.msra.mxu2 %v324_v17 }
  0x32   :  { %v192_v19 = vld [vmem:[#allocation5 + $0x140] sm:$0xff]  ;;  %1761 = vmatpush.msra.mxu3 %v392_v18 }
  0x33   :  { %v256_v20 = vld [vmem:[#allocation5 + $0x340] sm:$0xff]  ;;  %1703 = vmatpush.msra.mxu0 %v192_v19 }
  0x34   :  { %v320_v21 = vld [vmem:[#allocation5 + $0x540] sm:$0xff]  ;;  %1723 = vmatpush.msra.mxu1 %v256_v20 }
  0x35   :  { %v388_v22 = vld [vmem:[#allocation5 + $0x760] sm:$0xff]  ;;  %1743 = vmatpush.msra.mxu2 %v320_v21 }
  0x36   :  { %v188_v23 = vld [vmem:[#allocation5 + $0x120] sm:$0xff]  ;;  %1762 = vmatpush.msra.mxu3 %v388_v22 }
  0x37   :  { %v252_v24 = vld [vmem:[#allocation5 + $0x320] sm:$0xff]  ;;  %1704 = vmatpush.msra.mxu0 %v188_v23 }
  0x38   :  { %v316_v25 = vld [vmem:[#allocation5 + $0x520] sm:$0xff]  ;;  %1724 = vmatpush.msra.mxu1 %v252_v24 }
  0x39   :  { %v384_v26 = vld [vmem:[#allocation5 + $0x740] sm:$0xff]  ;;  %1744 = vmatpush.msra.mxu2 %v316_v25 }
  0x3a   :  { %v184_v27 = vld [vmem:[#allocation5 + $0x100] sm:$0xff]  ;;  %1763 = vmatpush.msra.mxu3 %v384_v26 }
  0x3b   :  { %v248_v28 = vld [vmem:[#allocation5 + $0x300] sm:$0xff]  ;;  %1705 = vmatpush.msra.mxu0 %v184_v27 }
  0x3c   :  { %v312_v29 = vld [vmem:[#allocation5 + $0x500] sm:$0xff]  ;;  %1725 = vmatpush.msra.mxu1 %v248_v28 }
  0x3d   :  { %v380_v30 = vld [vmem:[#allocation5 + $0x720] sm:$0xff]  ;;  %1745 = vmatpush.msra.mxu2 %v312_v29 }
  0x3e   :  { %v180_v31 = vld [vmem:[#allocation5 + $0xe0] sm:$0xff]  ;;  %1764 = vmatpush.msra.mxu3 %v380_v30 }
  0x3f   :  { %v244_v32 = vld [vmem:[#allocation5 + $0x2e0] sm:$0xff]  ;;  %1706 = vmatpush.msra.mxu0 %v180_v31 }
  0x40   :  { %v308_v33 = vld [vmem:[#allocation5 + $0x4e0] sm:$0xff]  ;;  %1726 = vmatpush.msra.mxu1 %v244_v32 }
  0x41   :  { %v376_v34 = vld [vmem:[#allocation5 + $0x700] sm:$0xff]  ;;  %1746 = vmatpush.msra.mxu2 %v308_v33 }
  0x42   :  { %v176_v35 = vld [vmem:[#allocation5 + $0xc0] sm:$0xff]  ;;  %1765 = vmatpush.msra.mxu3 %v376_v34 }
  0x43   :  { %v240_v36 = vld [vmem:[#allocation5 + $0x2c0] sm:$0xff]  ;;  %1707 = vmatpush.msra.mxu0 %v176_v35 }
  0x44   :  { %v304_v37 = vld [vmem:[#allocation5 + $0x4c0] sm:$0xff]  ;;  %1727 = vmatpush.msra.mxu1 %v240_v36 }
  0x45   :  { %v372_v38 = vld [vmem:[#allocation5 + $0x6e0] sm:$0xff]  ;;  %1747 = vmatpush.msra.mxu2 %v304_v37 }
  0x46   :  { %v172_v39 = vld [vmem:[#allocation5 + $0xa0] sm:$0xff]  ;;  %1766 = vmatpush.msra.mxu3 %v372_v38 }
  0x47   :  { %v236_v40 = vld [vmem:[#allocation5 + $0x2a0] sm:$0xff]  ;;  %1708 = vmatpush.msra.mxu0 %v172_v39 }
  0x48   :  { %v300_v41 = vld [vmem:[#allocation5 + $0x4a0] sm:$0xff]  ;;  %1728 = vmatpush.msra.mxu1 %v236_v40 }
  0x49   :  { %v368_v42 = vld [vmem:[#allocation5 + $0x6c0] sm:$0xff]  ;;  %1748 = vmatpush.msra.mxu2 %v300_v41 }
  0x4a   :  { %v168_v43 = vld [vmem:[#allocation5 + $0x80] sm:$0xff]  ;;  %1767 = vmatpush.msra.mxu3 %v368_v42 }
  0x4b   :  { %v232_v44 = vld [vmem:[#allocation5 + $0x280] sm:$0xff]  ;;  %1709 = vmatpush.msra.mxu0 %v168_v43 }
  0x4c   :  { %v296_v45 = vld [vmem:[#allocation5 + $0x480] sm:$0xff]  ;;  %1729 = vmatpush.msra.mxu1 %v232_v44 }
  0x4d   :  { %v364_v46 = vld [vmem:[#allocation5 + $0x6a0] sm:$0xff]  ;;  %1749 = vmatpush.msra.mxu2 %v296_v45 }
  0x4e   :  { %v164_v47 = vld [vmem:[#allocation5 + $0x60] sm:$0xff]  ;;  %1768 = vmatpush.msra.mxu3 %v364_v46 }
  0x4f   :  { %v228_v48 = vld [vmem:[#allocation5 + $0x260] sm:$0xff]  ;;  %1710 = vmatpush.msra.mxu0 %v164_v47 }
  0x50   :  { %v292_v49 = vld [vmem:[#allocation5 + $0x460] sm:$0xff]  ;;  %1730 = vmatpush.msra.mxu1 %v228_v48 }
  0x51   :  { %v360_v50 = vld [vmem:[#allocation5 + $0x680] sm:$0xff]  ;;  %1750 = vmatpush.msra.mxu2 %v292_v49 }
  0x52   :  { %v160_v51 = vld [vmem:[#allocation5 + $0x40] sm:$0xff]  ;;  %1769 = vmatpush.msra.mxu3 %v360_v50 }
  0x53   :  { %v224_v52 = vld [vmem:[#allocation5 + $0x240] sm:$0xff]  ;;  %1711 = vmatpush.msra.mxu0 %v160_v51 }
  0x54   :  { %v288_v53 = vld [vmem:[#allocation5 + $0x440] sm:$0xff]  ;;  %1731 = vmatpush.msra.mxu1 %v224_v52 }
  0x55   :  { %v356_v54 = vld [vmem:[#allocation5 + $0x660] sm:$0xff]  ;;  %1751 = vmatpush.msra.mxu2 %v288_v53 }
  0x56   :  { %v156_v55 = vld [vmem:[#allocation5 + $0x20] sm:$0xff]  ;;  %1770 = vmatpush.msra.mxu3 %v356_v54 }
  0x57   :  { %v220_v56 = vld [vmem:[#allocation5 + $0x220] sm:$0xff]  ;;  %1712 = vmatpush.msra.mxu0 %v156_v55 }
  0x58   :  { %v284_v57 = vld [vmem:[#allocation5 + $0x420] sm:$0xff]  ;;  %1732 = vmatpush.msra.mxu1 %v220_v56 }
  0x59   :  { %v352_v58 = vld [vmem:[#allocation5 + $0x640] sm:$0xff]  ;;  %1752 = vmatpush.msra.mxu2 %v284_v57 }
  0x5a   :  { %v152_v59 = vld [vmem:[#allocation5] sm:$0xff]  ;;  %1771 = vmatpush.msra.mxu3 %v352_v58 }
  0x5b   :  { %v216_v60 = vld [vmem:[#allocation5 + $0x200] sm:$0xff]  ;;  %1713 = vmatpush.msra.mxu0 %v152_v59 }
  0x5c   :  { %v280_v61 = vld [vmem:[#allocation5 + $0x400] sm:$0xff]  ;;  %1733 = vmatpush.msra.mxu1 %v216_v60 }
  0x5d   :  { %v348_v62 = vld [vmem:[#allocation5 + $0x620] sm:$0xff]  ;;  %1753 = vmatpush.msra.mxu2 %v280_v61 }
  0x5e   :  { %v468_v63 = vld [vmem:[#allocation5 + $0x9e0] sm:$0xff]  ;;  %1772 = vmatpush.msra.mxu3 %v348_v62 }
  0x5f   :  { %v532_v0 = vld [vmem:[#allocation5 + $0xbe0] sm:$0xff]  ;;  %1778 = vmatpush.msrb.mxu0 %v468_v63 }
  0x60   :  { %v596_v1 = vld [vmem:[#allocation5 + $0xde0] sm:$0xff]  ;;  %1798 = vmatpush.msrb.mxu1 %v532_v0  ;;  %v129_v0 = vld [vmem:[#allocation2 + $0x8] sm:$0xff] }
  0x61   :  { %v344_v2 = vld [vmem:[#allocation5 + $0x600] sm:$0xff]  ;;  %1818 = vmatpush.msrb.mxu2 %v596_v1  ;;  %v130_v1 = vld [vmem:[#allocation2 + $0x10] sm:$0xff]  ;;  %1734 = vmatmul.f32.vlgmr.msra.gmra.mxu1 %v129_v0 }
  0x62   :  { %v464_v3 = vld [vmem:[#allocation5 + $0x9c0] sm:$0xff]  ;;  %1773 = vmatpush.msra.mxu3 %v344_v2  ;;  %1754 = vmatmul.f32.vlgmr.msra.gmra.mxu2 %v130_v1 }
  0x63   :  { %v528_v4 = vld [vmem:[#allocation5 + $0xbc0] sm:$0xff]  ;;  %1779 = vmatpush.msrb.mxu0 %v464_v3 }
  0x64   :  { %v592_v5 = vld [vmem:[#allocation5 + $0xdc0] sm:$0xff]  ;;  %1799 = vmatpush.msrb.mxu1 %v528_v4 }
  0x65   :  { %v660_v6 = vld [vmem:[#allocation5 + $0xfe0] sm:$0xff]  ;;  %1819 = vmatpush.msrb.mxu2 %v592_v5 }
  0x66   :  { %v460_v7 = vld [vmem:[#allocation5 + $0x9a0] sm:$0xff]  ;;  %1838 = vmatpush.msrb.mxu3 %v660_v6 }
  0x67   :  { %v524_v8 = vld [vmem:[#allocation5 + $0xba0] sm:$0xff]  ;;  %1780 = vmatpush.msrb.mxu0 %v460_v7  ;;  %v131_v7 = vld [vmem:[#allocation2 + $0x18] sm:$0xff] }
  0x68   :  { %v588_v9 = vld [vmem:[#allocation5 + $0xda0] sm:$0xff]  ;;  %1800 = vmatpush.msrb.mxu1 %v524_v8  ;;  %1774 = vmatmul.f32.vlgmr.msra.gmra.mxu3 %v131_v7 }
  0x69   :  { %v656_v10 = vld [vmem:[#allocation5 + $0xfc0] sm:$0xff]  ;;  %1820 = vmatpush.msrb.mxu2 %v588_v9 }
  0x6a   :  { %v456_v11 = vld [vmem:[#allocation5 + $0x980] sm:$0xff]  ;;  %1839 = vmatpush.msrb.mxu3 %v656_v10 }
  0x6b   :  { %v520_v12 = vld [vmem:[#allocation5 + $0xb80] sm:$0xff]  ;;  %1781 = vmatpush.msrb.mxu0 %v456_v11 }
  0x6c   :  { %v584_v13 = vld [vmem:[#allocation5 + $0xd80] sm:$0xff]  ;;  %1801 = vmatpush.msrb.mxu1 %v520_v12 }
  0x6d   :  { %v652_v14 = vld [vmem:[#allocation5 + $0xfa0] sm:$0xff]  ;;  %1821 = vmatpush.msrb.mxu2 %v584_v13 }
  0x6e   :  { %v452_v15 = vld [vmem:[#allocation5 + $0x960] sm:$0xff]  ;;  %1840 = vmatpush.msrb.mxu3 %v652_v14 }
  0x6f   :  { %v516_v16 = vld [vmem:[#allocation5 + $0xb60] sm:$0xff]  ;;  %1782 = vmatpush.msrb.mxu0 %v452_v15 }
  0x70   :  { %v580_v17 = vld [vmem:[#allocation5 + $0xd60] sm:$0xff]  ;;  %1802 = vmatpush.msrb.mxu1 %v516_v16 }
  0x71   :  { %v648_v18 = vld [vmem:[#allocation5 + $0xf80] sm:$0xff]  ;;  %1822 = vmatpush.msrb.mxu2 %v580_v17 }
  0x72   :  { %v448_v19 = vld [vmem:[#allocation5 + $0x940] sm:$0xff]  ;;  %1841 = vmatpush.msrb.mxu3 %v648_v18 }
  0x73   :  { %v512_v20 = vld [vmem:[#allocation5 + $0xb40] sm:$0xff]  ;;  %1783 = vmatpush.msrb.mxu0 %v448_v19  ;;  %v134_v19 = vld [vmem:[#allocation2 + $0x30] sm:$0xff] }
  0x74   :  { %v576_v21 = vld [vmem:[#allocation5 + $0xd40] sm:$0xff]  ;;  %1803 = vmatpush.msrb.mxu1 %v512_v20 }
  0x75   :  { %v644_v22 = vld [vmem:[#allocation5 + $0xf60] sm:$0xff]  ;;  %1823 = vmatpush.msrb.mxu2 %v576_v21 }
  0x76   :  { %v444_v23 = vld [vmem:[#allocation5 + $0x920] sm:$0xff]  ;;  %1842 = vmatpush.msrb.mxu3 %v644_v22 }
  0x77   :  { %v508_v24 = vld [vmem:[#allocation5 + $0xb20] sm:$0xff]  ;;  %1784 = vmatpush.msrb.mxu0 %v444_v23 }
  0x78   :  { %v572_v25 = vld [vmem:[#allocation5 + $0xd20] sm:$0xff]  ;;  %1804 = vmatpush.msrb.mxu1 %v508_v24 }
  0x79   :  { %v640_v26 = vld [vmem:[#allocation5 + $0xf40] sm:$0xff]  ;;  %1824 = vmatpush.msrb.mxu2 %v572_v25  ;;  %v135_v25 = vld [vmem:[#allocation2 + $0x38] sm:$0xff] }
  0x7a   :  { %v440_v27 = vld [vmem:[#allocation5 + $0x900] sm:$0xff]  ;;  %1843 = vmatpush.msrb.mxu3 %v640_v26 }
  0x7b   :  { %v504_v28 = vld [vmem:[#allocation5 + $0xb00] sm:$0xff]  ;;  %1785 = vmatpush.msrb.mxu0 %v440_v27 }
  0x7c   :  { %v568_v29 = vld [vmem:[#allocation5 + $0xd00] sm:$0xff]  ;;  %1805 = vmatpush.msrb.mxu1 %v504_v28 }
  0x7d   :  { %v636_v30 = vld [vmem:[#allocation5 + $0xf20] sm:$0xff]  ;;  %1825 = vmatpush.msrb.mxu2 %v568_v29 }
  0x7e   :  { %v436_v31 = vld [vmem:[#allocation5 + $0x8e0] sm:$0xff]  ;;  %1844 = vmatpush.msrb.mxu3 %v636_v30  ;;  %v133_v30 = vld [vmem:[#allocation2 + $0x28] sm:$0xff] }
  0x7f   :  { %v500_v32 = vld [vmem:[#allocation5 + $0xae0] sm:$0xff]  ;;  %1786 = vmatpush.msrb.mxu0 %v436_v31 }
  0x80   :  { %v564_v33 = vld [vmem:[#allocation5 + $0xce0] sm:$0xff]  ;;  %1806 = vmatpush.msrb.mxu1 %v500_v32 }
  0x81   :  { %v632_v34 = vld [vmem:[#allocation5 + $0xf00] sm:$0xff]  ;;  %1826 = vmatpush.msrb.mxu2 %v564_v33 }
  0x82   :  { %v432_v35 = vld [vmem:[#allocation5 + $0x8c0] sm:$0xff]  ;;  %1845 = vmatpush.msrb.mxu3 %v632_v34 }
  0x83   :  { %v496_v36 = vld [vmem:[#allocation5 + $0xac0] sm:$0xff]  ;;  %1787 = vmatpush.msrb.mxu0 %v432_v35 }
  0x84   :  { %v560_v37 = vld [vmem:[#allocation5 + $0xcc0] sm:$0xff]  ;;  %1807 = vmatpush.msrb.mxu1 %v496_v36 }
  0x85   :  { %v628_v38 = vld [vmem:[#allocation5 + $0xee0] sm:$0xff]  ;;  %1827 = vmatpush.msrb.mxu2 %v560_v37 }
  0x86   :  { %v428_v39 = vld [vmem:[#allocation5 + $0x8a0] sm:$0xff]  ;;  %1846 = vmatpush.msrb.mxu3 %v628_v38 }
  0x87   :  { %v492_v40 = vld [vmem:[#allocation5 + $0xaa0] sm:$0xff]  ;;  %1788 = vmatpush.msrb.mxu0 %v428_v39 }
  0x88   :  { %v556_v41 = vld [vmem:[#allocation5 + $0xca0] sm:$0xff]  ;;  %1808 = vmatpush.msrb.mxu1 %v492_v40 }
  0x89   :  { %v624_v42 = vld [vmem:[#allocation5 + $0xec0] sm:$0xff]  ;;  %1828 = vmatpush.msrb.mxu2 %v556_v41 }
  0x8a   :  { %v424_v43 = vld [vmem:[#allocation5 + $0x880] sm:$0xff]  ;;  %1847 = vmatpush.msrb.mxu3 %v624_v42 }
  0x8b   :  { %v488_v44 = vld [vmem:[#allocation5 + $0xa80] sm:$0xff]  ;;  %1789 = vmatpush.msrb.mxu0 %v424_v43 }
  0x8c   :  { %v552_v45 = vld [vmem:[#allocation5 + $0xc80] sm:$0xff]  ;;  %1809 = vmatpush.msrb.mxu1 %v488_v44 }
  0x8d   :  { %v620_v46 = vld [vmem:[#allocation5 + $0xea0] sm:$0xff]  ;;  %1829 = vmatpush.msrb.mxu2 %v552_v45 }
  0x8e   :  { %v420_v47 = vld [vmem:[#allocation5 + $0x860] sm:$0xff]  ;;  %1848 = vmatpush.msrb.mxu3 %v620_v46 }
  0x8f   :  { %v484_v48 = vld [vmem:[#allocation5 + $0xa60] sm:$0xff]  ;;  %1790 = vmatpush.msrb.mxu0 %v420_v47 }
  0x90   :  { %v548_v49 = vld [vmem:[#allocation5 + $0xc60] sm:$0xff]  ;;  %1810 = vmatpush.msrb.mxu1 %v484_v48 }
  0x91   :  { %v616_v50 = vld [vmem:[#allocation5 + $0xe80] sm:$0xff]  ;;  %1830 = vmatpush.msrb.mxu2 %v548_v49 }
  0x92   :  { %v416_v51 = vld [vmem:[#allocation5 + $0x840] sm:$0xff]  ;;  %1849 = vmatpush.msrb.mxu3 %v616_v50 }
  0x93   :  { %v480_v52 = vld [vmem:[#allocation5 + $0xa40] sm:$0xff]  ;;  %1791 = vmatpush.msrb.mxu0 %v416_v51 }
  0x94   :  { %v544_v53 = vld [vmem:[#allocation5 + $0xc40] sm:$0xff]  ;;  %1811 = vmatpush.msrb.mxu1 %v480_v52 }
  0x95   :  { %v612_v54 = vld [vmem:[#allocation5 + $0xe60] sm:$0xff]  ;;  %1831 = vmatpush.msrb.mxu2 %v544_v53 }
  0x96   :  { %v412_v55 = vld [vmem:[#allocation5 + $0x820] sm:$0xff]  ;;  %1850 = vmatpush.msrb.mxu3 %v612_v54 }
  0x97   :  { %v476_v56 = vld [vmem:[#allocation5 + $0xa20] sm:$0xff]  ;;  %1792 = vmatpush.msrb.mxu0 %v412_v55 }
  0x98   :  { %v540_v57 = vld [vmem:[#allocation5 + $0xc20] sm:$0xff]  ;;  %1812 = vmatpush.msrb.mxu1 %v476_v56 }
  0x99   :  { %v608_v58 = vld [vmem:[#allocation5 + $0xe40] sm:$0xff]  ;;  %1832 = vmatpush.msrb.mxu2 %v540_v57 }
  0x9a   :  { %v408_v59 = vld [vmem:[#allocation5 + $0x800] sm:$0xff]  ;;  %1851 = vmatpush.msrb.mxu3 %v608_v58 }
  0x9b   :  { %v472_v60 = vld [vmem:[#allocation5 + $0xa00] sm:$0xff]  ;;  %1793 = vmatpush.msrb.mxu0 %v408_v59 }
  0x9c   :  { %v536_v61 = vld [vmem:[#allocation5 + $0xc00] sm:$0xff]  ;;  %1813 = vmatpush.msrb.mxu1 %v472_v60 }
  0x9d   :  { %v604_v62 = vld [vmem:[#allocation5 + $0xe20] sm:$0xff]  ;;  %1833 = vmatpush.msrb.mxu2 %v536_v61  ;;  %1814 = vmatmul.f32.vlgmr.msrb.gmra.mxu1 %v133_v30 }
  0x9e   :  { %v128_v63 = vld [vmem:[#allocation2] sm:$0xff]  ;;  %1852 = vmatpush.msrb.mxu3 %v604_v62  ;;  %1834 = vmatmul.f32.vlgmr.msrb.gmra.mxu2 %v134_v19 }
  0x9f   :  { %v724_v2 = vld [vmem:[#allocation5 + $0x11e0] sm:$0xff]  ;;  %1714 = vmatmul.f32.vlgmr.msra.gmra.mxu0 %v128_v63 }
  0xa0   :  { %v788_v3 = vld [vmem:[#allocation5 + $0x13e0] sm:$0xff]  ;;  %1858 = vmatpush.msra.mxu0 %v724_v2 }
  0xa1   :  { %v852_v4 = vld [vmem:[#allocation5 + $0x15e0] sm:$0xff]  ;;  %1878 = vmatpush.msra.mxu1 %v788_v3 }
  0xa2   :  { %v600_v5 = vld [vmem:[#allocation5 + $0xe00] sm:$0xff]  ;;  %1898 = vmatpush.msra.mxu2 %v852_v4 }
  0xa3   :  { %v720_v6 = vld [vmem:[#allocation5 + $0x11c0] sm:$0xff]  ;;  %1853 = vmatpush.msrb.mxu3 %v600_v5 }
  0xa4   :  { %v784_v8 = vld [vmem:[#allocation5 + $0x13c0] sm:$0xff]  ;;  %1859 = vmatpush.msra.mxu0 %v720_v6  ;;  %1854 = vmatmul.f32.vlgmr.msrb.gmra.mxu3 %v135_v25 }
  0xa5   :  { %v848_v9 = vld [vmem:[#allocation5 + $0x15c0] sm:$0xff]  ;;  %1879 = vmatpush.msra.mxu1 %v784_v8  ;;  %v138_v8 = vld [vmem:[#allocation2 + $0x50] sm:$0xff] }
  0xa6   :  { %v916_v10 = vld [vmem:[#allocation5 + $0x17e0] sm:$0xff]  ;;  %1899 = vmatpush.msra.mxu2 %v848_v9 }
  0xa7   :  { %v716_v11 = vld [vmem:[#allocation5 + $0x11a0] sm:$0xff]  ;;  %1918 = vmatpush.msra.mxu3 %v916_v10 }
  0xa8   :  { %v780_v12 = vld [vmem:[#allocation5 + $0x13a0] sm:$0xff]  ;;  %1860 = vmatpush.msra.mxu0 %v716_v11 }
  0xa9   :  { %v844_v13 = vld [vmem:[#allocation5 + $0x15a0] sm:$0xff]  ;;  %1880 = vmatpush.msra.mxu1 %v780_v12 }
  0xaa   :  { %v912_v14 = vld [vmem:[#allocation5 + $0x17c0] sm:$0xff]  ;;  %1900 = vmatpush.msra.mxu2 %v844_v13  ;;  %v137_v13 = vld [vmem:[#allocation2 + $0x48] sm:$0xff] }
  0xab   :  { %v712_v15 = vld [vmem:[#allocation5 + $0x1180] sm:$0xff]  ;;  %1919 = vmatpush.msra.mxu3 %v912_v14  ;;  %v139_v14 = vld [vmem:[#allocation2 + $0x58] sm:$0xff] }
  0xac   :  { %v776_v16 = vld [vmem:[#allocation5 + $0x1380] sm:$0xff]  ;;  %1861 = vmatpush.msra.mxu0 %v712_v15 }
  0xad   :  { %v840_v17 = vld [vmem:[#allocation5 + $0x1580] sm:$0xff]  ;;  %1881 = vmatpush.msra.mxu1 %v776_v16 }
  0xae   :  { %v908_v18 = vld [vmem:[#allocation5 + $0x17a0] sm:$0xff]  ;;  %1901 = vmatpush.msra.mxu2 %v840_v17 }
  0xaf   :  { %v708_v20 = vld [vmem:[#allocation5 + $0x1160] sm:$0xff]  ;;  %1920 = vmatpush.msra.mxu3 %v908_v18 }
  0xb0   :  { %v772_v21 = vld [vmem:[#allocation5 + $0x1360] sm:$0xff]  ;;  %1862 = vmatpush.msra.mxu0 %v708_v20 }
  0xb1   :  { %v836_v22 = vld [vmem:[#allocation5 + $0x1560] sm:$0xff]  ;;  %1882 = vmatpush.msra.mxu1 %v772_v21 }
  0xb2   :  { %v904_v23 = vld [vmem:[#allocation5 + $0x1780] sm:$0xff]  ;;  %1902 = vmatpush.msra.mxu2 %v836_v22 }
  0xb3   :  { %v132_v24 = vld [vmem:[#allocation2 + $0x20] sm:$0xff]  ;;  %1921 = vmatpush.msra.mxu3 %v904_v23 }
  0xb4   :  { %v704_v26 = vld [vmem:[#allocation5 + $0x1140] sm:$0xff]  ;;  %1794 = vmatmul.f32.vlgmr.msrb.gmra.mxu0 %v132_v24 }
  0xb5   :  { %v768_v27 = vld [vmem:[#allocation5 + $0x1340] sm:$0xff]  ;;  %1863 = vmatpush.msra.mxu0 %v704_v26 }
  0xb6   :  { %v832_v28 = vld [vmem:[#allocation5 + $0x1540] sm:$0xff]  ;;  %1883 = vmatpush.msra.mxu1 %v768_v27 }
  0xb7   :  { %v900_v29 = vld [vmem:[#allocation5 + $0x1760] sm:$0xff]  ;;  %1903 = vmatpush.msra.mxu2 %v832_v28 }
  0xb8   :  { %v700_v31 = vld [vmem:[#allocation5 + $0x1120] sm:$0xff]  ;;  %1922 = vmatpush.msra.mxu3 %v900_v29 }
  0xb9   :  { %v764_v32 = vld [vmem:[#allocation5 + $0x1320] sm:$0xff]  ;;  %1864 = vmatpush.msra.mxu0 %v700_v31 }
  0xba   :  { %v828_v33 = vld [vmem:[#allocation5 + $0x1520] sm:$0xff]  ;;  %1884 = vmatpush.msra.mxu1 %v764_v32 }
  0xbb   :  { %v896_v34 = vld [vmem:[#allocation5 + $0x1740] sm:$0xff]  ;;  %1904 = vmatpush.msra.mxu2 %v828_v33 }
  0xbc   :  { %v696_v35 = vld [vmem:[#allocation5 + $0x1100] sm:$0xff]  ;;  %1923 = vmatpush.msra.mxu3 %v896_v34 }
  0xbd   :  { %v760_v36 = vld [vmem:[#allocation5 + $0x1300] sm:$0xff]  ;;  %1865 = vmatpush.msra.mxu0 %v696_v35 }
  0xbe   :  { %v824_v37 = vld [vmem:[#allocation5 + $0x1500] sm:$0xff]  ;;  %1885 = vmatpush.msra.mxu1 %v760_v36 }
  0xbf   :  { %v892_v38 = vld [vmem:[#allocation5 + $0x1720] sm:$0xff]  ;;  %1905 = vmatpush.msra.mxu2 %v824_v37 }
  0xc0   :  { %v692_v39 = vld [vmem:[#allocation5 + $0x10e0] sm:$0xff]  ;;  %1924 = vmatpush.msra.mxu3 %v892_v38 }
  0xc1   :  { %v756_v40 = vld [vmem:[#allocation5 + $0x12e0] sm:$0xff]  ;;  %1866 = vmatpush.msra.mxu0 %v692_v39 }
  0xc2   :  { %v820_v41 = vld [vmem:[#allocation5 + $0x14e0] sm:$0xff]  ;;  %1886 = vmatpush.msra.mxu1 %v756_v40 }
  0xc3   :  { %v888_v42 = vld [vmem:[#allocation5 + $0x1700] sm:$0xff]  ;;  %1906 = vmatpush.msra.mxu2 %v820_v41 }
  0xc4   :  { %v688_v43 = vld [vmem:[#allocation5 + $0x10c0] sm:$0xff]  ;;  %1925 = vmatpush.msra.mxu3 %v888_v42 }
  0xc5   :  { %v752_v44 = vld [vmem:[#allocation5 + $0x12c0] sm:$0xff]  ;;  %1867 = vmatpush.msra.mxu0 %v688_v43 }
  0xc6   :  { %v816_v45 = vld [vmem:[#allocation5 + $0x14c0] sm:$0xff]  ;;  %1887 = vmatpush.msra.mxu1 %v752_v44 }
  0xc7   :  { %v884_v46 = vld [vmem:[#allocation5 + $0x16e0] sm:$0xff]  ;;  %1907 = vmatpush.msra.mxu2 %v816_v45 }
  0xc8   :  { %v684_v47 = vld [vmem:[#allocation5 + $0x10a0] sm:$0xff]  ;;  %1926 = vmatpush.msra.mxu3 %v884_v46 }
  0xc9   :  { %v748_v48 = vld [vmem:[#allocation5 + $0x12a0] sm:$0xff]  ;;  %1868 = vmatpush.msra.mxu0 %v684_v47 }
  0xca   :  { %v812_v49 = vld [vmem:[#allocation5 + $0x14a0] sm:$0xff]  ;;  %1888 = vmatpush.msra.mxu1 %v748_v48 }
  0xcb   :  { %v880_v50 = vld [vmem:[#allocation5 + $0x16c0] sm:$0xff]  ;;  %1908 = vmatpush.msra.mxu2 %v812_v49 }
  0xcc   :  { %v680_v51 = vld [vmem:[#allocation5 + $0x1080] sm:$0xff]  ;;  %1927 = vmatpush.msra.mxu3 %v880_v50 }
  0xcd   :  { %v744_v52 = vld [vmem:[#allocation5 + $0x1280] sm:$0xff]  ;;  %1869 = vmatpush.msra.mxu0 %v680_v51 }
  0xce   :  { %v808_v53 = vld [vmem:[#allocation5 + $0x1480] sm:$0xff]  ;;  %1889 = vmatpush.msra.mxu1 %v744_v52 }
  0xcf   :  { %v876_v54 = vld [vmem:[#allocation5 + $0x16a0] sm:$0xff]  ;;  %1909 = vmatpush.msra.mxu2 %v808_v53 }
  0xd0   :  { %v676_v55 = vld [vmem:[#allocation5 + $0x1060] sm:$0xff]  ;;  %1928 = vmatpush.msra.mxu3 %v876_v54 }
  0xd1   :  { %v740_v56 = vld [vmem:[#allocation5 + $0x1260] sm:$0xff]  ;;  %1870 = vmatpush.msra.mxu0 %v676_v55 }
  0xd2   :  { %v804_v57 = vld [vmem:[#allocation5 + $0x1460] sm:$0xff]  ;;  %1890 = vmatpush.msra.mxu1 %v740_v56 }
  0xd3   :  { %v872_v58 = vld [vmem:[#allocation5 + $0x1680] sm:$0xff]  ;;  %1910 = vmatpush.msra.mxu2 %v804_v57 }
  0xd4   :  { %v672_v59 = vld [vmem:[#allocation5 + $0x1040] sm:$0xff]  ;;  %1929 = vmatpush.msra.mxu3 %v872_v58 }
  0xd5   :  { %v736_v60 = vld [vmem:[#allocation5 + $0x1240] sm:$0xff]  ;;  %1871 = vmatpush.msra.mxu0 %v672_v59 }
  0xd6   :  { %v800_v61 = vld [vmem:[#allocation5 + $0x1440] sm:$0xff]  ;;  %1891 = vmatpush.msra.mxu1 %v736_v60 }
  0xd7   :  { %v868_v62 = vld [vmem:[#allocation5 + $0x1660] sm:$0xff]  ;;  %1911 = vmatpush.msra.mxu2 %v800_v61 }
  0xd8   :  { %v668_v63 = vld [vmem:[#allocation5 + $0x1020] sm:$0xff]  ;;  %1930 = vmatpush.msra.mxu3 %v868_v62 }
  0xd9   :  { %v732_v0 = vld [vmem:[#allocation5 + $0x1220] sm:$0xff]  ;;  %1872 = vmatpush.msra.mxu0 %v668_v63 }
  0xda   :  { %v796_v1 = vld [vmem:[#allocation5 + $0x1420] sm:$0xff]  ;;  %1892 = vmatpush.msra.mxu1 %v732_v0 }
  0xdb   :  { %v864_v2 = vld [vmem:[#allocation5 + $0x1640] sm:$0xff]  ;;  %1912 = vmatpush.msra.mxu2 %v796_v1 }
  0xdc   :  { %v664_v3 = vld [vmem:[#allocation5 + $0x1000] sm:$0xff]  ;;  %1931 = vmatpush.msra.mxu3 %v864_v2 }
  0xdd   :  { %v728_v4 = vld [vmem:[#allocation5 + $0x1200] sm:$0xff]  ;;  %1873 = vmatpush.msra.mxu0 %v664_v3 }
  0xde   :  { %v792_v5 = vld [vmem:[#allocation5 + $0x1400] sm:$0xff]  ;;  %1893 = vmatpush.msra.mxu1 %v728_v4 }
  0xdf   :  { %v860_v6 = vld [vmem:[#allocation5 + $0x1620] sm:$0xff]  ;;  %1913 = vmatpush.msra.mxu2 %v792_v5  ;;  %1894 = vmatmul.f32.vlgmr.msra.gmra.mxu1 %v137_v13 }
  0xe0   :  { %v136_v7 = vld [vmem:[#allocation2 + $0x40] sm:$0xff]  ;;  %1932 = vmatpush.msra.mxu3 %v860_v6  ;;  %1914 = vmatmul.f32.vlgmr.msra.gmra.mxu2 %v138_v8 }
  0xe1   :  { %v980_v9 = vld [vmem:[#allocation5 + $0x19e0] sm:$0xff]  ;;  %1874 = vmatmul.f32.vlgmr.msra.gmra.mxu0 %v136_v7 }
  0xe2   :  { %v1044_v10 = vld [vmem:[#allocation5 + $0x1be0] sm:$0xff]  ;;  %1938 = vmatpush.msrb.mxu0 %v980_v9 }
  0xe3   :  { %v1108_v11 = vld [vmem:[#allocation5 + $0x1de0] sm:$0xff]  ;;  %1958 = vmatpush.msrb.mxu1 %v1044_v10 }
  0xe4   :  { %v856_v12 = vld [vmem:[#allocation5 + $0x1600] sm:$0xff]  ;;  %1978 = vmatpush.msrb.mxu2 %v1108_v11 }
  0xe5   :  { %v976_v15 = vld [vmem:[#allocation5 + $0x19c0] sm:$0xff]  ;;  %1933 = vmatpush.msra.mxu3 %v856_v12  ;;  %v142_v12 = vld [vmem:[#allocation2 + $0x70] sm:$0xff] }
  0xe6   :  { %v1040_v16 = vld [vmem:[#allocation5 + $0x1bc0] sm:$0xff]  ;;  %1934 = vmatmul.f32.vlgmr.msra.gmra.mxu3 %v139_v14  ;;  %1939 = vmatpush.msrb.mxu0 %v976_v15 }
  0xe7   :  { %v1104_v17 = vld [vmem:[#allocation5 + $0x1dc0] sm:$0xff]  ;;  %1959 = vmatpush.msrb.mxu1 %v1040_v16 }
  0xe8   :  { %v1172_v18 = vld [vmem:[#allocation5 + $0x1fe0] sm:$0xff]  ;;  %1979 = vmatpush.msrb.mxu2 %v1104_v17  ;;  %v141_v17 = vld [vmem:[#allocation2 + $0x68] sm:$0xff] }
  0xe9   :  { %v972_v19 = vld [vmem:[#allocation5 + $0x19a0] sm:$0xff]  ;;  %1998 = vmatpush.msrb.mxu3 %v1172_v18  ;;  %v143_v18 = vld [vmem:[#allocation2 + $0x78] sm:$0xff] }
  0xea   :  { %v1036_v20 = vld [vmem:[#allocation5 + $0x1ba0] sm:$0xff]  ;;  %1940 = vmatpush.msrb.mxu0 %v972_v19 }
  0xeb   :  { %v1100_v21 = vld [vmem:[#allocation5 + $0x1da0] sm:$0xff]  ;;  %1960 = vmatpush.msrb.mxu1 %v1036_v20 }
  0xec   :  { %v1168_v22 = vld [vmem:[#allocation5 + $0x1fc0] sm:$0xff]  ;;  %1980 = vmatpush.msrb.mxu2 %v1100_v21 }
  0xed   :  { %v968_v23 = vld [vmem:[#allocation5 + $0x1980] sm:$0xff]  ;;  %1999 = vmatpush.msrb.mxu3 %v1168_v22 }
  0xee   :  { %v1032_v24 = vld [vmem:[#allocation5 + $0x1b80] sm:$0xff]  ;;  %1941 = vmatpush.msrb.mxu0 %v968_v23 }
  0xef   :  { %v1096_v25 = vld [vmem:[#allocation5 + $0x1d80] sm:$0xff]  ;;  %1961 = vmatpush.msrb.mxu1 %v1032_v24 }
  0xf0   :  { %v1164_v26 = vld [vmem:[#allocation5 + $0x1fa0] sm:$0xff]  ;;  %1981 = vmatpush.msrb.mxu2 %v1096_v25 }
  0xf1   :  { %v964_v27 = vld [vmem:[#allocation5 + $0x1960] sm:$0xff]  ;;  %2000 = vmatpush.msrb.mxu3 %v1164_v26 }
  0xf2   :  { %v1028_v28 = vld [vmem:[#allocation5 + $0x1b60] sm:$0xff]  ;;  %1942 = vmatpush.msrb.mxu0 %v964_v27 }
  0xf3   :  { %v1092_v29 = vld [vmem:[#allocation5 + $0x1d60] sm:$0xff]  ;;  %1962 = vmatpush.msrb.mxu1 %v1028_v28 }
  0xf4   :  { %v1160_v30 = vld [vmem:[#allocation5 + $0x1f80] sm:$0xff]  ;;  %1982 = vmatpush.msrb.mxu2 %v1092_v29 }
  0xf5   :  { %v960_v31 = vld [vmem:[#allocation5 + $0x1940] sm:$0xff]  ;;  %2001 = vmatpush.msrb.mxu3 %v1160_v30 }
  0xf6   :  { %v1024_v32 = vld [vmem:[#allocation5 + $0x1b40] sm:$0xff]  ;;  %1943 = vmatpush.msrb.mxu0 %v960_v31 }
  0xf7   :  { %v1088_v33 = vld [vmem:[#allocation5 + $0x1d40] sm:$0xff]  ;;  %1963 = vmatpush.msrb.mxu1 %v1024_v32 }
  0xf8   :  { %v1156_v34 = vld [vmem:[#allocation5 + $0x1f60] sm:$0xff]  ;;  %1983 = vmatpush.msrb.mxu2 %v1088_v33 }
  0xf9   :  { %v956_v35 = vld [vmem:[#allocation5 + $0x1920] sm:$0xff]  ;;  %2002 = vmatpush.msrb.mxu3 %v1156_v34 }
  0xfa   :  { %v1020_v36 = vld [vmem:[#allocation5 + $0x1b20] sm:$0xff]  ;;  %1944 = vmatpush.msrb.mxu0 %v956_v35 }
  0xfb   :  { %v1084_v37 = vld [vmem:[#allocation5 + $0x1d20] sm:$0xff]  ;;  %1964 = vmatpush.msrb.mxu1 %v1020_v36 }
  0xfc   :  { %v1152_v38 = vld [vmem:[#allocation5 + $0x1f40] sm:$0xff]  ;;  %1984 = vmatpush.msrb.mxu2 %v1084_v37 }
  0xfd   :  { %v952_v39 = vld [vmem:[#allocation5 + $0x1900] sm:$0xff]  ;;  %2003 = vmatpush.msrb.mxu3 %v1152_v38 }
  0xfe   :  { %v1016_v40 = vld [vmem:[#allocation5 + $0x1b00] sm:$0xff]  ;;  %1945 = vmatpush.msrb.mxu0 %v952_v39 }
  0xff   :  { %v1080_v41 = vld [vmem:[#allocation5 + $0x1d00] sm:$0xff]  ;;  %1965 = vmatpush.msrb.mxu1 %v1016_v40 }
 0x100   :  { %v1148_v42 = vld [vmem:[#allocation5 + $0x1f20] sm:$0xff]  ;;  %1985 = vmatpush.msrb.mxu2 %v1080_v41 }
 0x101   :  { %v948_v43 = vld [vmem:[#allocation5 + $0x18e0] sm:$0xff]  ;;  %2004 = vmatpush.msrb.mxu3 %v1148_v42 }
 0x102   :  { %v1012_v44 = vld [vmem:[#allocation5 + $0x1ae0] sm:$0xff]  ;;  %1946 = vmatpush.msrb.mxu0 %v948_v43 }
 0x103   :  { %v1076_v45 = vld [vmem:[#allocation5 + $0x1ce0] sm:$0xff]  ;;  %1966 = vmatpush.msrb.mxu1 %v1012_v44 }
 0x104   :  { %v1144_v46 = vld [vmem:[#allocation5 + $0x1f00] sm:$0xff]  ;;  %1986 = vmatpush.msrb.mxu2 %v1076_v45 }
 0x105   :  { %v944_v47 = vld [vmem:[#allocation5 + $0x18c0] sm:$0xff]  ;;  %2005 = vmatpush.msrb.mxu3 %v1144_v46 }
 0x106   :  { %v1008_v48 = vld [vmem:[#allocation5 + $0x1ac0] sm:$0xff]  ;;  %1947 = vmatpush.msrb.mxu0 %v944_v47 }
 0x107   :  { %v1072_v49 = vld [vmem:[#allocation5 + $0x1cc0] sm:$0xff]  ;;  %1967 = vmatpush.msrb.mxu1 %v1008_v48 }
 0x108   :  { %v1140_v50 = vld [vmem:[#allocation5 + $0x1ee0] sm:$0xff]  ;;  %1987 = vmatpush.msrb.mxu2 %v1072_v49 }
 0x109   :  { %v940_v51 = vld [vmem:[#allocation5 + $0x18a0] sm:$0xff]  ;;  %2006 = vmatpush.msrb.mxu3 %v1140_v50 }
 0x10a   :  { %v1004_v52 = vld [vmem:[#allocation5 + $0x1aa0] sm:$0xff]  ;;  %1948 = vmatpush.msrb.mxu0 %v940_v51 }
 0x10b   :  { %v1068_v53 = vld [vmem:[#allocation5 + $0x1ca0] sm:$0xff]  ;;  %1968 = vmatpush.msrb.mxu1 %v1004_v52 }
 0x10c   :  { %v1136_v54 = vld [vmem:[#allocation5 + $0x1ec0] sm:$0xff]  ;;  %1988 = vmatpush.msrb.mxu2 %v1068_v53 }
 0x10d   :  { %v936_v55 = vld [vmem:[#allocation5 + $0x1880] sm:$0xff]  ;;  %2007 = vmatpush.msrb.mxu3 %v1136_v54 }
 0x10e   :  { %v1000_v56 = vld [vmem:[#allocation5 + $0x1a80] sm:$0xff]  ;;  %1949 = vmatpush.msrb.mxu0 %v936_v55 }
 0x10f   :  { %v1064_v57 = vld [vmem:[#allocation5 + $0x1c80] sm:$0xff]  ;;  %1969 = vmatpush.msrb.mxu1 %v1000_v56 }
 0x110   :  { %v1132_v58 = vld [vmem:[#allocation5 + $0x1ea0] sm:$0xff]  ;;  %1989 = vmatpush.msrb.mxu2 %v1064_v57 }
 0x111   :  { %v932_v59 = vld [vmem:[#allocation5 + $0x1860] sm:$0xff]  ;;  %2008 = vmatpush.msrb.mxu3 %v1132_v58 }
 0x112   :  { %v996_v60 = vld [vmem:[#allocation5 + $0x1a60] sm:$0xff]  ;;  %1950 = vmatpush.msrb.mxu0 %v932_v59 }
 0x113   :  { %v1060_v61 = vld [vmem:[#allocation5 + $0x1c60] sm:$0xff]  ;;  %1970 = vmatpush.msrb.mxu1 %v996_v60 }
 0x114   :  { %v1128_v62 = vld [vmem:[#allocation5 + $0x1e80] sm:$0xff]  ;;  %1990 = vmatpush.msrb.mxu2 %v1060_v61 }
 0x115   :  { %v928_v63 = vld [vmem:[#allocation5 + $0x1840] sm:$0xff]  ;;  %2009 = vmatpush.msrb.mxu3 %v1128_v62 }
 0x116   :  { %v992_v0 = vld [vmem:[#allocation5 + $0x1a40] sm:$0xff]  ;;  %1951 = vmatpush.msrb.mxu0 %v928_v63 }
 0x117   :  { %v1056_v1 = vld [vmem:[#allocation5 + $0x1c40] sm:$0xff]  ;;  %1971 = vmatpush.msrb.mxu1 %v992_v0 }
 0x118   :  { %v1124_v2 = vld [vmem:[#allocation5 + $0x1e60] sm:$0xff]  ;;  %1991 = vmatpush.msrb.mxu2 %v1056_v1 }
 0x119   :  { %v924_v3 = vld [vmem:[#allocation5 + $0x1820] sm:$0xff]  ;;  %2010 = vmatpush.msrb.mxu3 %v1124_v2 }
 0x11a   :  { %v988_v4 = vld [vmem:[#allocation5 + $0x1a20] sm:$0xff]  ;;  %1952 = vmatpush.msrb.mxu0 %v924_v3 }
 0x11b   :  { %v1052_v5 = vld [vmem:[#allocation5 + $0x1c20] sm:$0xff]  ;;  %1972 = vmatpush.msrb.mxu1 %v988_v4 }
 0x11c   :  { %v1120_v6 = vld [vmem:[#allocation5 + $0x1e40] sm:$0xff]  ;;  %1992 = vmatpush.msrb.mxu2 %v1052_v5 }
 0x11d   :  { %v920_v7 = vld [vmem:[#allocation5 + $0x1800] sm:$0xff]  ;;  %2011 = vmatpush.msrb.mxu3 %v1120_v6 }
 0x11e   :  { %v984_v8 = vld [vmem:[#allocation5 + $0x1a00] sm:$0xff]  ;;  %1953 = vmatpush.msrb.mxu0 %v920_v7 }
 0x11f   :  { %v1048_v9 = vld [vmem:[#allocation5 + $0x1c00] sm:$0xff]  ;;  %1973 = vmatpush.msrb.mxu1 %v984_v8 }
 0x120   :  { %v1116_v10 = vld [vmem:[#allocation5 + $0x1e20] sm:$0xff]  ;;  %1993 = vmatpush.msrb.mxu2 %v1048_v9  ;;  %1974 = vmatmul.f32.vlgmr.msrb.gmra.mxu1 %v141_v17 }
 0x121   :  { %v140_v11 = vld [vmem:[#allocation2 + $0x60] sm:$0xff]  ;;  %2012 = vmatpush.msrb.mxu3 %v1116_v10  ;;  %1994 = vmatmul.f32.vlgmr.msrb.gmra.mxu2 %v142_v12 }
 0x122   :  { %v1236_v13 = vld [vmem:[#allocation5 + $0x21e0] sm:$0xff]  ;;  %1954 = vmatmul.f32.vlgmr.msrb.gmra.mxu0 %v140_v11 }
 0x123   :  { %v1300_v14 = vld [vmem:[#allocation5 + $0x23e0] sm:$0xff]  ;;  %2018 = vmatpush.msra.mxu0 %v1236_v13 }
 0x124   :  { %v1364_v15 = vld [vmem:[#allocation5 + $0x25e0] sm:$0xff]  ;;  %2038 = vmatpush.msra.mxu1 %v1300_v14 }
 0x125   :  { %v1112_v16 = vld [vmem:[#allocation5 + $0x1e00] sm:$0xff]  ;;  %2058 = vmatpush.msra.mxu2 %v1364_v15 }
 0x126   :  { %v1232_v19 = vld [vmem:[#allocation5 + $0x21c0] sm:$0xff]  ;;  %2013 = vmatpush.msrb.mxu3 %v1112_v16  ;;  %v146_v16 = vld [vmem:[#allocation2 + $0x90] sm:$0xff] }
 0x127   :  { %v1296_v20 = vld [vmem:[#allocation5 + $0x23c0] sm:$0xff]  ;;  %2014 = vmatmul.f32.vlgmr.msrb.gmra.mxu3 %v143_v18  ;;  %2019 = vmatpush.msra.mxu0 %v1232_v19 }
 0x128   :  { %v1360_v21 = vld [vmem:[#allocation5 + $0x25c0] sm:$0xff]  ;;  %2039 = vmatpush.msra.mxu1 %v1296_v20 }
 0x129   :  { %v1428_v22 = vld [vmem:[#allocation5 + $0x27e0] sm:$0xff]  ;;  %2059 = vmatpush.msra.mxu2 %v1360_v21  ;;  %v145_v21 = vld [vmem:[#allocation2 + $0x88] sm:$0xff] }
 0x12a   :  { %v1228_v23 = vld [vmem:[#allocation5 + $0x21a0] sm:$0xff]  ;;  %2078 = vmatpush.msra.mxu3 %v1428_v22  ;;  %v147_v22 = vld [vmem:[#allocation2 + $0x98] sm:$0xff] }
 0x12b   :  { %v1292_v24 = vld [vmem:[#allocation5 + $0x23a0] sm:$0xff]  ;;  %2020 = vmatpush.msra.mxu0 %v1228_v23 }
 0x12c   :  { %v1356_v25 = vld [vmem:[#allocation5 + $0x25a0] sm:$0xff]  ;;  %2040 = vmatpush.msra.mxu1 %v1292_v24 }
 0x12d   :  { %v1424_v26 = vld [vmem:[#allocation5 + $0x27c0] sm:$0xff]  ;;  %2060 = vmatpush.msra.mxu2 %v1356_v25 }
 0x12e   :  { %v1224_v27 = vld [vmem:[#allocation5 + $0x2180] sm:$0xff]  ;;  %2079 = vmatpush.msra.mxu3 %v1424_v26 }
 0x12f   :  { %v1288_v28 = vld [vmem:[#allocation5 + $0x2380] sm:$0xff]  ;;  %2021 = vmatpush.msra.mxu0 %v1224_v27 }
 0x130   :  { %v1352_v29 = vld [vmem:[#allocation5 + $0x2580] sm:$0xff]  ;;  %2041 = vmatpush.msra.mxu1 %v1288_v28 }
 0x131   :  { %v1420_v30 = vld [vmem:[#allocation5 + $0x27a0] sm:$0xff]  ;;  %2061 = vmatpush.msra.mxu2 %v1352_v29 }
 0x132   :  { %v1220_v31 = vld [vmem:[#allocation5 + $0x2160] sm:$0xff]  ;;  %2080 = vmatpush.msra.mxu3 %v1420_v30 }
 0x133   :  { %v1284_v32 = vld [vmem:[#allocation5 + $0x2360] sm:$0xff]  ;;  %2022 = vmatpush.msra.mxu0 %v1220_v31 }
 0x134   :  { %v1348_v33 = vld [vmem:[#allocation5 + $0x2560] sm:$0xff]  ;;  %2042 = vmatpush.msra.mxu1 %v1284_v32 }
 0x135   :  { %v1416_v34 = vld [vmem:[#allocation5 + $0x2780] sm:$0xff]  ;;  %2062 = vmatpush.msra.mxu2 %v1348_v33 }
 0x136   :  { %v1216_v35 = vld [vmem:[#allocation5 + $0x2140] sm:$0xff]  ;;  %2081 = vmatpush.msra.mxu3 %v1416_v34 }
 0x137   :  { %v1280_v36 = vld [vmem:[#allocation5 + $0x2340] sm:$0xff]  ;;  %2023 = vmatpush.msra.mxu0 %v1216_v35 }
 0x138   :  { %v1344_v37 = vld [vmem:[#allocation5 + $0x2540] sm:$0xff]  ;;  %2043 = vmatpush.msra.mxu1 %v1280_v36 }
 0x139   :  { %v1412_v38 = vld [vmem:[#allocation5 + $0x2760] sm:$0xff]  ;;  %2063 = vmatpush.msra.mxu2 %v1344_v37 }
 0x13a   :  { %v1212_v39 = vld [vmem:[#allocation5 + $0x2120] sm:$0xff]  ;;  %2082 = vmatpush.msra.mxu3 %v1412_v38 }
 0x13b   :  { %v1276_v40 = vld [vmem:[#allocation5 + $0x2320] sm:$0xff]  ;;  %2024 = vmatpush.msra.mxu0 %v1212_v39 }
 0x13c   :  { %v1340_v41 = vld [vmem:[#allocation5 + $0x2520] sm:$0xff]  ;;  %2044 = vmatpush.msra.mxu1 %v1276_v40 }
 0x13d   :  { %v1408_v42 = vld [vmem:[#allocation5 + $0x2740] sm:$0xff]  ;;  %2064 = vmatpush.msra.mxu2 %v1340_v41 }
 0x13e   :  { %v1208_v43 = vld [vmem:[#allocation5 + $0x2100] sm:$0xff]  ;;  %2083 = vmatpush.msra.mxu3 %v1408_v42 }
 0x13f   :  { %v1272_v44 = vld [vmem:[#allocation5 + $0x2300] sm:$0xff]  ;;  %2025 = vmatpush.msra.mxu0 %v1208_v43 }
 0x140   :  { %v1336_v45 = vld [vmem:[#allocation5 + $0x2500] sm:$0xff]  ;;  %2045 = vmatpush.msra.mxu1 %v1272_v44 }
 0x141   :  { %v1404_v46 = vld [vmem:[#allocation5 + $0x2720] sm:$0xff]  ;;  %2065 = vmatpush.msra.mxu2 %v1336_v45 }
 0x142   :  { %v1204_v47 = vld [vmem:[#allocation5 + $0x20e0] sm:$0xff]  ;;  %2084 = vmatpush.msra.mxu3 %v1404_v46 }
 0x143   :  { %v1268_v48 = vld [vmem:[#allocation5 + $0x22e0] sm:$0xff]  ;;  %2026 = vmatpush.msra.mxu0 %v1204_v47 }
 0x144   :  { %v1332_v49 = vld [vmem:[#allocation5 + $0x24e0] sm:$0xff]  ;;  %2046 = vmatpush.msra.mxu1 %v1268_v48 }
 0x145   :  { %v1400_v50 = vld [vmem:[#allocation5 + $0x2700] sm:$0xff]  ;;  %2066 = vmatpush.msra.mxu2 %v1332_v49 }
 0x146   :  { %v1200_v51 = vld [vmem:[#allocation5 + $0x20c0] sm:$0xff]  ;;  %2085 = vmatpush.msra.mxu3 %v1400_v50 }
 0x147   :  { %v1264_v52 = vld [vmem:[#allocation5 + $0x22c0] sm:$0xff]  ;;  %2027 = vmatpush.msra.mxu0 %v1200_v51 }
 0x148   :  { %v1328_v53 = vld [vmem:[#allocation5 + $0x24c0] sm:$0xff]  ;;  %2047 = vmatpush.msra.mxu1 %v1264_v52 }
 0x149   :  { %v1396_v54 = vld [vmem:[#allocation5 + $0x26e0] sm:$0xff]  ;;  %2067 = vmatpush.msra.mxu2 %v1328_v53 }
 0x14a   :  { %v1196_v55 = vld [vmem:[#allocation5 + $0x20a0] sm:$0xff]  ;;  %2086 = vmatpush.msra.mxu3 %v1396_v54 }
 0x14b   :  { %v1260_v56 = vld [vmem:[#allocation5 + $0x22a0] sm:$0xff]  ;;  %2028 = vmatpush.msra.mxu0 %v1196_v55 }
 0x14c   :  { %v1324_v57 = vld [vmem:[#allocation5 + $0x24a0] sm:$0xff]  ;;  %2048 = vmatpush.msra.mxu1 %v1260_v56 }
 0x14d   :  { %v1392_v58 = vld [vmem:[#allocation5 + $0x26c0] sm:$0xff]  ;;  %2068 = vmatpush.msra.mxu2 %v1324_v57 }
 0x14e   :  { %v1192_v59 = vld [vmem:[#allocation5 + $0x2080] sm:$0xff]  ;;  %2087 = vmatpush.msra.mxu3 %v1392_v58 }
 0x14f   :  { %v1256_v60 = vld [vmem:[#allocation5 + $0x2280] sm:$0xff]  ;;  %2029 = vmatpush.msra.mxu0 %v1192_v59 }
 0x150   :  { %v1320_v61 = vld [vmem:[#allocation5 + $0x2480] sm:$0xff]  ;;  %2049 = vmatpush.msra.mxu1 %v1256_v60 }
 0x151   :  { %v1388_v62 = vld [vmem:[#allocation5 + $0x26a0] sm:$0xff]  ;;  %2069 = vmatpush.msra.mxu2 %v1320_v61 }
 0x152   :  { %v1188_v63 = vld [vmem:[#allocation5 + $0x2060] sm:$0xff]  ;;  %2088 = vmatpush.msra.mxu3 %v1388_v62 }
 0x153   :  { %v1252_v0 = vld [vmem:[#allocation5 + $0x2260] sm:$0xff]  ;;  %2030 = vmatpush.msra.mxu0 %v1188_v63 }
 0x154   :  { %v1316_v1 = vld [vmem:[#allocation5 + $0x2460] sm:$0xff]  ;;  %2050 = vmatpush.msra.mxu1 %v1252_v0 }
 0x155   :  { %v1384_v2 = vld [vmem:[#allocation5 + $0x2680] sm:$0xff]  ;;  %2070 = vmatpush.msra.mxu2 %v1316_v1 }
 0x156   :  { %v1184_v3 = vld [vmem:[#allocation5 + $0x2040] sm:$0xff]  ;;  %2089 = vmatpush.msra.mxu3 %v1384_v2 }
 0x157   :  { %v1248_v4 = vld [vmem:[#allocation5 + $0x2240] sm:$0xff]  ;;  %2031 = vmatpush.msra.mxu0 %v1184_v3  ;;  %v1715_v3 = vpop.f32.mrf.mxu0 }
 0x158   :  { %v1312_v5 = vld [vmem:[#allocation5 + $0x2440] sm:$0xff]  ;;  %2051 = vmatpush.msra.mxu1 %v1248_v4 }
 0x159   :  { %v1380_v6 = vld [vmem:[#allocation5 + $0x2660] sm:$0xff]  ;;  %2071 = vmatpush.msra.mxu2 %v1312_v5 }
 0x15a   :  { %v1180_v7 = vld [vmem:[#allocation5 + $0x2020] sm:$0xff]  ;;  %2090 = vmatpush.msra.mxu3 %v1380_v6 }
 0x15b   :  { %v1244_v8 = vld [vmem:[#allocation5 + $0x2220] sm:$0xff]  ;;  %2032 = vmatpush.msra.mxu0 %v1180_v7  ;;  %v1735_v7 = vpop.f32.mrf.mxu1 }
 0x15c   :  { %v1308_v9 = vld [vmem:[#allocation5 + $0x2420] sm:$0xff]  ;;  %2052 = vmatpush.msra.mxu1 %v1244_v8 }
 0x15d   :  { %v1376_v10 = vld [vmem:[#allocation5 + $0x2640] sm:$0xff]  ;;  %2072 = vmatpush.msra.mxu2 %v1308_v9 }
 0x15e   :  { %v1176_v11 = vld [vmem:[#allocation5 + $0x2000] sm:$0xff]  ;;  %2091 = vmatpush.msra.mxu3 %v1376_v10 }
 0x15f   :  { %v1240_v12 = vld [vmem:[#allocation5 + $0x2200] sm:$0xff]  ;;  %2033 = vmatpush.msra.mxu0 %v1176_v11 }
 0x160   :  { %v1304_v13 = vld [vmem:[#allocation5 + $0x2400] sm:$0xff]  ;;  %2053 = vmatpush.msra.mxu1 %v1240_v12 }
 0x161   :  { %v1372_v14 = vld [vmem:[#allocation5 + $0x2620] sm:$0xff]  ;;  %2073 = vmatpush.msra.mxu2 %v1304_v13  ;;  %2054 = vmatmul.f32.vlgmr.msra.gmra.mxu1 %v145_v21  ;;  %v1755_v21 = vpop.f32.mrf.mxu2 }
 0x162   :  { %v144_v15 = vld [vmem:[#allocation2 + $0x80] sm:$0xff]  ;;  %2092 = vmatpush.msra.mxu3 %v1372_v14  ;;  %2074 = vmatmul.f32.vlgmr.msra.gmra.mxu2 %v146_v16 }
 0x163   :  { %v1492_v17 = vld [vmem:[#allocation5 + $0x29e0] sm:$0xff]  ;;  %2034 = vmatmul.f32.vlgmr.msra.gmra.mxu0 %v144_v15 }
 0x164   :  { %v1556_v18 = vld [vmem:[#allocation5 + $0x2be0] sm:$0xff]  ;;  %2098 = vmatpush.msrb.mxu0 %v1492_v17 }
 0x165   :  { %v1620_v19 = vld [vmem:[#allocation5 + $0x2de0] sm:$0xff]  ;;  %2118 = vmatpush.msrb.mxu1 %v1556_v18 }
 0x166   :  { %v1368_v20 = vld [vmem:[#allocation5 + $0x2600] sm:$0xff]  ;;  %2138 = vmatpush.msrb.mxu2 %v1620_v19 }
 0x167   :  { %v1488_v23 = vld [vmem:[#allocation5 + $0x29c0] sm:$0xff]  ;;  %2093 = vmatpush.msra.mxu3 %v1368_v20 }
 0x168   :  { %v1552_v24 = vld [vmem:[#allocation5 + $0x2bc0] sm:$0xff]  ;;  %2094 = vmatmul.f32.vlgmr.msra.gmra.mxu3 %v147_v22  ;;  %2099 = vmatpush.msrb.mxu0 %v1488_v23 }
 0x169   :  { %v1616_v25 = vld [vmem:[#allocation5 + $0x2dc0] sm:$0xff]  ;;  %2119 = vmatpush.msrb.mxu1 %v1552_v24 }
 0x16a   :  { %v1684_v26 = vld [vmem:[#allocation5 + $0x2fe0] sm:$0xff]  ;;  %2139 = vmatpush.msrb.mxu2 %v1616_v25 }
 0x16b   :  { %v1484_v27 = vld [vmem:[#allocation5 + $0x29a0] sm:$0xff]  ;;  %2158 = vmatpush.msrb.mxu3 %v1684_v26 }
 0x16c   :  { %v1548_v28 = vld [vmem:[#allocation5 + $0x2ba0] sm:$0xff]  ;;  %2100 = vmatpush.msrb.mxu0 %v1484_v27 }
 0x16d   :  { %v1612_v29 = vld [vmem:[#allocation5 + $0x2da0] sm:$0xff]  ;;  %2120 = vmatpush.msrb.mxu1 %v1548_v28  ;;  %v150_v28 = vld [vmem:[#allocation2 + $0xb0] sm:$0xff] }
 0x16e   :  { %v1680_v30 = vld [vmem:[#allocation5 + $0x2fc0] sm:$0xff]  ;;  %2140 = vmatpush.msrb.mxu2 %v1612_v29  ;;  %v1775_v29 = vpop.f32.mrf.mxu3 }
 0x16f   :  { %v1480_v31 = vld [vmem:[#allocation5 + $0x2980] sm:$0xff]  ;;  %2159 = vmatpush.msrb.mxu3 %v1680_v30  ;;  %v213_v30 = vld [vmem:[#allocation5 + $0x1e8] sm:$0xff] }
 0x170   :  { %v1544_v32 = vld [vmem:[#allocation5 + $0x2b80] sm:$0xff]  ;;  %2101 = vmatpush.msrb.mxu0 %v1480_v31  ;;  %v277_v31 = vld [vmem:[#allocation5 + $0x3e8] sm:$0xff] }
 0x171   :  { %v1608_v33 = vld [vmem:[#allocation5 + $0x2d80] sm:$0xff]  ;;  %2121 = vmatpush.msrb.mxu1 %v1544_v32 }
 0x172   :  { %v1676_v34 = vld [vmem:[#allocation5 + $0x2fa0] sm:$0xff]  ;;  %2141 = vmatpush.msrb.mxu2 %v1608_v33  ;;  %v341_v33 = vld [vmem:[#allocation5 + $0x5e8] sm:$0xff] }
 0x173   :  { %v1476_v35 = vld [vmem:[#allocation5 + $0x2960] sm:$0xff]  ;;  %2160 = vmatpush.msrb.mxu3 %v1676_v34 }
 0x174   :  { %v1540_v36 = vld [vmem:[#allocation5 + $0x2b60] sm:$0xff]  ;;  %2102 = vmatpush.msrb.mxu0 %v1476_v35  ;;  %v1795_v35 = vpop.f32.mrf.mxu0 }
 0x175   :  { %v1604_v37 = vld [vmem:[#allocation5 + $0x2d60] sm:$0xff]  ;;  %2122 = vmatpush.msrb.mxu1 %v1540_v36  ;;  %v149_v36 = vld [vmem:[#allocation2 + $0xa8] sm:$0xff] }
 0x176   :  { %v1672_v38 = vld [vmem:[#allocation5 + $0x2f80] sm:$0xff]  ;;  %2142 = vmatpush.msrb.mxu2 %v1604_v37  ;;  %v151_v37 = vld [vmem:[#allocation2 + $0xb8] sm:$0xff] }
 0x177   :  { %v1472_v39 = vld [vmem:[#allocation5 + $0x2940] sm:$0xff]  ;;  %2161 = vmatpush.msrb.mxu3 %v1672_v38 }
 0x178   :  { %v1536_v40 = vld [vmem:[#allocation5 + $0x2b40] sm:$0xff]  ;;  %2103 = vmatpush.msrb.mxu0 %v1472_v39  ;;  %v209_v39 = vld [vmem:[#allocation5 + $0x1c8] sm:$0xff] }
 0x179   :  { %v1600_v41 = vld [vmem:[#allocation5 + $0x2d40] sm:$0xff]  ;;  %2123 = vmatpush.msrb.mxu1 %v1536_v40  ;;  %v273_v40 = vld [vmem:[#allocation5 + $0x3c8] sm:$0xff] }
 0x17a   :  { %v1668_v42 = vld [vmem:[#allocation5 + $0x2f60] sm:$0xff]  ;;  %2143 = vmatpush.msrb.mxu2 %v1600_v41  ;;  %v337_v41 = vld [vmem:[#allocation5 + $0x5c8] sm:$0xff] }
 0x17b   :  { %v1468_v43 = vld [vmem:[#allocation5 + $0x2920] sm:$0xff]  ;;  %2162 = vmatpush.msrb.mxu3 %v1668_v42  ;;  %v405_v42 = vld [vmem:[#allocation5 + $0x7e8] sm:$0xff] }
 0x17c   :  { %v1532_v44 = vld [vmem:[#allocation5 + $0x2b20] sm:$0xff]  ;;  %2104 = vmatpush.msrb.mxu0 %v1468_v43  ;;  %v1815_v43 = vpop.f32.mrf.mxu1 }
 0x17d   :  { %v1596_v45 = vld [vmem:[#allocation5 + $0x2d20] sm:$0xff]  ;;  %2124 = vmatpush.msrb.mxu1 %v1532_v44  ;;  %v205_v44 = vld [vmem:[#allocation5 + $0x1a8] sm:$0xff] }
 0x17e   :  { %v1664_v46 = vld [vmem:[#allocation5 + $0x2f40] sm:$0xff]  ;;  %2144 = vmatpush.msrb.mxu2 %v1596_v45  ;;  %v269_v45 = vld [vmem:[#allocation5 + $0x3a8] sm:$0xff] }
 0x17f   :  { %v1464_v47 = vld [vmem:[#allocation5 + $0x2900] sm:$0xff]  ;;  %2163 = vmatpush.msrb.mxu3 %v1664_v46 }
 0x180   :  { %v1528_v48 = vld [vmem:[#allocation5 + $0x2b00] sm:$0xff]  ;;  %2105 = vmatpush.msrb.mxu0 %v1464_v47  ;;  %v1835_v47 = vpop.f32.mrf.mxu2 }
 0x181   :  { %v1592_v49 = vld [vmem:[#allocation5 + $0x2d00] sm:$0xff]  ;;  %2125 = vmatpush.msrb.mxu1 %v1528_v48  ;;  %v333_v48 = vld [vmem:[#allocation5 + $0x5a8] sm:$0xff] }
 0x182   :  { %v1660_v50 = vld [vmem:[#allocation5 + $0x2f20] sm:$0xff]  ;;  %2145 = vmatpush.msrb.mxu2 %v1592_v49  ;;  %v401_v49 = vld [vmem:[#allocation5 + $0x7c8] sm:$0xff] }
 0x183   :  { %v1460_v51 = vld [vmem:[#allocation5 + $0x28e0] sm:$0xff]  ;;  %2164 = vmatpush.msrb.mxu3 %v1660_v50  ;;  %v201_v50 = vld [vmem:[#allocation5 + $0x188] sm:$0xff] }
 0x184   :  { %v1524_v52 = vld [vmem:[#allocation5 + $0x2ae0] sm:$0xff]  ;;  %2106 = vmatpush.msrb.mxu0 %v1460_v51  ;;  %v265_v51 = vld [vmem:[#allocation5 + $0x388] sm:$0xff] }
 0x185   :  { %v1688_v53 = vld [vmem:[#allocation7] sm:$0xf]  ;;  %2126 = vmatpush.msrb.mxu1 %v1524_v52 }
 0x186   :  { %v1588_v54 = vld [vmem:[#allocation5 + $0x2ce0] sm:$0xff]  ;;  %v1690_v60 = vperm.slane %v1688_v53, 0  ;;  %v329_v53 = vld [vmem:[#allocation5 + $0x588] sm:$0xff] }
 0x187   :  { %v1656_v55 = vld [vmem:[#allocation5 + $0x2f00] sm:$0xff]  ;;  %2146 = vmatpush.msrb.mxu2 %v1588_v54  ;;  %v397_v54 = vld [vmem:[#allocation5 + $0x7a8] sm:$0xff] }
 0x188   :  { %v1456_v56 = vld [vmem:[#allocation5 + $0x28c0] sm:$0xff]  ;;  %2165 = vmatpush.msrb.mxu3 %v1656_v55  ;;  %v1716_v6 = vadd.f32 %v1715_v3, %v1690_v60  ;;  %v1855_v55 = vpop.f32.mrf.mxu3  ;;  %v393_v60 = vld [vmem:[#allocation5 + $0x788] sm:$0xff] }
 0x189   :  { %v1520_v57 = vld [vmem:[#allocation5 + $0x2ac0] sm:$0xff]  ;;  %2107 = vmatpush.msrb.mxu0 %v1456_v56  ;;  %v197_v56 = vld [vmem:[#allocation5 + $0x168] sm:$0xff] }
 0x18a   :  { %v1584_v58 = vld [vmem:[#allocation5 + $0x2cc0] sm:$0xff]  ;;  %2127 = vmatpush.msrb.mxu1 %v1520_v57  ;;  %v1736_v14 = vadd.f32 %v1735_v7, %v1716_v6  ;;  %v261_v57 = vld [vmem:[#allocation5 + $0x368] sm:$0xff] }
 0x18b   :  { %v1652_v59 = vld [vmem:[#allocation5 + $0x2ee0] sm:$0xff]  ;;  %2147 = vmatpush.msrb.mxu2 %v1584_v58  ;;  %v317_v3 = vld [vmem:[#allocation5 + $0x528] sm:$0xff] }
 0x18c   :  { %v1452_v61 = vld [vmem:[#allocation5 + $0x28a0] sm:$0xff]  ;;  %2166 = vmatpush.msrb.mxu3 %v1652_v59  ;;  %v1756_v24 = vadd.f32 %v1755_v21, %v1736_v14  ;;  %v325_v59 = vld [vmem:[#allocation5 + $0x568] sm:$0xff] }
 0x18d   :  { %v1516_v62 = vld [vmem:[#allocation5 + $0x2aa0] sm:$0xff]  ;;  %2108 = vmatpush.msrb.mxu0 %v1452_v61  ;;  %v193_v61 = vld [vmem:[#allocation5 + $0x148] sm:$0xff] }
 0x18e   :  { %v1580_v63 = vld [vmem:[#allocation5 + $0x2ca0] sm:$0xff]  ;;  %2128 = vmatpush.msrb.mxu1 %v1516_v62  ;;  %v1776_v32 = vadd.f32 %v1775_v29, %v1756_v24  ;;  %v257_v62 = vld [vmem:[#allocation5 + $0x348] sm:$0xff] }
 0x18f   :  { %v1648_v0 = vld [vmem:[#allocation5 + $0x2ec0] sm:$0xff]  ;;  %2148 = vmatpush.msrb.mxu2 %v1580_v63  ;;  %v321_v63 = vld [vmem:[#allocation5 + $0x548] sm:$0xff] }
 0x190   :  { %v1448_v1 = vld [vmem:[#allocation5 + $0x2880] sm:$0xff]  ;;  %2167 = vmatpush.msrb.mxu3 %v1648_v0  ;;  %v1796_v38 = vadd.f32 %v1795_v35, %v1776_v32  ;;  %v389_v0 = vld [vmem:[#allocation5 + $0x768] sm:$0xff]  ;;  %v1895_v35 = vpop.f32.mrf.mxu1 }
 0x191   :  { %v1512_v2 = vld [vmem:[#allocation5 + $0x2a80] sm:$0xff]  ;;  %2109 = vmatpush.msrb.mxu0 %v1448_v1  ;;  %v189_v1 = vld [vmem:[#allocation5 + $0x128] sm:$0xff] }
 0x192   :  { %v1576_v4 = vld [vmem:[#allocation5 + $0x2c80] sm:$0xff]  ;;  %2129 = vmatpush.msrb.mxu1 %v1512_v2  ;;  %v1816_v46 = vadd.f32 %v1815_v43, %v1796_v38  ;;  %v253_v2 = vld [vmem:[#allocation5 + $0x328] sm:$0xff]  ;;  %v1915_v43 = vpop.f32.mrf.mxu2 }
 0x193   :  { %v1644_v5 = vld [vmem:[#allocation5 + $0x2ea0] sm:$0xff]  ;;  %2149 = vmatpush.msrb.mxu2 %v1576_v4  ;;  %v385_v4 = vld [vmem:[#allocation5 + $0x748] sm:$0xff] }
 0x194   :  { %v1444_v8 = vld [vmem:[#allocation5 + $0x2860] sm:$0xff]  ;;  %2168 = vmatpush.msrb.mxu3 %v1644_v5  ;;  %v1836_v52 = vadd.f32 %v1835_v47, %v1816_v46  ;;  %v185_v5 = vld [vmem:[#allocation5 + $0x108] sm:$0xff] }
 0x195   :  { %v1508_v9 = vld [vmem:[#allocation5 + $0x2a60] sm:$0xff]  ;;  %2110 = vmatpush.msrb.mxu0 %v1444_v8  ;;  %v249_v6 = vld [vmem:[#allocation5 + $0x308] sm:$0xff] }
 0x196   :  { %v1572_v10 = vld [vmem:[#allocation5 + $0x2c60] sm:$0xff]  ;;  %2130 = vmatpush.msrb.mxu1 %v1508_v9  ;;  %v4194_v58 = vadd.f32 %v1855_v55, %v1836_v52  ;;  %v313_v7 = vld [vmem:[#allocation5 + $0x508] sm:$0xff] }
 0x197   :  { %v1640_v11 = vld [vmem:[#allocation5 + $0x2e80] sm:$0xff]  ;;  %2150 = vmatpush.msrb.mxu2 %v1572_v10  ;;  %v381_v8 = vld [vmem:[#allocation5 + $0x728] sm:$0xff] }
 0x198   :  { %v1440_v12 = vld [vmem:[#allocation5 + $0x2840] sm:$0xff]  ;;  %2169 = vmatpush.msrb.mxu3 %v1640_v11  ;;  %v181_v9 = vld [vmem:[#allocation5 + $0xe8] sm:$0xff] }
 0x199   :  { %v1504_v13 = vld [vmem:[#allocation5 + $0x2a40] sm:$0xff]  ;;  %2111 = vmatpush.msrb.mxu0 %v1440_v12  ;;  %v245_v10 = vld [vmem:[#allocation5 + $0x2e8] sm:$0xff] }
 0x19a   :  { %v1568_v15 = vld [vmem:[#allocation5 + $0x2c40] sm:$0xff]  ;;  %2131 = vmatpush.msrb.mxu1 %v1504_v13  ;;  %v309_v11 = vld [vmem:[#allocation5 + $0x4e8] sm:$0xff] }
 0x19b   :  { %v1636_v16 = vld [vmem:[#allocation5 + $0x2e60] sm:$0xff]  ;;  %2151 = vmatpush.msrb.mxu2 %v1568_v15  ;;  %v377_v12 = vld [vmem:[#allocation5 + $0x708] sm:$0xff] }
 0x19c   :  { %v1436_v17 = vld [vmem:[#allocation5 + $0x2820] sm:$0xff]  ;;  %2170 = vmatpush.msrb.mxu3 %v1636_v16  ;;  %v177_v13 = vld [vmem:[#allocation5 + $0xc8] sm:$0xff] }
 0x19d   :  { %v1500_v18 = vld [vmem:[#allocation5 + $0x2a20] sm:$0xff]  ;;  %2112 = vmatpush.msrb.mxu0 %v1436_v17  ;;  %v241_v14 = vld [vmem:[#allocation5 + $0x2c8] sm:$0xff] }
 0x19e   :  { %v1564_v19 = vld [vmem:[#allocation5 + $0x2c20] sm:$0xff]  ;;  %2132 = vmatpush.msrb.mxu1 %v1500_v18  ;;  %v305_v15 = vld [vmem:[#allocation5 + $0x4c8] sm:$0xff] }
 0x19f   :  { %v1632_v20 = vld [vmem:[#allocation5 + $0x2e40] sm:$0xff]  ;;  %2152 = vmatpush.msrb.mxu2 %v1564_v19  ;;  %v373_v16 = vld [vmem:[#allocation5 + $0x6e8] sm:$0xff] }
 0x1a0   :  { %v1432_v22 = vld [vmem:[#allocation5 + $0x2800] sm:$0xff]  ;;  %2171 = vmatpush.msrb.mxu3 %v1632_v20  ;;  %v173_v17 = vld [vmem:[#allocation5 + $0xa8] sm:$0xff] }
 0x1a1   :  { %v1496_v23 = vld [vmem:[#allocation5 + $0x2a00] sm:$0xff]  ;;  %2113 = vmatpush.msrb.mxu0 %v1432_v22  ;;  %v237_v18 = vld [vmem:[#allocation5 + $0x2a8] sm:$0xff] }
 0x1a2   :  { %v1560_v25 = vld [vmem:[#allocation5 + $0x2c00] sm:$0xff]  ;;  %2133 = vmatpush.msrb.mxu1 %v1496_v23  ;;  %v301_v19 = vld [vmem:[#allocation5 + $0x4a8] sm:$0xff] }
 0x1a3   :  { %v1628_v26 = vld [vmem:[#allocation5 + $0x2e20] sm:$0xff]  ;;  %2153 = vmatpush.msrb.mxu2 %v1560_v25  ;;  %2178 = vmatpush.msra.mxu0 %v213_v30  ;;  %v369_v20 = vld [vmem:[#allocation5 + $0x6c8] sm:$0xff] }
 0x1a4   :  { %v148_v27 = vld [vmem:[#allocation2 + $0xa0] sm:$0xff]  ;;  %2172 = vmatpush.msrb.mxu3 %v1628_v26  ;;  %2154 = vmatmul.f32.vlgmr.msrb.gmra.mxu2 %v150_v28  ;;  %v169_v21 = vld [vmem:[#allocation5 + $0x88] sm:$0xff] }
 0x1a5   :  { %v1624_v34 = vld [vmem:[#allocation5 + $0x2e00] sm:$0xff]  ;;  %2114 = vmatmul.f32.vlgmr.msrb.gmra.mxu0 %v148_v27  ;;  %2198 = vmatpush.msra.mxu1 %v277_v31  ;;  %v233_v22 = vld [vmem:[#allocation5 + $0x288] sm:$0xff]  ;;  %v1875_v27 = vpop.f32.mrf.mxu0 }
 0x1a6   :  { %2218 = vmatpush.msra.mxu2 %v341_v33  ;;  %2173 = vmatpush.msrb.mxu3 %v1624_v34  ;;  %v297_v23 = vld [vmem:[#allocation5 + $0x488] sm:$0xff]  ;;  %v1876_v30 = vadd.f32 %v1875_v27, %v4194_v58 }
 0x1a7   :  { %2134 = vmatmul.f32.vlgmr.msrb.gmra.mxu1 %v149_v36  ;;  %2174 = vmatmul.f32.vlgmr.msrb.gmra.mxu3 %v151_v37  ;;  %v365_v24 = vld [vmem:[#allocation5 + $0x6a8] sm:$0xff] }
 0x1a8   :  { %2179 = vmatpush.msra.mxu0 %v209_v39  ;;  %2199 = vmatpush.msra.mxu1 %v273_v40  ;;  %v165_v25 = vld [vmem:[#allocation5 + $0x68] sm:$0xff]  ;;  %v1896_v38 = vadd.f32 %v1895_v35, %v1876_v30 }
 0x1a9   :  { %2219 = vmatpush.msra.mxu2 %v337_v41  ;;  %2238 = vmatpush.msra.mxu3 %v405_v42  ;;  %v229_v26 = vld [vmem:[#allocation5 + $0x268] sm:$0xff] }
 0x1aa   :  { %2180 = vmatpush.msra.mxu0 %v205_v44  ;;  %2200 = vmatpush.msra.mxu1 %v269_v45  ;;  %v293_v28 = vld [vmem:[#allocation5 + $0x468] sm:$0xff]  ;;  %v1916_v46 = vadd.f32 %v1915_v43, %v1896_v38 }
 0x1ab   :  { %2220 = vmatpush.msra.mxu2 %v333_v48  ;;  %2239 = vmatpush.msra.mxu3 %v401_v49  ;;  %v361_v29 = vld [vmem:[#allocation5 + $0x688] sm:$0xff] }
 0x1ac   :  { %2181 = vmatpush.msra.mxu0 %v201_v50  ;;  %2201 = vmatpush.msra.mxu1 %v265_v51  ;;  %v161_v31 = vld [vmem:[#allocation5 + $0x48] sm:$0xff]  ;;  %v1935_v51 = vpop.f32.mrf.mxu3 }
 0x1ad   :  { %2221 = vmatpush.msra.mxu2 %v329_v53  ;;  %2240 = vmatpush.msra.mxu3 %v397_v54  ;;  %v225_v32 = vld [vmem:[#allocation5 + $0x248] sm:$0xff]  ;;  %v4197_v54 = vadd.f32 %v1935_v51, %v1916_v46 }
 0x1ae   :  { %2182 = vmatpush.msra.mxu0 %v197_v56  ;;  %2202 = vmatpush.msra.mxu1 %v261_v57  ;;  %v289_v33 = vld [vmem:[#allocation5 + $0x448] sm:$0xff] }
 0x1af   :  { %2222 = vmatpush.msra.mxu2 %v325_v59  ;;  %2241 = vmatpush.msra.mxu3 %v393_v60  ;;  %v357_v34 = vld [vmem:[#allocation5 + $0x668] sm:$0xff] }
 0x1b0   :  { %2183 = vmatpush.msra.mxu0 %v193_v61  ;;  %2203 = vmatpush.msra.mxu1 %v257_v62  ;;  %v157_v36 = vld [vmem:[#allocation5 + $0x28] sm:$0xff] }
 0x1b1   :  { %2223 = vmatpush.msra.mxu2 %v321_v63  ;;  %2242 = vmatpush.msra.mxu3 %v389_v0  ;;  %v221_v37 = vld [vmem:[#allocation5 + $0x228] sm:$0xff] }
 0x1b2   :  { %2184 = vmatpush.msra.mxu0 %v189_v1  ;;  %2204 = vmatpush.msra.mxu1 %v253_v2  ;;  %v285_v39 = vld [vmem:[#allocation5 + $0x428] sm:$0xff] }
 0x1b3   :  { %2224 = vmatpush.msra.mxu2 %v317_v3  ;;  %2243 = vmatpush.msra.mxu3 %v385_v4  ;;  %v353_v40 = vld [vmem:[#allocation5 + $0x648] sm:$0xff] }
 0x1b4   :  { %2185 = vmatpush.msra.mxu0 %v185_v5  ;;  %2205 = vmatpush.msra.mxu1 %v249_v6  ;;  %v153_v41 = vld [vmem:[#allocation5 + $0x8] sm:$0xff] }
 0x1b5   :  { %2225 = vmatpush.msra.mxu2 %v313_v7  ;;  %2244 = vmatpush.msra.mxu3 %v381_v8  ;;  %v217_v42 = vld [vmem:[#allocation5 + $0x208] sm:$0xff] }
 0x1b6   :  { %2186 = vmatpush.msra.mxu0 %v181_v9  ;;  %2206 = vmatpush.msra.mxu1 %v245_v10  ;;  %v281_v44 = vld [vmem:[#allocation5 + $0x408] sm:$0xff] }
 0x1b7   :  { %2226 = vmatpush.msra.mxu2 %v309_v11  ;;  %2245 = vmatpush.msra.mxu3 %v377_v12  ;;  %v349_v45 = vld [vmem:[#allocation5 + $0x628] sm:$0xff] }
 0x1b8   :  { %2187 = vmatpush.msra.mxu0 %v177_v13  ;;  %2207 = vmatpush.msra.mxu1 %v241_v14  ;;  %v469_v47 = vld [vmem:[#allocation5 + $0x9e8] sm:$0xff] }
 0x1b9   :  { %2227 = vmatpush.msra.mxu2 %v305_v15  ;;  %2246 = vmatpush.msra.mxu3 %v373_v16  ;;  %v533_v48 = vld [vmem:[#allocation5 + $0xbe8] sm:$0xff] }
 0x1ba   :  { %2188 = vmatpush.msra.mxu0 %v173_v17  ;;  %2208 = vmatpush.msra.mxu1 %v237_v18  ;;  %v597_v49 = vld [vmem:[#allocation5 + $0xde8] sm:$0xff] }
 0x1bb   :  { %2228 = vmatpush.msra.mxu2 %v301_v19  ;;  %2247 = vmatpush.msra.mxu3 %v369_v20  ;;  %v345_v50 = vld [vmem:[#allocation5 + $0x608] sm:$0xff] }
 0x1bc   :  { %2189 = vmatpush.msra.mxu0 %v169_v21  ;;  %2209 = vmatpush.msra.mxu1 %v233_v22  ;;  %v465_v52 = vld [vmem:[#allocation5 + $0x9c8] sm:$0xff] }
 0x1bd   :  { %2229 = vmatpush.msra.mxu2 %v297_v23  ;;  %2248 = vmatpush.msra.mxu3 %v365_v24  ;;  %v529_v53 = vld [vmem:[#allocation5 + $0xbc8] sm:$0xff] }
 0x1be   :  { %2190 = vmatpush.msra.mxu0 %v165_v25  ;;  %2210 = vmatpush.msra.mxu1 %v229_v26  ;;  %v593_v55 = vld [vmem:[#allocation5 + $0xdc8] sm:$0xff] }
 0x1bf   :  { %2230 = vmatpush.msra.mxu2 %v293_v28  ;;  %2249 = vmatpush.msra.mxu3 %v361_v29  ;;  %v661_v56 = vld [vmem:[#allocation5 + $0xfe8] sm:$0xff] }
 0x1c0   :  { %2191 = vmatpush.msra.mxu0 %v161_v31  ;;  %2211 = vmatpush.msra.mxu1 %v225_v32  ;;  %v461_v57 = vld [vmem:[#allocation5 + $0x9a8] sm:$0xff] }
 0x1c1   :  { %2231 = vmatpush.msra.mxu2 %v289_v33  ;;  %2250 = vmatpush.msra.mxu3 %v357_v34  ;;  %v525_v58 = vld [vmem:[#allocation5 + $0xba8] sm:$0xff] }
 0x1c2   :  { %2192 = vmatpush.msra.mxu0 %v157_v36  ;;  %2212 = vmatpush.msra.mxu1 %v221_v37  ;;  %v589_v59 = vld [vmem:[#allocation5 + $0xda8] sm:$0xff] }
 0x1c3   :  { %2232 = vmatpush.msra.mxu2 %v285_v39  ;;  %2251 = vmatpush.msra.mxu3 %v353_v40  ;;  %v657_v60 = vld [vmem:[#allocation5 + $0xfc8] sm:$0xff]  ;;  %v1955_v39 = vpop.f32.mrf.mxu0 }
 0x1c4   :  { %2193 = vmatpush.msra.mxu0 %v153_v41  ;;  %2213 = vmatpush.msra.mxu1 %v217_v42  ;;  %v457_v61 = vld [vmem:[#allocation5 + $0x988] sm:$0xff]  ;;  %v1956_v42 = vadd.f32 %v1955_v39, %v4197_v54 }
 0x1c5   :  { %2233 = vmatpush.msra.mxu2 %v281_v44  ;;  %2252 = vmatpush.msra.mxu3 %v349_v45  ;;  %v521_v62 = vld [vmem:[#allocation5 + $0xb88] sm:$0xff] }
 0x1c6   :  { %2258 = vmatpush.msrb.mxu0 %v469_v47  ;;  %2278 = vmatpush.msrb.mxu1 %v533_v48  ;;  %v585_v63 = vld [vmem:[#allocation5 + $0xd88] sm:$0xff]  ;;  %v1975_v47 = vpop.f32.mrf.mxu1 }
 0x1c7   :  { %2298 = vmatpush.msrb.mxu2 %v597_v49  ;;  %2253 = vmatpush.msra.mxu3 %v345_v50  ;;  %v653_v0 = vld [vmem:[#allocation5 + $0xfa8] sm:$0xff]  ;;  %v1976_v50 = vadd.f32 %v1975_v47, %v1956_v42 }
 0x1c8   :  { %2259 = vmatpush.msrb.mxu0 %v465_v52  ;;  %2279 = vmatpush.msrb.mxu1 %v529_v53  ;;  %v453_v1 = vld [vmem:[#allocation5 + $0x968] sm:$0xff]  ;;  %v1995_v53 = vpop.f32.mrf.mxu2 }
 0x1c9   :  { %2299 = vmatpush.msrb.mxu2 %v593_v55  ;;  %2318 = vmatpush.msrb.mxu3 %v661_v56  ;;  %v517_v2 = vld [vmem:[#allocation5 + $0xb68] sm:$0xff]  ;;  %v1996_v55 = vadd.f32 %v1995_v53, %v1976_v50 }
 0x1ca   :  { %2260 = vmatpush.msrb.mxu0 %v461_v57  ;;  %2280 = vmatpush.msrb.mxu1 %v525_v58  ;;  %v581_v3 = vld [vmem:[#allocation5 + $0xd68] sm:$0xff]  ;;  %v3846_v58 = vld [vmem:[#allocation2] sm:$0xff] }
 0x1cb   :  { %2300 = vmatpush.msrb.mxu2 %v589_v59  ;;  %2319 = vmatpush.msrb.mxu3 %v657_v60  ;;  %v649_v4 = vld [vmem:[#allocation5 + $0xf88] sm:$0xff] }
 0x1cc   :  { %2261 = vmatpush.msrb.mxu0 %v457_v61  ;;  %2281 = vmatpush.msrb.mxu1 %v521_v62  ;;  %v449_v5 = vld [vmem:[#allocation5 + $0x948] sm:$0xff]  ;;  %v2015_v62 = vpop.f32.mrf.mxu3 }
 0x1cd   :  { %2301 = vmatpush.msrb.mxu2 %v585_v63  ;;  %2320 = vmatpush.msrb.mxu3 %v653_v0  ;;  %v513_v6 = vld [vmem:[#allocation5 + $0xb48] sm:$0xff]  ;;  %v3848_v63 = vld [vmem:[#allocation2 + $0x10] sm:$0xff] }
 0x1ce   :  { %2262 = vmatpush.msrb.mxu0 %v453_v1  ;;  %2282 = vmatpush.msrb.mxu1 %v517_v2  ;;  %v577_v7 = vld [vmem:[#allocation5 + $0xd48] sm:$0xff]  ;;  %v4200_v1 = vadd.f32 %v2015_v62, %v1996_v55 }
 0x1cf   :  { %v645_v8 = vld [vmem:[#allocation5 + $0xf68] sm:$0xff]  ;;  %2302 = vmatpush.msrb.mxu2 %v581_v3  ;;  %2321 = vmatpush.msrb.mxu3 %v649_v4 }
 0x1d0   :  { %v445_v9 = vld [vmem:[#allocation5 + $0x928] sm:$0xff]  ;;  %2263 = vmatpush.msrb.mxu0 %v449_v5  ;;  %2283 = vmatpush.msrb.mxu1 %v513_v6  ;;  %v3849_v6 = vld [vmem:[#allocation2 + $0x18] sm:$0xff] }
 0x1d1   :  { %v509_v10 = vld [vmem:[#allocation5 + $0xb28] sm:$0xff]  ;;  %2303 = vmatpush.msrb.mxu2 %v577_v7  ;;  %2322 = vmatpush.msrb.mxu3 %v645_v8 }
 0x1d2   :  { %v573_v11 = vld [vmem:[#allocation5 + $0xd28] sm:$0xff]  ;;  %2264 = vmatpush.msrb.mxu0 %v445_v9  ;;  %2284 = vmatpush.msrb.mxu1 %v509_v10 }
 0x1d3   :  { %v641_v12 = vld [vmem:[#allocation5 + $0xf48] sm:$0xff]  ;;  %2304 = vmatpush.msrb.mxu2 %v573_v11  ;;  %2194 = vmatmul.f32.vlgmr.msra.gmra.mxu0 %v3846_v58 }
 0x1d4   :  { %v441_v13 = vld [vmem:[#allocation5 + $0x908] sm:$0xff]  ;;  %2323 = vmatpush.msrb.mxu3 %v641_v12  ;;  %2234 = vmatmul.f32.vlgmr.msra.gmra.mxu2 %v3848_v63 }
 0x1d5   :  { %v505_v14 = vld [vmem:[#allocation5 + $0xb08] sm:$0xff]  ;;  %2265 = vmatpush.msrb.mxu0 %v441_v13  ;;  %2254 = vmatmul.f32.vlgmr.msra.gmra.mxu3 %v3849_v6 }
 0x1d6   :  { %v569_v15 = vld [vmem:[#allocation5 + $0xd08] sm:$0xff]  ;;  %2285 = vmatpush.msrb.mxu1 %v505_v14 }
 0x1d7   :  { %v637_v16 = vld [vmem:[#allocation5 + $0xf28] sm:$0xff]  ;;  %2305 = vmatpush.msrb.mxu2 %v569_v15 }
 0x1d8   :  { %v437_v17 = vld [vmem:[#allocation5 + $0x8e8] sm:$0xff]  ;;  %2324 = vmatpush.msrb.mxu3 %v637_v16 }
 0x1d9   :  { %v501_v18 = vld [vmem:[#allocation5 + $0xae8] sm:$0xff]  ;;  %2266 = vmatpush.msrb.mxu0 %v437_v17  ;;  %v3850_v17 = vld [vmem:[#allocation2 + $0x30] sm:$0xff] }
 0x1da   :  { %v565_v19 = vld [vmem:[#allocation5 + $0xce8] sm:$0xff]  ;;  %2286 = vmatpush.msrb.mxu1 %v501_v18 }
 0x1db   :  { %v633_v20 = vld [vmem:[#allocation5 + $0xf08] sm:$0xff]  ;;  %2306 = vmatpush.msrb.mxu2 %v565_v19 }
 0x1dc   :  { %v433_v21 = vld [vmem:[#allocation5 + $0x8c8] sm:$0xff]  ;;  %2325 = vmatpush.msrb.mxu3 %v633_v20 }
 0x1dd   :  { %v497_v22 = vld [vmem:[#allocation5 + $0xac8] sm:$0xff]  ;;  %2267 = vmatpush.msrb.mxu0 %v433_v21  ;;  %v3851_v21 = vld [vmem:[#allocation2 + $0x20] sm:$0xff] }
 0x1de   :  { %v561_v23 = vld [vmem:[#allocation5 + $0xcc8] sm:$0xff]  ;;  %2287 = vmatpush.msrb.mxu1 %v497_v22 }
 0x1df   :  { %v629_v24 = vld [vmem:[#allocation5 + $0xee8] sm:$0xff]  ;;  %2307 = vmatpush.msrb.mxu2 %v561_v23  ;;  %v3852_v23 = vld [vmem:[#allocation2 + $0x38] sm:$0xff] }
 0x1e0   :  { %v429_v25 = vld [vmem:[#allocation5 + $0x8a8] sm:$0xff]  ;;  %2326 = vmatpush.msrb.mxu3 %v629_v24 }
 0x1e1   :  { %v493_v26 = vld [vmem:[#allocation5 + $0xaa8] sm:$0xff]  ;;  %2268 = vmatpush.msrb.mxu0 %v429_v25 }
 0x1e2   :  { %v557_v27 = vld [vmem:[#allocation5 + $0xca8] sm:$0xff]  ;;  %2288 = vmatpush.msrb.mxu1 %v493_v26 }
 0x1e3   :  { %v625_v28 = vld [vmem:[#allocation5 + $0xec8] sm:$0xff]  ;;  %2308 = vmatpush.msrb.mxu2 %v557_v27 }
 0x1e4   :  { %v425_v29 = vld [vmem:[#allocation5 + $0x888] sm:$0xff]  ;;  %2327 = vmatpush.msrb.mxu3 %v625_v28 }
 0x1e5   :  { %v489_v30 = vld [vmem:[#allocation5 + $0xa88] sm:$0xff]  ;;  %2269 = vmatpush.msrb.mxu0 %v425_v29 }
 0x1e6   :  { %v553_v31 = vld [vmem:[#allocation5 + $0xc88] sm:$0xff]  ;;  %2289 = vmatpush.msrb.mxu1 %v489_v30 }
 0x1e7   :  { %v621_v32 = vld [vmem:[#allocation5 + $0xea8] sm:$0xff]  ;;  %2309 = vmatpush.msrb.mxu2 %v553_v31 }
 0x1e8   :  { %v421_v33 = vld [vmem:[#allocation5 + $0x868] sm:$0xff]  ;;  %2328 = vmatpush.msrb.mxu3 %v621_v32 }
 0x1e9   :  { %v485_v34 = vld [vmem:[#allocation5 + $0xa68] sm:$0xff]  ;;  %2270 = vmatpush.msrb.mxu0 %v421_v33 }
 0x1ea   :  { %v549_v35 = vld [vmem:[#allocation5 + $0xc68] sm:$0xff]  ;;  %2290 = vmatpush.msrb.mxu1 %v485_v34 }
 0x1eb   :  { %v617_v36 = vld [vmem:[#allocation5 + $0xe88] sm:$0xff]  ;;  %2310 = vmatpush.msrb.mxu2 %v549_v35 }
 0x1ec   :  { %v417_v37 = vld [vmem:[#allocation5 + $0x848] sm:$0xff]  ;;  %2329 = vmatpush.msrb.mxu3 %v617_v36 }
 0x1ed   :  { %v481_v38 = vld [vmem:[#allocation5 + $0xa48] sm:$0xff]  ;;  %2271 = vmatpush.msrb.mxu0 %v417_v37 }
 0x1ee   :  { %v545_v40 = vld [vmem:[#allocation5 + $0xc48] sm:$0xff]  ;;  %2291 = vmatpush.msrb.mxu1 %v481_v38 }
 0x1ef   :  { %v613_v41 = vld [vmem:[#allocation5 + $0xe68] sm:$0xff]  ;;  %2311 = vmatpush.msrb.mxu2 %v545_v40 }
 0x1f0   :  { %v413_v43 = vld [vmem:[#allocation5 + $0x828] sm:$0xff]  ;;  %2330 = vmatpush.msrb.mxu3 %v613_v41 }
 0x1f1   :  { %v477_v44 = vld [vmem:[#allocation5 + $0xa28] sm:$0xff]  ;;  %2272 = vmatpush.msrb.mxu0 %v413_v43 }
 0x1f2   :  { %v541_v45 = vld [vmem:[#allocation5 + $0xc28] sm:$0xff]  ;;  %2292 = vmatpush.msrb.mxu1 %v477_v44 }
 0x1f3   :  { %v609_v46 = vld [vmem:[#allocation5 + $0xe48] sm:$0xff]  ;;  %2312 = vmatpush.msrb.mxu2 %v541_v45 }
 0x1f4   :  { %v409_v48 = vld [vmem:[#allocation5 + $0x808] sm:$0xff]  ;;  %2331 = vmatpush.msrb.mxu3 %v609_v46 }
 0x1f5   :  { %v473_v49 = vld [vmem:[#allocation5 + $0xa08] sm:$0xff]  ;;  %2273 = vmatpush.msrb.mxu0 %v409_v48 }
 0x1f6   :  { %v537_v51 = vld [vmem:[#allocation5 + $0xc08] sm:$0xff]  ;;  %2293 = vmatpush.msrb.mxu1 %v473_v49  ;;  %2274 = vmatmul.f32.vlgmr.msrb.gmra.mxu0 %v3851_v21 }
 0x1f7   :  { %v605_v52 = vld [vmem:[#allocation5 + $0xe28] sm:$0xff]  ;;  %2313 = vmatpush.msrb.mxu2 %v537_v51  ;;  %v2035_v51 = vpop.f32.mrf.mxu0 }
 0x1f8   :  { %v725_v54 = vld [vmem:[#allocation5 + $0x11e8] sm:$0xff]  ;;  %2332 = vmatpush.msrb.mxu3 %v605_v52  ;;  %2314 = vmatmul.f32.vlgmr.msrb.gmra.mxu2 %v3850_v17 }
 0x1f9   :  { %v789_v56 = vld [vmem:[#allocation5 + $0x13e8] sm:$0xff]  ;;  %2338 = vmatpush.msra.mxu0 %v725_v54  ;;  %v2036_v54 = vadd.f32 %v2035_v51, %v4200_v1 }
 0x1fa   :  { %v853_v57 = vld [vmem:[#allocation5 + $0x15e8] sm:$0xff] }
 0x1fb   :  { %v3847_v59 = vld [vmem:[#allocation2 + $0x8] sm:$0xff]  ;;  %2378 = vmatpush.msra.mxu2 %v853_v57 }
 0x1fc   :  { %2214 = vmatmul.f32.vlgmr.msra.gmra.mxu1 %v3847_v59  ;;  %v601_v60 = vld [vmem:[#allocation5 + $0xe08] sm:$0xff]  ;;  %v2055_v59 = vpop.f32.mrf.mxu1 }
 0x1fd   :  { %v721_v61 = vld [vmem:[#allocation5 + $0x11c8] sm:$0xff]  ;;  %2358 = vmatpush.msra.mxu1 %v789_v56  ;;  %2333 = vmatpush.msrb.mxu3 %v601_v60  ;;  %v2056_v62 = vadd.f32 %v2055_v59, %v2036_v54 }
 0x1fe   :  { %v785_v0 = vld [vmem:[#allocation5 + $0x13c8] sm:$0xff]  ;;  %2339 = vmatpush.msra.mxu0 %v721_v61  ;;  %2334 = vmatmul.f32.vlgmr.msrb.gmra.mxu3 %v3852_v23 }
 0x1ff   :  { %v849_v2 = vld [vmem:[#allocation5 + $0x15c8] sm:$0xff]  ;;  %2359 = vmatpush.msra.mxu1 %v785_v0 }
 0x200   :  { %v917_v3 = vld [vmem:[#allocation5 + $0x17e8] sm:$0xff]  ;;  %2379 = vmatpush.msra.mxu2 %v849_v2 }
 0x201   :  { %v717_v4 = vld [vmem:[#allocation5 + $0x11a8] sm:$0xff]  ;;  %2398 = vmatpush.msra.mxu3 %v917_v3  ;;  %v2075_v3 = vpop.f32.mrf.mxu2 }
 0x202   :  { %v781_v5 = vld [vmem:[#allocation5 + $0x13a8] sm:$0xff]  ;;  %2340 = vmatpush.msra.mxu0 %v717_v4  ;;  %v2076_v6 = vadd.f32 %v2075_v3, %v2056_v62 }
 0x203   :  { %v845_v7 = vld [vmem:[#allocation5 + $0x15a8] sm:$0xff]  ;;  %2360 = vmatpush.msra.mxu1 %v781_v5 }
 0x204   :  { %v913_v8 = vld [vmem:[#allocation5 + $0x17c8] sm:$0xff]  ;;  %2380 = vmatpush.msra.mxu2 %v845_v7 }
 0x205   :  { %v713_v9 = vld [vmem:[#allocation5 + $0x1188] sm:$0xff]  ;;  %2399 = vmatpush.msra.mxu3 %v913_v8 }
 0x206   :  { %v777_v10 = vld [vmem:[#allocation5 + $0x1388] sm:$0xff]  ;;  %2341 = vmatpush.msra.mxu0 %v713_v9  ;;  %v2095_v9 = vpop.f32.mrf.mxu3 }
 0x207   :  { %v841_v11 = vld [vmem:[#allocation5 + $0x1588] sm:$0xff]  ;;  %2361 = vmatpush.msra.mxu1 %v777_v10 }
 0x208   :  { %v909_v12 = vld [vmem:[#allocation5 + $0x17a8] sm:$0xff]  ;;  %2381 = vmatpush.msra.mxu2 %v841_v11 }
 0x209   :  { %v709_v13 = vld [vmem:[#allocation5 + $0x1168] sm:$0xff]  ;;  %2400 = vmatpush.msra.mxu3 %v909_v12  ;;  %v4203_v12 = vadd.f32 %v2095_v9, %v2076_v6 }
 0x20a   :  { %v773_v14 = vld [vmem:[#allocation5 + $0x1368] sm:$0xff]  ;;  %2342 = vmatpush.msra.mxu0 %v709_v13  ;;  %v3854_v13 = vld [vmem:[#allocation2 + $0x40] sm:$0xff] }
 0x20b   :  { %v837_v15 = vld [vmem:[#allocation5 + $0x1568] sm:$0xff]  ;;  %2362 = vmatpush.msra.mxu1 %v773_v14  ;;  %v3855_v14 = vld [vmem:[#allocation2 + $0x50] sm:$0xff] }
 0x20c   :  { %v905_v16 = vld [vmem:[#allocation5 + $0x1788] sm:$0xff]  ;;  %2382 = vmatpush.msra.mxu2 %v837_v15 }
 0x20d   :  { %v705_v18 = vld [vmem:[#allocation5 + $0x1148] sm:$0xff]  ;;  %2401 = vmatpush.msra.mxu3 %v905_v16 }
 0x20e   :  { %v769_v19 = vld [vmem:[#allocation5 + $0x1348] sm:$0xff]  ;;  %2343 = vmatpush.msra.mxu0 %v705_v18 }
 0x20f   :  { %v833_v20 = vld [vmem:[#allocation5 + $0x1548] sm:$0xff]  ;;  %2363 = vmatpush.msra.mxu1 %v769_v19 }
 0x210   :  { %v901_v22 = vld [vmem:[#allocation5 + $0x1768] sm:$0xff]  ;;  %2383 = vmatpush.msra.mxu2 %v833_v20  ;;  %v3857_v20 = vld [vmem:[#allocation2 + $0x58] sm:$0xff] }
 0x211   :  { %v701_v24 = vld [vmem:[#allocation5 + $0x1128] sm:$0xff]  ;;  %2402 = vmatpush.msra.mxu3 %v901_v22 }
 0x212   :  { %v765_v25 = vld [vmem:[#allocation5 + $0x1328] sm:$0xff]  ;;  %2344 = vmatpush.msra.mxu0 %v701_v24 }
 0x213   :  { %v829_v26 = vld [vmem:[#allocation5 + $0x1528] sm:$0xff]  ;;  %2364 = vmatpush.msra.mxu1 %v765_v25 }
 0x214   :  { %v897_v27 = vld [vmem:[#allocation5 + $0x1748] sm:$0xff]  ;;  %2384 = vmatpush.msra.mxu2 %v829_v26 }
 0x215   :  { %v3853_v28 = vld [vmem:[#allocation2 + $0x28] sm:$0xff]  ;;  %2403 = vmatpush.msra.mxu3 %v897_v27 }
 0x216   :  { %2294 = vmatmul.f32.vlgmr.msrb.gmra.mxu1 %v3853_v28  ;;  %v697_v29 = vld [vmem:[#allocation5 + $0x1108] sm:$0xff] }
 0x217   :  { %v761_v30 = vld [vmem:[#allocation5 + $0x1308] sm:$0xff]  ;;  %2345 = vmatpush.msra.mxu0 %v697_v29 }
 0x218   :  { %v825_v31 = vld [vmem:[#allocation5 + $0x1508] sm:$0xff]  ;;  %2365 = vmatpush.msra.mxu1 %v761_v30 }
 0x219   :  { %v893_v32 = vld [vmem:[#allocation5 + $0x1728] sm:$0xff]  ;;  %2385 = vmatpush.msra.mxu2 %v825_v31 }
 0x21a   :  { %v693_v33 = vld [vmem:[#allocation5 + $0x10e8] sm:$0xff]  ;;  %2404 = vmatpush.msra.mxu3 %v893_v32 }
 0x21b   :  { %v757_v34 = vld [vmem:[#allocation5 + $0x12e8] sm:$0xff]  ;;  %2346 = vmatpush.msra.mxu0 %v693_v33 }
 0x21c   :  { %v821_v35 = vld [vmem:[#allocation5 + $0x14e8] sm:$0xff]  ;;  %2366 = vmatpush.msra.mxu1 %v757_v34 }
 0x21d   :  { %v889_v36 = vld [vmem:[#allocation5 + $0x1708] sm:$0xff]  ;;  %2386 = vmatpush.msra.mxu2 %v821_v35 }
 0x21e   :  { %v689_v37 = vld [vmem:[#allocation5 + $0x10c8] sm:$0xff]  ;;  %2405 = vmatpush.msra.mxu3 %v889_v36 }
 0x21f   :  { %v753_v38 = vld [vmem:[#allocation5 + $0x12c8] sm:$0xff]  ;;  %2347 = vmatpush.msra.mxu0 %v689_v37 }
 0x220   :  { %v817_v39 = vld [vmem:[#allocation5 + $0x14c8] sm:$0xff]  ;;  %2367 = vmatpush.msra.mxu1 %v753_v38 }
 0x221   :  { %v885_v40 = vld [vmem:[#allocation5 + $0x16e8] sm:$0xff]  ;;  %2387 = vmatpush.msra.mxu2 %v817_v39 }
 0x222   :  { %v685_v41 = vld [vmem:[#allocation5 + $0x10a8] sm:$0xff]  ;;  %2406 = vmatpush.msra.mxu3 %v885_v40 }
 0x223   :  { %v749_v42 = vld [vmem:[#allocation5 + $0x12a8] sm:$0xff]  ;;  %2348 = vmatpush.msra.mxu0 %v685_v41 }
 0x224   :  { %v813_v43 = vld [vmem:[#allocation5 + $0x14a8] sm:$0xff]  ;;  %2368 = vmatpush.msra.mxu1 %v749_v42 }
 0x225   :  { %v881_v44 = vld [vmem:[#allocation5 + $0x16c8] sm:$0xff]  ;;  %2388 = vmatpush.msra.mxu2 %v813_v43 }
 0x226   :  { %v681_v45 = vld [vmem:[#allocation5 + $0x1088] sm:$0xff]  ;;  %2407 = vmatpush.msra.mxu3 %v881_v44 }
 0x227   :  { %v745_v46 = vld [vmem:[#allocation5 + $0x1288] sm:$0xff]  ;;  %2349 = vmatpush.msra.mxu0 %v681_v45 }
 0x228   :  { %v809_v47 = vld [vmem:[#allocation5 + $0x1488] sm:$0xff]  ;;  %2369 = vmatpush.msra.mxu1 %v745_v46 }
 0x229   :  { %v877_v48 = vld [vmem:[#allocation5 + $0x16a8] sm:$0xff]  ;;  %2389 = vmatpush.msra.mxu2 %v809_v47 }
 0x22a   :  { %v677_v49 = vld [vmem:[#allocation5 + $0x1068] sm:$0xff]  ;;  %2408 = vmatpush.msra.mxu3 %v877_v48 }
 0x22b   :  { %v741_v50 = vld [vmem:[#allocation5 + $0x1268] sm:$0xff]  ;;  %2350 = vmatpush.msra.mxu0 %v677_v49 }
 0x22c   :  { %v805_v52 = vld [vmem:[#allocation5 + $0x1468] sm:$0xff]  ;;  %2370 = vmatpush.msra.mxu1 %v741_v50 }
 0x22d   :  { %v873_v53 = vld [vmem:[#allocation5 + $0x1688] sm:$0xff]  ;;  %2390 = vmatpush.msra.mxu2 %v805_v52 }
 0x22e   :  { %v673_v55 = vld [vmem:[#allocation5 + $0x1048] sm:$0xff]  ;;  %2409 = vmatpush.msra.mxu3 %v873_v53 }
 0x22f   :  { %v737_v56 = vld [vmem:[#allocation5 + $0x1248] sm:$0xff]  ;;  %2351 = vmatpush.msra.mxu0 %v673_v55 }
 0x230   :  { %v801_v57 = vld [vmem:[#allocation5 + $0x1448] sm:$0xff]  ;;  %2371 = vmatpush.msra.mxu1 %v737_v56 }
 0x231   :  { %v869_v58 = vld [vmem:[#allocation5 + $0x1668] sm:$0xff]  ;;  %2391 = vmatpush.msra.mxu2 %v801_v57 }
 0x232   :  { %v669_v60 = vld [vmem:[#allocation5 + $0x1028] sm:$0xff]  ;;  %2410 = vmatpush.msra.mxu3 %v869_v58 }
 0x233   :  { %v733_v61 = vld [vmem:[#allocation5 + $0x1228] sm:$0xff]  ;;  %2352 = vmatpush.msra.mxu0 %v669_v60 }
 0x234   :  { %v797_v63 = vld [vmem:[#allocation5 + $0x1428] sm:$0xff]  ;;  %2372 = vmatpush.msra.mxu1 %v733_v61 }
 0x235   :  { %v865_v0 = vld [vmem:[#allocation5 + $0x1648] sm:$0xff]  ;;  %2392 = vmatpush.msra.mxu2 %v797_v63  ;;  %v2115_v63 = vpop.f32.mrf.mxu0 }
 0x236   :  { %v665_v1 = vld [vmem:[#allocation5 + $0x1008] sm:$0xff]  ;;  %2411 = vmatpush.msra.mxu3 %v865_v0 }
 0x237   :  { %v729_v2 = vld [vmem:[#allocation5 + $0x1208] sm:$0xff]  ;;  %2353 = vmatpush.msra.mxu0 %v665_v1 }
 0x238   :  { %v793_v4 = vld [vmem:[#allocation5 + $0x1408] sm:$0xff]  ;;  %2373 = vmatpush.msra.mxu1 %v729_v2  ;;  %2354 = vmatmul.f32.vlgmr.msra.gmra.mxu0 %v3854_v13  ;;  %v2116_v2 = vadd.f32 %v2115_v63, %v4203_v12 }
 0x239   :  { %v861_v5 = vld [vmem:[#allocation5 + $0x1628] sm:$0xff]  ;;  %2393 = vmatpush.msra.mxu2 %v793_v4 }
 0x23a   :  { %v981_v7 = vld [vmem:[#allocation5 + $0x19e8] sm:$0xff]  ;;  %2412 = vmatpush.msra.mxu3 %v861_v5  ;;  %2394 = vmatmul.f32.vlgmr.msra.gmra.mxu2 %v3855_v14 }
 0x23b   :  { %v1045_v8 = vld [vmem:[#allocation5 + $0x1be8] sm:$0xff]  ;;  %2418 = vmatpush.msrb.mxu0 %v981_v7  ;;  %v2135_v7 = vpop.f32.mrf.mxu1 }
 0x23c   :  { %v1109_v10 = vld [vmem:[#allocation5 + $0x1de8] sm:$0xff]  ;;  %2438 = vmatpush.msrb.mxu1 %v1045_v8 }
 0x23d   :  { %v857_v11 = vld [vmem:[#allocation5 + $0x1608] sm:$0xff]  ;;  %2458 = vmatpush.msrb.mxu2 %v1109_v10  ;;  %v4206_v10 = vadd.f32 %v2135_v7, %v2116_v2 }
 0x23e   :  { %v977_v15 = vld [vmem:[#allocation5 + $0x19c8] sm:$0xff]  ;;  %2413 = vmatpush.msra.mxu3 %v857_v11 }
 0x23f   :  { %v1041_v16 = vld [vmem:[#allocation5 + $0x1bc8] sm:$0xff]  ;;  %2414 = vmatmul.f32.vlgmr.msra.gmra.mxu3 %v3857_v20  ;;  %2419 = vmatpush.msrb.mxu0 %v977_v15 }
 0x240   :  { %v1105_v17 = vld [vmem:[#allocation5 + $0x1dc8] sm:$0xff]  ;;  %2439 = vmatpush.msrb.mxu1 %v1041_v16 }
 0x241   :  { %v1173_v18 = vld [vmem:[#allocation5 + $0x1fe8] sm:$0xff]  ;;  %2459 = vmatpush.msrb.mxu2 %v1105_v17 }
 0x242   :  { %v3856_v19 = vld [vmem:[#allocation2 + $0x48] sm:$0xff]  ;;  %2478 = vmatpush.msrb.mxu3 %v1173_v18 }
 0x243   :  { %2374 = vmatmul.f32.vlgmr.msra.gmra.mxu1 %v3856_v19  ;;  %v973_v21 = vld [vmem:[#allocation5 + $0x19a8] sm:$0xff] }
 0x244   :  { %v1037_v22 = vld [vmem:[#allocation5 + $0x1ba8] sm:$0xff]  ;;  %2420 = vmatpush.msrb.mxu0 %v973_v21  ;;  %v3858_v21 = vld [vmem:[#allocation2 + $0x60] sm:$0xff] }
 0x245   :  { %v1101_v23 = vld [vmem:[#allocation5 + $0x1da8] sm:$0xff]  ;;  %2440 = vmatpush.msrb.mxu1 %v1037_v22  ;;  %v3859_v22 = vld [vmem:[#allocation2 + $0x70] sm:$0xff] }
 0x246   :  { %v1169_v24 = vld [vmem:[#allocation5 + $0x1fc8] sm:$0xff]  ;;  %2460 = vmatpush.msrb.mxu2 %v1101_v23 }
 0x247   :  { %v969_v25 = vld [vmem:[#allocation5 + $0x1988] sm:$0xff]  ;;  %2479 = vmatpush.msrb.mxu3 %v1169_v24 }
 0x248   :  { %v1033_v26 = vld [vmem:[#allocation5 + $0x1b88] sm:$0xff]  ;;  %2421 = vmatpush.msrb.mxu0 %v969_v25 }
 0x249   :  { %v1097_v27 = vld [vmem:[#allocation5 + $0x1d88] sm:$0xff]  ;;  %2441 = vmatpush.msrb.mxu1 %v1033_v26 }
 0x24a   :  { %v1165_v28 = vld [vmem:[#allocation5 + $0x1fa8] sm:$0xff]  ;;  %2461 = vmatpush.msrb.mxu2 %v1097_v27 }
 0x24b   :  { %v965_v29 = vld [vmem:[#allocation5 + $0x1968] sm:$0xff]  ;;  %2480 = vmatpush.msrb.mxu3 %v1165_v28  ;;  %v3861_v28 = vld [vmem:[#allocation2 + $0x78] sm:$0xff] }
 0x24c   :  { %v1029_v30 = vld [vmem:[#allocation5 + $0x1b68] sm:$0xff]  ;;  %2422 = vmatpush.msrb.mxu0 %v965_v29 }
 0x24d   :  { %v1093_v31 = vld [vmem:[#allocation5 + $0x1d68] sm:$0xff]  ;;  %2442 = vmatpush.msrb.mxu1 %v1029_v30 }
 0x24e   :  { %v1161_v32 = vld [vmem:[#allocation5 + $0x1f88] sm:$0xff]  ;;  %2462 = vmatpush.msrb.mxu2 %v1093_v31 }
 0x24f   :  { %v961_v33 = vld [vmem:[#allocation5 + $0x1948] sm:$0xff]  ;;  %2481 = vmatpush.msrb.mxu3 %v1161_v32 }
 0x250   :  { %v1025_v34 = vld [vmem:[#allocation5 + $0x1b48] sm:$0xff]  ;;  %2423 = vmatpush.msrb.mxu0 %v961_v33 }
 0x251   :  { %v1089_v35 = vld [vmem:[#allocation5 + $0x1d48] sm:$0xff]  ;;  %2443 = vmatpush.msrb.mxu1 %v1025_v34 }
 0x252   :  { %v1157_v36 = vld [vmem:[#allocation5 + $0x1f68] sm:$0xff]  ;;  %2463 = vmatpush.msrb.mxu2 %v1089_v35 }
 0x253   :  { %v957_v37 = vld [vmem:[#allocation5 + $0x1928] sm:$0xff]  ;;  %2482 = vmatpush.msrb.mxu3 %v1157_v36 }
 0x254   :  { %v1021_v38 = vld [vmem:[#allocation5 + $0x1b28] sm:$0xff]  ;;  %2424 = vmatpush.msrb.mxu0 %v957_v37 }
 0x255   :  { %v1085_v39 = vld [vmem:[#allocation5 + $0x1d28] sm:$0xff]  ;;  %2444 = vmatpush.msrb.mxu1 %v1021_v38 }
 0x256   :  { %v1153_v40 = vld [vmem:[#allocation5 + $0x1f48] sm:$0xff]  ;;  %2464 = vmatpush.msrb.mxu2 %v1085_v39 }
 0x257   :  { %v953_v41 = vld [vmem:[#allocation5 + $0x1908] sm:$0xff]  ;;  %2483 = vmatpush.msrb.mxu3 %v1153_v40 }
 0x258   :  { %v1017_v42 = vld [vmem:[#allocation5 + $0x1b08] sm:$0xff]  ;;  %2425 = vmatpush.msrb.mxu0 %v953_v41 }
 0x259   :  { %v1081_v43 = vld [vmem:[#allocation5 + $0x1d08] sm:$0xff]  ;;  %2445 = vmatpush.msrb.mxu1 %v1017_v42 }
 0x25a   :  { %v1149_v44 = vld [vmem:[#allocation5 + $0x1f28] sm:$0xff]  ;;  %2465 = vmatpush.msrb.mxu2 %v1081_v43 }
 0x25b   :  { %v949_v45 = vld [vmem:[#allocation5 + $0x18e8] sm:$0xff]  ;;  %2484 = vmatpush.msrb.mxu3 %v1149_v44 }
 0x25c   :  { %v1013_v46 = vld [vmem:[#allocation5 + $0x1ae8] sm:$0xff]  ;;  %2426 = vmatpush.msrb.mxu0 %v949_v45 }
 0x25d   :  { %v1077_v47 = vld [vmem:[#allocation5 + $0x1ce8] sm:$0xff]  ;;  %2446 = vmatpush.msrb.mxu1 %v1013_v46 }
 0x25e   :  { %v1145_v48 = vld [vmem:[#allocation5 + $0x1f08] sm:$0xff]  ;;  %2466 = vmatpush.msrb.mxu2 %v1077_v47 }
 0x25f   :  { %v945_v49 = vld [vmem:[#allocation5 + $0x18c8] sm:$0xff]  ;;  %2485 = vmatpush.msrb.mxu3 %v1145_v48 }
 0x260   :  { %v1009_v50 = vld [vmem:[#allocation5 + $0x1ac8] sm:$0xff]  ;;  %2427 = vmatpush.msrb.mxu0 %v945_v49 }
 0x261   :  { %v1073_v51 = vld [vmem:[#allocation5 + $0x1cc8] sm:$0xff]  ;;  %2447 = vmatpush.msrb.mxu1 %v1009_v50 }
 0x262   :  { %v1141_v52 = vld [vmem:[#allocation5 + $0x1ee8] sm:$0xff]  ;;  %2467 = vmatpush.msrb.mxu2 %v1073_v51 }
 0x263   :  { %v941_v53 = vld [vmem:[#allocation5 + $0x18a8] sm:$0xff]  ;;  %2486 = vmatpush.msrb.mxu3 %v1141_v52 }
 0x264   :  { %v1005_v54 = vld [vmem:[#allocation5 + $0x1aa8] sm:$0xff]  ;;  %2428 = vmatpush.msrb.mxu0 %v941_v53 }
 0x265   :  { %v1069_v55 = vld [vmem:[#allocation5 + $0x1ca8] sm:$0xff]  ;;  %2448 = vmatpush.msrb.mxu1 %v1005_v54 }
 0x266   :  { %v1137_v56 = vld [vmem:[#allocation5 + $0x1ec8] sm:$0xff]  ;;  %2468 = vmatpush.msrb.mxu2 %v1069_v55 }
 0x267   :  { %v937_v57 = vld [vmem:[#allocation5 + $0x1888] sm:$0xff]  ;;  %2487 = vmatpush.msrb.mxu3 %v1137_v56 }
 0x268   :  { %v1001_v58 = vld [vmem:[#allocation5 + $0x1a88] sm:$0xff]  ;;  %2429 = vmatpush.msrb.mxu0 %v937_v57 }
 0x269   :  { %v1065_v59 = vld [vmem:[#allocation5 + $0x1c88] sm:$0xff]  ;;  %2449 = vmatpush.msrb.mxu1 %v1001_v58 }
 0x26a   :  { %v1133_v60 = vld [vmem:[#allocation5 + $0x1ea8] sm:$0xff]  ;;  %2469 = vmatpush.msrb.mxu2 %v1065_v59 }
 0x26b   :  { %v933_v61 = vld [vmem:[#allocation5 + $0x1868] sm:$0xff]  ;;  %2488 = vmatpush.msrb.mxu3 %v1133_v60 }
 0x26c   :  { %v997_v62 = vld [vmem:[#allocation5 + $0x1a68] sm:$0xff]  ;;  %2430 = vmatpush.msrb.mxu0 %v933_v61 }
 0x26d   :  { %v1061_v0 = vld [vmem:[#allocation5 + $0x1c68] sm:$0xff]  ;;  %2450 = vmatpush.msrb.mxu1 %v997_v62 }
 0x26e   :  { %v1129_v1 = vld [vmem:[#allocation5 + $0x1e88] sm:$0xff]  ;;  %2470 = vmatpush.msrb.mxu2 %v1061_v0 }
 0x26f   :  { %v929_v3 = vld [vmem:[#allocation5 + $0x1848] sm:$0xff]  ;;  %2489 = vmatpush.msrb.mxu3 %v1129_v1 }
 0x270   :  { %v993_v4 = vld [vmem:[#allocation5 + $0x1a48] sm:$0xff]  ;;  %2431 = vmatpush.msrb.mxu0 %v929_v3 }
 0x271   :  { %v1057_v5 = vld [vmem:[#allocation5 + $0x1c48] sm:$0xff]  ;;  %2451 = vmatpush.msrb.mxu1 %v993_v4 }
 0x272   :  { %v1125_v6 = vld [vmem:[#allocation5 + $0x1e68] sm:$0xff]  ;;  %2471 = vmatpush.msrb.mxu2 %v1057_v5 }
 0x273   :  { %v925_v8 = vld [vmem:[#allocation5 + $0x1828] sm:$0xff]  ;;  %2490 = vmatpush.msrb.mxu3 %v1125_v6 }
 0x274   :  { %v989_v9 = vld [vmem:[#allocation5 + $0x1a28] sm:$0xff]  ;;  %2432 = vmatpush.msrb.mxu0 %v925_v8 }
 0x275   :  { %v1053_v11 = vld [vmem:[#allocation5 + $0x1c28] sm:$0xff]  ;;  %2452 = vmatpush.msrb.mxu1 %v989_v9 }
 0x276   :  { %v1121_v13 = vld [vmem:[#allocation5 + $0x1e48] sm:$0xff]  ;;  %2472 = vmatpush.msrb.mxu2 %v1053_v11 }
 0x277   :  { %v921_v12 = vld [vmem:[#allocation5 + $0x1808] sm:$0xff]  ;;  %2491 = vmatpush.msrb.mxu3 %v1121_v13 }
 0x278   :  { %v985_v14 = vld [vmem:[#allocation5 + $0x1a08] sm:$0xff]  ;;  %2433 = vmatpush.msrb.mxu0 %v921_v12 }
 0x279   :  { %v1049_v15 = vld [vmem:[#allocation5 + $0x1c08] sm:$0xff]  ;;  %2453 = vmatpush.msrb.mxu1 %v985_v14  ;;  %2434 = vmatmul.f32.vlgmr.msrb.gmra.mxu0 %v3858_v21 }
 0x27a   :  { %v1117_v16 = vld [vmem:[#allocation5 + $0x1e28] sm:$0xff]  ;;  %2473 = vmatpush.msrb.mxu2 %v1049_v15 }
 0x27b   :  { %v1237_v17 = vld [vmem:[#allocation5 + $0x21e8] sm:$0xff]  ;;  %2492 = vmatpush.msrb.mxu3 %v1117_v16  ;;  %2474 = vmatmul.f32.vlgmr.msrb.gmra.mxu2 %v3859_v22 }
 0x27c   :  { %v1301_v18 = vld [vmem:[#allocation5 + $0x23e8] sm:$0xff]  ;;  %2498 = vmatpush.msra.mxu0 %v1237_v17 }
 0x27d   :  { %v1365_v19 = vld [vmem:[#allocation5 + $0x25e8] sm:$0xff]  ;;  %2518 = vmatpush.msra.mxu1 %v1301_v18 }
 0x27e   :  { %v1113_v20 = vld [vmem:[#allocation5 + $0x1e08] sm:$0xff]  ;;  %2538 = vmatpush.msra.mxu2 %v1365_v19 }
 0x27f   :  { %v1233_v23 = vld [vmem:[#allocation5 + $0x21c8] sm:$0xff]  ;;  %2493 = vmatpush.msrb.mxu3 %v1113_v20 }
 0x280   :  { %v1297_v24 = vld [vmem:[#allocation5 + $0x23c8] sm:$0xff]  ;;  %2494 = vmatmul.f32.vlgmr.msrb.gmra.mxu3 %v3861_v28  ;;  %2499 = vmatpush.msra.mxu0 %v1233_v23 }
 0x281   :  { %v1361_v25 = vld [vmem:[#allocation5 + $0x25c8] sm:$0xff]  ;;  %2519 = vmatpush.msra.mxu1 %v1297_v24 }
 0x282   :  { %v1429_v26 = vld [vmem:[#allocation5 + $0x27e8] sm:$0xff]  ;;  %2539 = vmatpush.msra.mxu2 %v1361_v25 }
 0x283   :  { %v3860_v27 = vld [vmem:[#allocation2 + $0x68] sm:$0xff]  ;;  %2558 = vmatpush.msra.mxu3 %v1429_v26  ;;  %v3862_v26 = vld [vmem:[#allocation2 + $0x80] sm:$0xff] }
 0x284   :  { %2454 = vmatmul.f32.vlgmr.msrb.gmra.mxu1 %v3860_v27  ;;  %v1229_v29 = vld [vmem:[#allocation5 + $0x21a8] sm:$0xff]  ;;  %v3863_v27 = vld [vmem:[#allocation2 + $0x90] sm:$0xff] }
 0x285   :  { %v1293_v30 = vld [vmem:[#allocation5 + $0x23a8] sm:$0xff]  ;;  %2500 = vmatpush.msra.mxu0 %v1229_v29 }
 0x286   :  { %v1357_v31 = vld [vmem:[#allocation5 + $0x25a8] sm:$0xff]  ;;  %2520 = vmatpush.msra.mxu1 %v1293_v30 }
 0x287   :  { %v1425_v32 = vld [vmem:[#allocation5 + $0x27c8] sm:$0xff]  ;;  %2540 = vmatpush.msra.mxu2 %v1357_v31 }
 0x288   :  { %v1225_v33 = vld [vmem:[#allocation5 + $0x2188] sm:$0xff]  ;;  %2559 = vmatpush.msra.mxu3 %v1425_v32 }
 0x289   :  { %v1289_v34 = vld [vmem:[#allocation5 + $0x2388] sm:$0xff]  ;;  %2501 = vmatpush.msra.mxu0 %v1225_v33  ;;  %v3865_v33 = vld [vmem:[#allocation2 + $0x98] sm:$0xff] }
 0x28a   :  { %v1353_v35 = vld [vmem:[#allocation5 + $0x2588] sm:$0xff]  ;;  %2521 = vmatpush.msra.mxu1 %v1289_v34 }
 0x28b   :  { %v1421_v36 = vld [vmem:[#allocation5 + $0x27a8] sm:$0xff]  ;;  %2541 = vmatpush.msra.mxu2 %v1353_v35 }
 0x28c   :  { %v1221_v37 = vld [vmem:[#allocation5 + $0x2168] sm:$0xff]  ;;  %2560 = vmatpush.msra.mxu3 %v1421_v36 }
 0x28d   :  { %v1285_v38 = vld [vmem:[#allocation5 + $0x2368] sm:$0xff]  ;;  %2502 = vmatpush.msra.mxu0 %v1221_v37 }
 0x28e   :  { %v1349_v39 = vld [vmem:[#allocation5 + $0x2568] sm:$0xff]  ;;  %2522 = vmatpush.msra.mxu1 %v1285_v38 }
 0x28f   :  { %v1417_v40 = vld [vmem:[#allocation5 + $0x2788] sm:$0xff]  ;;  %2542 = vmatpush.msra.mxu2 %v1349_v39 }
 0x290   :  { %v1217_v41 = vld [vmem:[#allocation5 + $0x2148] sm:$0xff]  ;;  %2561 = vmatpush.msra.mxu3 %v1417_v40 }
 0x291   :  { %v1281_v42 = vld [vmem:[#allocation5 + $0x2348] sm:$0xff]  ;;  %2503 = vmatpush.msra.mxu0 %v1217_v41 }
 0x292   :  { %v1345_v43 = vld [vmem:[#allocation5 + $0x2548] sm:$0xff]  ;;  %2523 = vmatpush.msra.mxu1 %v1281_v42 }
 0x293   :  { %v1413_v44 = vld [vmem:[#allocation5 + $0x2768] sm:$0xff]  ;;  %2543 = vmatpush.msra.mxu2 %v1345_v43 }
 0x294   :  { %v1213_v45 = vld [vmem:[#allocation5 + $0x2128] sm:$0xff]  ;;  %2562 = vmatpush.msra.mxu3 %v1413_v44 }
 0x295   :  { %v1277_v46 = vld [vmem:[#allocation5 + $0x2328] sm:$0xff]  ;;  %2504 = vmatpush.msra.mxu0 %v1213_v45 }
 0x296   :  { %v1341_v47 = vld [vmem:[#allocation5 + $0x2528] sm:$0xff]  ;;  %2524 = vmatpush.msra.mxu1 %v1277_v46 }
 0x297   :  { %v1409_v48 = vld [vmem:[#allocation5 + $0x2748] sm:$0xff]  ;;  %2544 = vmatpush.msra.mxu2 %v1341_v47 }
 0x298   :  { %v1209_v49 = vld [vmem:[#allocation5 + $0x2108] sm:$0xff]  ;;  %2563 = vmatpush.msra.mxu3 %v1409_v48 }
 0x299   :  { %v1273_v50 = vld [vmem:[#allocation5 + $0x2308] sm:$0xff]  ;;  %2505 = vmatpush.msra.mxu0 %v1209_v49 }
 0x29a   :  { %v1337_v51 = vld [vmem:[#allocation5 + $0x2508] sm:$0xff]  ;;  %2525 = vmatpush.msra.mxu1 %v1273_v50 }
 0x29b   :  { %v1405_v52 = vld [vmem:[#allocation5 + $0x2728] sm:$0xff]  ;;  %2545 = vmatpush.msra.mxu2 %v1337_v51 }
 0x29c   :  { %v1205_v53 = vld [vmem:[#allocation5 + $0x20e8] sm:$0xff]  ;;  %2564 = vmatpush.msra.mxu3 %v1405_v52 }
 0x29d   :  { %v1269_v54 = vld [vmem:[#allocation5 + $0x22e8] sm:$0xff]  ;;  %2506 = vmatpush.msra.mxu0 %v1205_v53 }
 0x29e   :  { %v1333_v55 = vld [vmem:[#allocation5 + $0x24e8] sm:$0xff]  ;;  %2526 = vmatpush.msra.mxu1 %v1269_v54 }
 0x29f   :  { %v1401_v56 = vld [vmem:[#allocation5 + $0x2708] sm:$0xff]  ;;  %2546 = vmatpush.msra.mxu2 %v1333_v55 }
 0x2a0   :  { %v1201_v57 = vld [vmem:[#allocation5 + $0x20c8] sm:$0xff]  ;;  %2565 = vmatpush.msra.mxu3 %v1401_v56 }
 0x2a1   :  { %v1265_v58 = vld [vmem:[#allocation5 + $0x22c8] sm:$0xff]  ;;  %2507 = vmatpush.msra.mxu0 %v1201_v57 }
 0x2a2   :  { %v1329_v59 = vld [vmem:[#allocation5 + $0x24c8] sm:$0xff]  ;;  %2527 = vmatpush.msra.mxu1 %v1265_v58 }
 0x2a3   :  { %v1397_v60 = vld [vmem:[#allocation5 + $0x26e8] sm:$0xff]  ;;  %2547 = vmatpush.msra.mxu2 %v1329_v59 }
 0x2a4   :  { %v1197_v61 = vld [vmem:[#allocation5 + $0x20a8] sm:$0xff]  ;;  %2566 = vmatpush.msra.mxu3 %v1397_v60 }
 0x2a5   :  { %v1261_v62 = vld [vmem:[#allocation5 + $0x22a8] sm:$0xff]  ;;  %2508 = vmatpush.msra.mxu0 %v1197_v61 }
 0x2a6   :  { %v1325_v63 = vld [vmem:[#allocation5 + $0x24a8] sm:$0xff]  ;;  %2528 = vmatpush.msra.mxu1 %v1261_v62 }
 0x2a7   :  { %v1393_v0 = vld [vmem:[#allocation5 + $0x26c8] sm:$0xff]  ;;  %2548 = vmatpush.msra.mxu2 %v1325_v63 }
 0x2a8   :  { %v1193_v1 = vld [vmem:[#allocation5 + $0x2088] sm:$0xff]  ;;  %2567 = vmatpush.msra.mxu3 %v1393_v0 }
 0x2a9   :  { %v1257_v2 = vld [vmem:[#allocation5 + $0x2288] sm:$0xff]  ;;  %2509 = vmatpush.msra.mxu0 %v1193_v1 }
 0x2aa   :  { %v1321_v3 = vld [vmem:[#allocation5 + $0x2488] sm:$0xff]  ;;  %2529 = vmatpush.msra.mxu1 %v1257_v2 }
 0x2ab   :  { %v1389_v4 = vld [vmem:[#allocation5 + $0x26a8] sm:$0xff]  ;;  %2549 = vmatpush.msra.mxu2 %v1321_v3 }
 0x2ac   :  { %v1189_v5 = vld [vmem:[#allocation5 + $0x2068] sm:$0xff]  ;;  %2568 = vmatpush.msra.mxu3 %v1389_v4 }
 0x2ad   :  { %v1253_v6 = vld [vmem:[#allocation5 + $0x2268] sm:$0xff]  ;;  %2510 = vmatpush.msra.mxu0 %v1189_v5 }
 0x2ae   :  { %v1317_v7 = vld [vmem:[#allocation5 + $0x2468] sm:$0xff]  ;;  %2530 = vmatpush.msra.mxu1 %v1253_v6 }
 0x2af   :  { %v1385_v8 = vld [vmem:[#allocation5 + $0x2688] sm:$0xff]  ;;  %2550 = vmatpush.msra.mxu2 %v1317_v7 }
 0x2b0   :  { %v1185_v9 = vld [vmem:[#allocation5 + $0x2048] sm:$0xff]  ;;  %2569 = vmatpush.msra.mxu3 %v1385_v8 }
 0x2b1   :  { %v1249_v11 = vld [vmem:[#allocation5 + $0x2248] sm:$0xff]  ;;  %2511 = vmatpush.msra.mxu0 %v1185_v9 }
 0x2b2   :  { %v1313_v13 = vld [vmem:[#allocation5 + $0x2448] sm:$0xff]  ;;  %2531 = vmatpush.msra.mxu1 %v1249_v11 }
 0x2b3   :  { %v1381_v12 = vld [vmem:[#allocation5 + $0x2668] sm:$0xff]  ;;  %2551 = vmatpush.msra.mxu2 %v1313_v13 }
 0x2b4   :  { %v1181_v14 = vld [vmem:[#allocation5 + $0x2028] sm:$0xff]  ;;  %2570 = vmatpush.msra.mxu3 %v1381_v12 }
 0x2b5   :  { %v1245_v15 = vld [vmem:[#allocation5 + $0x2228] sm:$0xff]  ;;  %2512 = vmatpush.msra.mxu0 %v1181_v14 }
 0x2b6   :  { %v1309_v16 = vld [vmem:[#allocation5 + $0x2428] sm:$0xff]  ;;  %2532 = vmatpush.msra.mxu1 %v1245_v15 }
 0x2b7   :  { %v1377_v17 = vld [vmem:[#allocation5 + $0x2648] sm:$0xff]  ;;  %2552 = vmatpush.msra.mxu2 %v1309_v16 }
 0x2b8   :  { %v1177_v18 = vld [vmem:[#allocation5 + $0x2008] sm:$0xff]  ;;  %2571 = vmatpush.msra.mxu3 %v1377_v17 }
 0x2b9   :  { %v1241_v19 = vld [vmem:[#allocation5 + $0x2208] sm:$0xff]  ;;  %2513 = vmatpush.msra.mxu0 %v1177_v18 }
 0x2ba   :  { %v1305_v20 = vld [vmem:[#allocation5 + $0x2408] sm:$0xff]  ;;  %2533 = vmatpush.msra.mxu1 %v1241_v19  ;;  %2514 = vmatmul.f32.vlgmr.msra.gmra.mxu0 %v3862_v26 }
 0x2bb   :  { %v1373_v21 = vld [vmem:[#allocation5 + $0x2628] sm:$0xff]  ;;  %2553 = vmatpush.msra.mxu2 %v1305_v20 }
 0x2bc   :  { %v1493_v22 = vld [vmem:[#allocation5 + $0x29e8] sm:$0xff]  ;;  %2572 = vmatpush.msra.mxu3 %v1373_v21  ;;  %2554 = vmatmul.f32.vlgmr.msra.gmra.mxu2 %v3863_v27  ;;  %v214_v27 = vld [vmem:[#allocation5 + $0x1f0] sm:$0xff] }
 0x2bd   :  { %v1557_v23 = vld [vmem:[#allocation5 + $0x2be8] sm:$0xff]  ;;  %2578 = vmatpush.msrb.mxu0 %v1493_v22 }
 0x2be   :  { %v1621_v24 = vld [vmem:[#allocation5 + $0x2de8] sm:$0xff]  ;;  %2598 = vmatpush.msrb.mxu1 %v1557_v23 }
 0x2bf   :  { %v1369_v25 = vld [vmem:[#allocation5 + $0x2608] sm:$0xff]  ;;  %2618 = vmatpush.msrb.mxu2 %v1621_v24 }
 0x2c0   :  { %v1489_v28 = vld [vmem:[#allocation5 + $0x29c8] sm:$0xff]  ;;  %2573 = vmatpush.msra.mxu3 %v1369_v25 }
 0x2c1   :  { %v1553_v29 = vld [vmem:[#allocation5 + $0x2bc8] sm:$0xff]  ;;  %2574 = vmatmul.f32.vlgmr.msra.gmra.mxu3 %v3865_v33  ;;  %2579 = vmatpush.msrb.mxu0 %v1489_v28  ;;  %v278_v28 = vld [vmem:[#allocation5 + $0x3f0] sm:$0xff] }
 0x2c2   :  { %v1617_v30 = vld [vmem:[#allocation5 + $0x2dc8] sm:$0xff]  ;;  %2599 = vmatpush.msrb.mxu1 %v1553_v29  ;;  %v342_v29 = vld [vmem:[#allocation5 + $0x5f0] sm:$0xff] }
 0x2c3   :  { %v1685_v31 = vld [vmem:[#allocation5 + $0x2fe8] sm:$0xff]  ;;  %2619 = vmatpush.msrb.mxu2 %v1617_v30  ;;  %v210_v33 = vld [vmem:[#allocation5 + $0x1d0] sm:$0xff] }
 0x2c4   :  { %v3864_v32 = vld [vmem:[#allocation2 + $0x88] sm:$0xff]  ;;  %2638 = vmatpush.msrb.mxu3 %v1685_v31  ;;  %v3866_v31 = vld [vmem:[#allocation2 + $0xa0] sm:$0xff] }
 0x2c5   :  { %2534 = vmatmul.f32.vlgmr.msra.gmra.mxu1 %v3864_v32  ;;  %v1485_v34 = vld [vmem:[#allocation5 + $0x29a8] sm:$0xff]  ;;  %v3867_v32 = vld [vmem:[#allocation2 + $0xb0] sm:$0xff] }
 0x2c6   :  { %v1549_v35 = vld [vmem:[#allocation5 + $0x2ba8] sm:$0xff]  ;;  %2580 = vmatpush.msrb.mxu0 %v1485_v34  ;;  %v274_v34 = vld [vmem:[#allocation5 + $0x3d0] sm:$0xff] }
 0x2c7   :  { %v1613_v36 = vld [vmem:[#allocation5 + $0x2da8] sm:$0xff]  ;;  %2600 = vmatpush.msrb.mxu1 %v1549_v35  ;;  %v338_v35 = vld [vmem:[#allocation5 + $0x5d0] sm:$0xff] }
 0x2c8   :  { %v1681_v37 = vld [vmem:[#allocation5 + $0x2fc8] sm:$0xff]  ;;  %2620 = vmatpush.msrb.mxu2 %v1613_v36  ;;  %v406_v36 = vld [vmem:[#allocation5 + $0x7f0] sm:$0xff] }
 0x2c9   :  { %v1481_v38 = vld [vmem:[#allocation5 + $0x2988] sm:$0xff]  ;;  %2639 = vmatpush.msrb.mxu3 %v1681_v37 }
 0x2ca   :  { %v1545_v39 = vld [vmem:[#allocation5 + $0x2b88] sm:$0xff]  ;;  %2581 = vmatpush.msrb.mxu0 %v1481_v38  ;;  %v3869_v38 = vld [vmem:[#allocation2 + $0xb8] sm:$0xff] }
 0x2cb   :  { %v1609_v40 = vld [vmem:[#allocation5 + $0x2d88] sm:$0xff]  ;;  %2601 = vmatpush.msrb.mxu1 %v1545_v39  ;;  %v206_v39 = vld [vmem:[#allocation5 + $0x1b0] sm:$0xff] }
 0x2cc   :  { %v1677_v41 = vld [vmem:[#allocation5 + $0x2fa8] sm:$0xff]  ;;  %2621 = vmatpush.msrb.mxu2 %v1609_v40  ;;  %v270_v40 = vld [vmem:[#allocation5 + $0x3b0] sm:$0xff] }
 0x2cd   :  { %v1477_v42 = vld [vmem:[#allocation5 + $0x2968] sm:$0xff]  ;;  %2640 = vmatpush.msrb.mxu3 %v1677_v41  ;;  %v334_v41 = vld [vmem:[#allocation5 + $0x5b0] sm:$0xff] }
 0x2ce   :  { %v1541_v43 = vld [vmem:[#allocation5 + $0x2b68] sm:$0xff]  ;;  %2582 = vmatpush.msrb.mxu0 %v1477_v42  ;;  %v402_v42 = vld [vmem:[#allocation5 + $0x7d0] sm:$0xff] }
 0x2cf   :  { %v1605_v44 = vld [vmem:[#allocation5 + $0x2d68] sm:$0xff]  ;;  %2602 = vmatpush.msrb.mxu1 %v1541_v43  ;;  %v202_v43 = vld [vmem:[#allocation5 + $0x190] sm:$0xff] }
 0x2d0   :  { %v1673_v45 = vld [vmem:[#allocation5 + $0x2f88] sm:$0xff]  ;;  %2622 = vmatpush.msrb.mxu2 %v1605_v44  ;;  %v266_v44 = vld [vmem:[#allocation5 + $0x390] sm:$0xff] }
 0x2d1   :  { %v1473_v46 = vld [vmem:[#allocation5 + $0x2948] sm:$0xff]  ;;  %2641 = vmatpush.msrb.mxu3 %v1673_v45  ;;  %v330_v45 = vld [vmem:[#allocation5 + $0x590] sm:$0xff] }
 0x2d2   :  { %v1537_v47 = vld [vmem:[#allocation5 + $0x2b48] sm:$0xff]  ;;  %2583 = vmatpush.msrb.mxu0 %v1473_v46  ;;  %v398_v46 = vld [vmem:[#allocation5 + $0x7b0] sm:$0xff] }
 0x2d3   :  { %v1601_v48 = vld [vmem:[#allocation5 + $0x2d48] sm:$0xff]  ;;  %2603 = vmatpush.msrb.mxu1 %v1537_v47  ;;  %v198_v47 = vld [vmem:[#allocation5 + $0x170] sm:$0xff] }
 0x2d4   :  { %v1669_v49 = vld [vmem:[#allocation5 + $0x2f68] sm:$0xff]  ;;  %2623 = vmatpush.msrb.mxu2 %v1601_v48  ;;  %v262_v48 = vld [vmem:[#allocation5 + $0x370] sm:$0xff] }
 0x2d5   :  { %v1469_v50 = vld [vmem:[#allocation5 + $0x2928] sm:$0xff]  ;;  %2642 = vmatpush.msrb.mxu3 %v1669_v49  ;;  %v326_v49 = vld [vmem:[#allocation5 + $0x570] sm:$0xff] }
 0x2d6   :  { %v1533_v51 = vld [vmem:[#allocation5 + $0x2b28] sm:$0xff]  ;;  %2584 = vmatpush.msrb.mxu0 %v1469_v50  ;;  %v394_v50 = vld [vmem:[#allocation5 + $0x790] sm:$0xff] }
 0x2d7   :  { %v1597_v52 = vld [vmem:[#allocation5 + $0x2d28] sm:$0xff]  ;;  %2604 = vmatpush.msrb.mxu1 %v1533_v51  ;;  %v194_v51 = vld [vmem:[#allocation5 + $0x150] sm:$0xff] }
 0x2d8   :  { %v1665_v53 = vld [vmem:[#allocation5 + $0x2f48] sm:$0xff]  ;;  %2624 = vmatpush.msrb.mxu2 %v1597_v52  ;;  %v258_v52 = vld [vmem:[#allocation5 + $0x350] sm:$0xff] }
 0x2d9   :  { %v1465_v54 = vld [vmem:[#allocation5 + $0x2908] sm:$0xff]  ;;  %2643 = vmatpush.msrb.mxu3 %v1665_v53  ;;  %v322_v53 = vld [vmem:[#allocation5 + $0x550] sm:$0xff] }
 0x2da   :  { %v1529_v55 = vld [vmem:[#allocation5 + $0x2b08] sm:$0xff]  ;;  %2585 = vmatpush.msrb.mxu0 %v1465_v54  ;;  %v390_v54 = vld [vmem:[#allocation5 + $0x770] sm:$0xff] }
 0x2db   :  { %v1593_v56 = vld [vmem:[#allocation5 + $0x2d08] sm:$0xff]  ;;  %2605 = vmatpush.msrb.mxu1 %v1529_v55  ;;  %v190_v55 = vld [vmem:[#allocation5 + $0x130] sm:$0xff] }
 0x2dc   :  { %v1661_v57 = vld [vmem:[#allocation5 + $0x2f28] sm:$0xff]  ;;  %2625 = vmatpush.msrb.mxu2 %v1593_v56  ;;  %v254_v56 = vld [vmem:[#allocation5 + $0x330] sm:$0xff] }
 0x2dd   :  { %v1461_v58 = vld [vmem:[#allocation5 + $0x28e8] sm:$0xff]  ;;  %2644 = vmatpush.msrb.mxu3 %v1661_v57  ;;  %v318_v57 = vld [vmem:[#allocation5 + $0x530] sm:$0xff] }
 0x2de   :  { %v1525_v59 = vld [vmem:[#allocation5 + $0x2ae8] sm:$0xff]  ;;  %2586 = vmatpush.msrb.mxu0 %v1461_v58  ;;  %v386_v58 = vld [vmem:[#allocation5 + $0x750] sm:$0xff] }
 0x2df   :  { %v1589_v60 = vld [vmem:[#allocation5 + $0x2ce8] sm:$0xff]  ;;  %2606 = vmatpush.msrb.mxu1 %v1525_v59  ;;  %v186_v59 = vld [vmem:[#allocation5 + $0x110] sm:$0xff] }
 0x2e0   :  { %v1657_v61 = vld [vmem:[#allocation5 + $0x2f08] sm:$0xff]  ;;  %2626 = vmatpush.msrb.mxu2 %v1589_v60  ;;  %v250_v60 = vld [vmem:[#allocation5 + $0x310] sm:$0xff] }
 0x2e1   :  { %v1457_v62 = vld [vmem:[#allocation5 + $0x28c8] sm:$0xff]  ;;  %2645 = vmatpush.msrb.mxu3 %v1657_v61  ;;  %v314_v61 = vld [vmem:[#allocation5 + $0x510] sm:$0xff] }
 0x2e2   :  { %v1521_v63 = vld [vmem:[#allocation5 + $0x2ac8] sm:$0xff]  ;;  %2587 = vmatpush.msrb.mxu0 %v1457_v62  ;;  %v382_v62 = vld [vmem:[#allocation5 + $0x730] sm:$0xff] }
 0x2e3   :  { %v1585_v0 = vld [vmem:[#allocation5 + $0x2cc8] sm:$0xff]  ;;  %2607 = vmatpush.msrb.mxu1 %v1521_v63  ;;  %v182_v63 = vld [vmem:[#allocation5 + $0xf0] sm:$0xff] }
 0x2e4   :  { %v1653_v1 = vld [vmem:[#allocation5 + $0x2ee8] sm:$0xff]  ;;  %2627 = vmatpush.msrb.mxu2 %v1585_v0  ;;  %v246_v0 = vld [vmem:[#allocation5 + $0x2f0] sm:$0xff] }
 0x2e5   :  { %v1453_v2 = vld [vmem:[#allocation5 + $0x28a8] sm:$0xff]  ;;  %2646 = vmatpush.msrb.mxu3 %v1653_v1  ;;  %v310_v1 = vld [vmem:[#allocation5 + $0x4f0] sm:$0xff] }
 0x2e6   :  { %v1517_v3 = vld [vmem:[#allocation5 + $0x2aa8] sm:$0xff]  ;;  %2588 = vmatpush.msrb.mxu0 %v1453_v2  ;;  %v378_v2 = vld [vmem:[#allocation5 + $0x710] sm:$0xff] }
 0x2e7   :  { %v1581_v4 = vld [vmem:[#allocation5 + $0x2ca8] sm:$0xff]  ;;  %2608 = vmatpush.msrb.mxu1 %v1517_v3  ;;  %v178_v3 = vld [vmem:[#allocation5 + $0xd0] sm:$0xff] }
 0x2e8   :  { %v1649_v5 = vld [vmem:[#allocation5 + $0x2ec8] sm:$0xff]  ;;  %2628 = vmatpush.msrb.mxu2 %v1581_v4  ;;  %v242_v4 = vld [vmem:[#allocation5 + $0x2d0] sm:$0xff] }
 0x2e9   :  { %v1449_v6 = vld [vmem:[#allocation5 + $0x2888] sm:$0xff]  ;;  %2647 = vmatpush.msrb.mxu3 %v1649_v5  ;;  %v306_v5 = vld [vmem:[#allocation5 + $0x4d0] sm:$0xff] }
 0x2ea   :  { %v1513_v7 = vld [vmem:[#allocation5 + $0x2a88] sm:$0xff]  ;;  %2589 = vmatpush.msrb.mxu0 %v1449_v6  ;;  %v374_v6 = vld [vmem:[#allocation5 + $0x6f0] sm:$0xff] }
 0x2eb   :  { %v1577_v8 = vld [vmem:[#allocation5 + $0x2c88] sm:$0xff]  ;;  %2609 = vmatpush.msrb.mxu1 %v1513_v7  ;;  %v174_v7 = vld [vmem:[#allocation5 + $0xb0] sm:$0xff] }
 0x2ec   :  { %v1645_v9 = vld [vmem:[#allocation5 + $0x2ea8] sm:$0xff]  ;;  %2629 = vmatpush.msrb.mxu2 %v1577_v8  ;;  %v238_v8 = vld [vmem:[#allocation5 + $0x2b0] sm:$0xff] }
 0x2ed   :  { %v1445_v11 = vld [vmem:[#allocation5 + $0x2868] sm:$0xff]  ;;  %2648 = vmatpush.msrb.mxu3 %v1645_v9  ;;  %v302_v9 = vld [vmem:[#allocation5 + $0x4b0] sm:$0xff] }
 0x2ee   :  { %v1509_v13 = vld [vmem:[#allocation5 + $0x2a68] sm:$0xff]  ;;  %2590 = vmatpush.msrb.mxu0 %v1445_v11  ;;  %v370_v11 = vld [vmem:[#allocation5 + $0x6d0] sm:$0xff] }
 0x2ef   :  { %v1573_v12 = vld [vmem:[#allocation5 + $0x2c68] sm:$0xff]  ;;  %2610 = vmatpush.msrb.mxu1 %v1509_v13  ;;  %v170_v13 = vld [vmem:[#allocation5 + $0x90] sm:$0xff] }
 0x2f0   :  { %v1641_v14 = vld [vmem:[#allocation5 + $0x2e88] sm:$0xff]  ;;  %2630 = vmatpush.msrb.mxu2 %v1573_v12  ;;  %v234_v12 = vld [vmem:[#allocation5 + $0x290] sm:$0xff] }
 0x2f1   :  { %v1441_v15 = vld [vmem:[#allocation5 + $0x2848] sm:$0xff]  ;;  %2649 = vmatpush.msrb.mxu3 %v1641_v14  ;;  %v298_v14 = vld [vmem:[#allocation5 + $0x490] sm:$0xff] }
 0x2f2   :  { %v1505_v16 = vld [vmem:[#allocation5 + $0x2a48] sm:$0xff]  ;;  %2591 = vmatpush.msrb.mxu0 %v1441_v15  ;;  %v366_v15 = vld [vmem:[#allocation5 + $0x6b0] sm:$0xff] }
 0x2f3   :  { %v1569_v17 = vld [vmem:[#allocation5 + $0x2c48] sm:$0xff]  ;;  %2611 = vmatpush.msrb.mxu1 %v1505_v16  ;;  %v166_v16 = vld [vmem:[#allocation5 + $0x70] sm:$0xff] }
 0x2f4   :  { %v1637_v18 = vld [vmem:[#allocation5 + $0x2e68] sm:$0xff]  ;;  %2631 = vmatpush.msrb.mxu2 %v1569_v17  ;;  %v230_v17 = vld [vmem:[#allocation5 + $0x270] sm:$0xff] }
 0x2f5   :  { %v1437_v19 = vld [vmem:[#allocation5 + $0x2828] sm:$0xff]  ;;  %2650 = vmatpush.msrb.mxu3 %v1637_v18  ;;  %v294_v18 = vld [vmem:[#allocation5 + $0x470] sm:$0xff] }
 0x2f6   :  { %v1501_v20 = vld [vmem:[#allocation5 + $0x2a28] sm:$0xff]  ;;  %2592 = vmatpush.msrb.mxu0 %v1437_v19  ;;  %v362_v19 = vld [vmem:[#allocation5 + $0x690] sm:$0xff] }
 0x2f7   :  { %v1565_v21 = vld [vmem:[#allocation5 + $0x2c28] sm:$0xff]  ;;  %2612 = vmatpush.msrb.mxu1 %v1501_v20  ;;  %v162_v20 = vld [vmem:[#allocation5 + $0x50] sm:$0xff] }
 0x2f8   :  { %v1633_v22 = vld [vmem:[#allocation5 + $0x2e48] sm:$0xff]  ;;  %2632 = vmatpush.msrb.mxu2 %v1565_v21  ;;  %v226_v21 = vld [vmem:[#allocation5 + $0x250] sm:$0xff] }
 0x2f9   :  { %v1433_v23 = vld [vmem:[#allocation5 + $0x2808] sm:$0xff]  ;;  %2651 = vmatpush.msrb.mxu3 %v1633_v22  ;;  %v290_v22 = vld [vmem:[#allocation5 + $0x450] sm:$0xff] }
 0x2fa   :  { %v1497_v24 = vld [vmem:[#allocation5 + $0x2a08] sm:$0xff]  ;;  %2593 = vmatpush.msrb.mxu0 %v1433_v23  ;;  %v358_v23 = vld [vmem:[#allocation5 + $0x670] sm:$0xff] }
 0x2fb   :  { %v1561_v25 = vld [vmem:[#allocation5 + $0x2c08] sm:$0xff]  ;;  %2613 = vmatpush.msrb.mxu1 %v1497_v24  ;;  %2594 = vmatmul.f32.vlgmr.msrb.gmra.mxu0 %v3866_v31  ;;  %v158_v24 = vld [vmem:[#allocation5 + $0x30] sm:$0xff] }
 0x2fc   :  { %v1629_v26 = vld [vmem:[#allocation5 + $0x2e28] sm:$0xff]  ;;  %2633 = vmatpush.msrb.mxu2 %v1561_v25  ;;  %2658 = vmatpush.msra.mxu0 %v214_v27  ;;  %v222_v25 = vld [vmem:[#allocation5 + $0x230] sm:$0xff] }
 0x2fd   :  { %2652 = vmatpush.msrb.mxu3 %v1629_v26  ;;  %v1625_v30 = vld [vmem:[#allocation5 + $0x2e08] sm:$0xff]  ;;  %2634 = vmatmul.f32.vlgmr.msrb.gmra.mxu2 %v3867_v32  ;;  %v286_v26 = vld [vmem:[#allocation5 + $0x430] sm:$0xff] }
 0x2fe   :  { %2678 = vmatpush.msra.mxu1 %v278_v28  ;;  %2698 = vmatpush.msra.mxu2 %v342_v29  ;;  %v3868_v37 = vld [vmem:[#allocation2 + $0xa8] sm:$0xff]  ;;  %v354_v27 = vld [vmem:[#allocation5 + $0x650] sm:$0xff] }
 0x2ff   :  { %2653 = vmatpush.msrb.mxu3 %v1625_v30  ;;  %2614 = vmatmul.f32.vlgmr.msrb.gmra.mxu1 %v3868_v37  ;;  %v154_v28 = vld [vmem:[#allocation5 + $0x10] sm:$0xff] }
 0x300   :  { %2654 = vmatmul.f32.vlgmr.msrb.gmra.mxu3 %v3869_v38  ;;  %2659 = vmatpush.msra.mxu0 %v210_v33  ;;  %v218_v29 = vld [vmem:[#allocation5 + $0x210] sm:$0xff] }
 0x301   :  { %2679 = vmatpush.msra.mxu1 %v274_v34  ;;  %2699 = vmatpush.msra.mxu2 %v338_v35  ;;  %v282_v30 = vld [vmem:[#allocation5 + $0x410] sm:$0xff] }
 0x302   :  { %2718 = vmatpush.msra.mxu3 %v406_v36  ;;  %2660 = vmatpush.msra.mxu0 %v206_v39  ;;  %v350_v31 = vld [vmem:[#allocation5 + $0x630] sm:$0xff] }
 0x303   :  { %2680 = vmatpush.msra.mxu1 %v270_v40  ;;  %2700 = vmatpush.msra.mxu2 %v334_v41  ;;  %v470_v32 = vld [vmem:[#allocation5 + $0x9f0] sm:$0xff] }
 0x304   :  { %2719 = vmatpush.msra.mxu3 %v402_v42  ;;  %2661 = vmatpush.msra.mxu0 %v202_v43  ;;  %v534_v33 = vld [vmem:[#allocation5 + $0xbf0] sm:$0xff] }
 0x305   :  { %2681 = vmatpush.msra.mxu1 %v266_v44  ;;  %2701 = vmatpush.msra.mxu2 %v330_v45  ;;  %v598_v34 = vld [vmem:[#allocation5 + $0xdf0] sm:$0xff] }
 0x306   :  { %2720 = vmatpush.msra.mxu3 %v398_v46  ;;  %2662 = vmatpush.msra.mxu0 %v198_v47  ;;  %v346_v35 = vld [vmem:[#allocation5 + $0x610] sm:$0xff] }
 0x307   :  { %2682 = vmatpush.msra.mxu1 %v262_v48  ;;  %2702 = vmatpush.msra.mxu2 %v326_v49  ;;  %v466_v36 = vld [vmem:[#allocation5 + $0x9d0] sm:$0xff] }
 0x308   :  { %2721 = vmatpush.msra.mxu3 %v394_v50  ;;  %2663 = vmatpush.msra.mxu0 %v194_v51  ;;  %v530_v37 = vld [vmem:[#allocation5 + $0xbd0] sm:$0xff] }
 0x309   :  { %2683 = vmatpush.msra.mxu1 %v258_v52  ;;  %2703 = vmatpush.msra.mxu2 %v322_v53  ;;  %v594_v38 = vld [vmem:[#allocation5 + $0xdd0] sm:$0xff] }
 0x30a   :  { %2722 = vmatpush.msra.mxu3 %v390_v54  ;;  %2664 = vmatpush.msra.mxu0 %v190_v55  ;;  %v662_v39 = vld [vmem:[#allocation5 + $0xff0] sm:$0xff] }
 0x30b   :  { %2684 = vmatpush.msra.mxu1 %v254_v56  ;;  %2704 = vmatpush.msra.mxu2 %v318_v57  ;;  %v462_v40 = vld [vmem:[#allocation5 + $0x9b0] sm:$0xff] }
 0x30c   :  { %2723 = vmatpush.msra.mxu3 %v386_v58  ;;  %2665 = vmatpush.msra.mxu0 %v186_v59  ;;  %v526_v41 = vld [vmem:[#allocation5 + $0xbb0] sm:$0xff] }
 0x30d   :  { %2685 = vmatpush.msra.mxu1 %v250_v60  ;;  %2705 = vmatpush.msra.mxu2 %v314_v61  ;;  %v590_v42 = vld [vmem:[#allocation5 + $0xdb0] sm:$0xff] }
 0x30e   :  { %2724 = vmatpush.msra.mxu3 %v382_v62  ;;  %2666 = vmatpush.msra.mxu0 %v182_v63  ;;  %v658_v43 = vld [vmem:[#allocation5 + $0xfd0] sm:$0xff] }
 0x30f   :  { %2686 = vmatpush.msra.mxu1 %v246_v0  ;;  %2706 = vmatpush.msra.mxu2 %v310_v1  ;;  %v458_v44 = vld [vmem:[#allocation5 + $0x990] sm:$0xff] }
 0x310   :  { %2725 = vmatpush.msra.mxu3 %v378_v2  ;;  %2667 = vmatpush.msra.mxu0 %v178_v3  ;;  %v522_v45 = vld [vmem:[#allocation5 + $0xb90] sm:$0xff] }
 0x311   :  { %2687 = vmatpush.msra.mxu1 %v242_v4  ;;  %2707 = vmatpush.msra.mxu2 %v306_v5  ;;  %v586_v46 = vld [vmem:[#allocation5 + $0xd90] sm:$0xff] }
 0x312   :  { %2726 = vmatpush.msra.mxu3 %v374_v6  ;;  %2668 = vmatpush.msra.mxu0 %v174_v7  ;;  %v654_v47 = vld [vmem:[#allocation5 + $0xfb0] sm:$0xff] }
 0x313   :  { %2688 = vmatpush.msra.mxu1 %v238_v8  ;;  %2708 = vmatpush.msra.mxu2 %v302_v9  ;;  %v454_v48 = vld [vmem:[#allocation5 + $0x970] sm:$0xff] }
 0x314   :  { %2727 = vmatpush.msra.mxu3 %v370_v11  ;;  %2669 = vmatpush.msra.mxu0 %v170_v13  ;;  %v518_v49 = vld [vmem:[#allocation5 + $0xb70] sm:$0xff] }
 0x315   :  { %2689 = vmatpush.msra.mxu1 %v234_v12  ;;  %2709 = vmatpush.msra.mxu2 %v298_v14  ;;  %v582_v50 = vld [vmem:[#allocation5 + $0xd70] sm:$0xff] }
 0x316   :  { %2728 = vmatpush.msra.mxu3 %v366_v15  ;;  %2670 = vmatpush.msra.mxu0 %v166_v16  ;;  %v650_v51 = vld [vmem:[#allocation5 + $0xf90] sm:$0xff] }
 0x317   :  { %2690 = vmatpush.msra.mxu1 %v230_v17  ;;  %2710 = vmatpush.msra.mxu2 %v294_v18  ;;  %v450_v52 = vld [vmem:[#allocation5 + $0x950] sm:$0xff] }
 0x318   :  { %2729 = vmatpush.msra.mxu3 %v362_v19  ;;  %2671 = vmatpush.msra.mxu0 %v162_v20  ;;  %v514_v53 = vld [vmem:[#allocation5 + $0xb50] sm:$0xff] }
 0x319   :  { %2691 = vmatpush.msra.mxu1 %v226_v21  ;;  %2711 = vmatpush.msra.mxu2 %v290_v22  ;;  %v578_v54 = vld [vmem:[#allocation5 + $0xd50] sm:$0xff] }
 0x31a   :  { %2730 = vmatpush.msra.mxu3 %v358_v23  ;;  %2672 = vmatpush.msra.mxu0 %v158_v24  ;;  %v646_v55 = vld [vmem:[#allocation5 + $0xf70] sm:$0xff] }
 0x31b   :  { %2692 = vmatpush.msra.mxu1 %v222_v25  ;;  %2712 = vmatpush.msra.mxu2 %v286_v26  ;;  %v446_v56 = vld [vmem:[#allocation5 + $0x930] sm:$0xff] }
 0x31c   :  { %2731 = vmatpush.msra.mxu3 %v354_v27  ;;  %2673 = vmatpush.msra.mxu0 %v154_v28  ;;  %v510_v57 = vld [vmem:[#allocation5 + $0xb30] sm:$0xff] }
 0x31d   :  { %2693 = vmatpush.msra.mxu1 %v218_v29  ;;  %2713 = vmatpush.msra.mxu2 %v282_v30  ;;  %v574_v58 = vld [vmem:[#allocation5 + $0xd30] sm:$0xff] }
 0x31e   :  { %2732 = vmatpush.msra.mxu3 %v350_v31  ;;  %2738 = vmatpush.msrb.mxu0 %v470_v32  ;;  %v642_v59 = vld [vmem:[#allocation5 + $0xf50] sm:$0xff] }
 0x31f   :  { %2758 = vmatpush.msrb.mxu1 %v534_v33  ;;  %2778 = vmatpush.msrb.mxu2 %v598_v34  ;;  %v442_v60 = vld [vmem:[#allocation5 + $0x910] sm:$0xff] }
 0x320   :  { %2733 = vmatpush.msra.mxu3 %v346_v35  ;;  %2739 = vmatpush.msrb.mxu0 %v466_v36  ;;  %v506_v61 = vld [vmem:[#allocation5 + $0xb10] sm:$0xff]  ;;  %v3870_v36 = vld [vmem:[#allocation2] sm:$0xff] }
 0x321   :  { %2759 = vmatpush.msrb.mxu1 %v530_v37  ;;  %2779 = vmatpush.msrb.mxu2 %v594_v38  ;;  %v570_v62 = vld [vmem:[#allocation5 + $0xd10] sm:$0xff]  ;;  %v3871_v37 = vld [vmem:[#allocation2 + $0x8] sm:$0xff] }
 0x322   :  { %2798 = vmatpush.msrb.mxu3 %v662_v39  ;;  %2740 = vmatpush.msrb.mxu0 %v462_v40  ;;  %v638_v63 = vld [vmem:[#allocation5 + $0xf30] sm:$0xff] }
 0x323   :  { %2760 = vmatpush.msrb.mxu1 %v526_v41  ;;  %2780 = vmatpush.msrb.mxu2 %v590_v42  ;;  %v438_v0 = vld [vmem:[#allocation5 + $0x8f0] sm:$0xff] }
 0x324   :  { %2799 = vmatpush.msrb.mxu3 %v658_v43  ;;  %2741 = vmatpush.msrb.mxu0 %v458_v44  ;;  %v502_v1 = vld [vmem:[#allocation5 + $0xaf0] sm:$0xff] }
 0x325   :  { %2761 = vmatpush.msrb.mxu1 %v522_v45  ;;  %2781 = vmatpush.msrb.mxu2 %v586_v46  ;;  %v566_v2 = vld [vmem:[#allocation5 + $0xcf0] sm:$0xff]  ;;  %v3873_v46 = vld [vmem:[#allocation2 + $0x18] sm:$0xff] }
 0x326   :  { %2800 = vmatpush.msrb.mxu3 %v654_v47  ;;  %2742 = vmatpush.msrb.mxu0 %v454_v48  ;;  %v634_v3 = vld [vmem:[#allocation5 + $0xf10] sm:$0xff] }
 0x327   :  { %2762 = vmatpush.msrb.mxu1 %v518_v49  ;;  %2782 = vmatpush.msrb.mxu2 %v582_v50  ;;  %v434_v4 = vld [vmem:[#allocation5 + $0x8d0] sm:$0xff] }
 0x328   :  { %2801 = vmatpush.msrb.mxu3 %v650_v51  ;;  %2743 = vmatpush.msrb.mxu0 %v450_v52  ;;  %v498_v5 = vld [vmem:[#allocation5 + $0xad0] sm:$0xff] }
 0x329   :  { %2763 = vmatpush.msrb.mxu1 %v514_v53  ;;  %2783 = vmatpush.msrb.mxu2 %v578_v54  ;;  %v562_v6 = vld [vmem:[#allocation5 + $0xcd0] sm:$0xff] }
 0x32a   :  { %2802 = vmatpush.msrb.mxu3 %v646_v55  ;;  %2744 = vmatpush.msrb.mxu0 %v446_v56  ;;  %v630_v7 = vld [vmem:[#allocation5 + $0xef0] sm:$0xff] }
 0x32b   :  { %2764 = vmatpush.msrb.mxu1 %v510_v57  ;;  %2784 = vmatpush.msrb.mxu2 %v574_v58  ;;  %v430_v8 = vld [vmem:[#allocation5 + $0x8b0] sm:$0xff] }
 0x32c   :  { %2803 = vmatpush.msrb.mxu3 %v642_v59  ;;  %2745 = vmatpush.msrb.mxu0 %v442_v60  ;;  %v494_v9 = vld [vmem:[#allocation5 + $0xab0] sm:$0xff] }
 0x32d   :  { %2765 = vmatpush.msrb.mxu1 %v506_v61  ;;  %2785 = vmatpush.msrb.mxu2 %v570_v62  ;;  %v558_v11 = vld [vmem:[#allocation5 + $0xcb0] sm:$0xff]  ;;  %v3875_v61 = vld [vmem:[#allocation2 + $0x20] sm:$0xff] }
 0x32e   :  { %2804 = vmatpush.msrb.mxu3 %v638_v63  ;;  %2746 = vmatpush.msrb.mxu0 %v438_v0  ;;  %v626_v13 = vld [vmem:[#allocation5 + $0xed0] sm:$0xff]  ;;  %v3876_v63 = vld [vmem:[#allocation2 + $0x38] sm:$0xff] }
 0x32f   :  { %2766 = vmatpush.msrb.mxu1 %v502_v1  ;;  %2786 = vmatpush.msrb.mxu2 %v566_v2  ;;  %v426_v12 = vld [vmem:[#allocation5 + $0x890] sm:$0xff] }
 0x330   :  { %2805 = vmatpush.msrb.mxu3 %v634_v3  ;;  %2747 = vmatpush.msrb.mxu0 %v434_v4  ;;  %v490_v14 = vld [vmem:[#allocation5 + $0xa90] sm:$0xff]  ;;  %v3877_v4 = vld [vmem:[#allocation2 + $0x28] sm:$0xff] }
 0x331   :  { %2767 = vmatpush.msrb.mxu1 %v498_v5  ;;  %2787 = vmatpush.msrb.mxu2 %v562_v6  ;;  %v554_v15 = vld [vmem:[#allocation5 + $0xc90] sm:$0xff] }
 0x332   :  { %2806 = vmatpush.msrb.mxu3 %v630_v7  ;;  %2748 = vmatpush.msrb.mxu0 %v430_v8  ;;  %v622_v16 = vld [vmem:[#allocation5 + $0xeb0] sm:$0xff] }
 0x333   :  { %2768 = vmatpush.msrb.mxu1 %v494_v9  ;;  %2788 = vmatpush.msrb.mxu2 %v558_v11  ;;  %v422_v17 = vld [vmem:[#allocation5 + $0x870] sm:$0xff] }
 0x334   :  { %2807 = vmatpush.msrb.mxu3 %v626_v13  ;;  %v486_v18 = vld [vmem:[#allocation5 + $0xa70] sm:$0xff]  ;;  %2749 = vmatpush.msrb.mxu0 %v426_v12 }
 0x335   :  { %2769 = vmatpush.msrb.mxu1 %v490_v14  ;;  %v550_v19 = vld [vmem:[#allocation5 + $0xc70] sm:$0xff]  ;;  %2789 = vmatpush.msrb.mxu2 %v554_v15 }
 0x336   :  { %v618_v20 = vld [vmem:[#allocation5 + $0xe90] sm:$0xff]  ;;  %2808 = vmatpush.msrb.mxu3 %v622_v16  ;;  %2750 = vmatpush.msrb.mxu0 %v422_v17 }
 0x337   :  { %v418_v21 = vld [vmem:[#allocation5 + $0x850] sm:$0xff]  ;;  %2770 = vmatpush.msrb.mxu1 %v486_v18  ;;  %2790 = vmatpush.msrb.mxu2 %v550_v19 }
 0x338   :  { %v482_v22 = vld [vmem:[#allocation5 + $0xa50] sm:$0xff]  ;;  %2809 = vmatpush.msrb.mxu3 %v618_v20  ;;  %2751 = vmatpush.msrb.mxu0 %v418_v21 }
 0x339   :  { %v546_v23 = vld [vmem:[#allocation5 + $0xc50] sm:$0xff]  ;;  %2771 = vmatpush.msrb.mxu1 %v482_v22  ;;  %2674 = vmatmul.f32.vlgmr.msra.gmra.mxu0 %v3870_v36 }
 0x33a   :  { %v614_v24 = vld [vmem:[#allocation5 + $0xe70] sm:$0xff]  ;;  %2791 = vmatpush.msrb.mxu2 %v546_v23  ;;  %2694 = vmatmul.f32.vlgmr.msra.gmra.mxu1 %v3871_v37 }
 0x33b   :  { %v414_v25 = vld [vmem:[#allocation5 + $0x830] sm:$0xff]  ;;  %2810 = vmatpush.msrb.mxu3 %v614_v24 }
 0x33c   :  { %v478_v26 = vld [vmem:[#allocation5 + $0xa30] sm:$0xff]  ;;  %2752 = vmatpush.msrb.mxu0 %v414_v25  ;;  %2734 = vmatmul.f32.vlgmr.msra.gmra.mxu3 %v3873_v46  ;;  %v3878_v46 = vld [vmem:[#allocation2 + $0x40] sm:$0xff] }
 0x33d   :  { %v542_v27 = vld [vmem:[#allocation5 + $0xc30] sm:$0xff]  ;;  %2772 = vmatpush.msrb.mxu1 %v478_v26 }
 0x33e   :  { %v610_v28 = vld [vmem:[#allocation5 + $0xe50] sm:$0xff]  ;;  %2792 = vmatpush.msrb.mxu2 %v542_v27 }
 0x33f   :  { %v410_v29 = vld [vmem:[#allocation5 + $0x810] sm:$0xff]  ;;  %2811 = vmatpush.msrb.mxu3 %v610_v28 }
 0x340   :  { %v474_v30 = vld [vmem:[#allocation5 + $0xa10] sm:$0xff]  ;;  %2753 = vmatpush.msrb.mxu0 %v410_v29 }
 0x341   :  { %v538_v31 = vld [vmem:[#allocation5 + $0xc10] sm:$0xff]  ;;  %2773 = vmatpush.msrb.mxu1 %v474_v30  ;;  %2754 = vmatmul.f32.vlgmr.msrb.gmra.mxu0 %v3875_v61 }
 0x342   :  { %v606_v32 = vld [vmem:[#allocation5 + $0xe30] sm:$0xff]  ;;  %2793 = vmatpush.msrb.mxu2 %v538_v31  ;;  %2774 = vmatmul.f32.vlgmr.msrb.gmra.mxu1 %v3877_v4 }
 0x343   :  { %v726_v33 = vld [vmem:[#allocation5 + $0x11f0] sm:$0xff]  ;;  %2812 = vmatpush.msrb.mxu3 %v606_v32 }
 0x344   :  { %v790_v34 = vld [vmem:[#allocation5 + $0x13f0] sm:$0xff]  ;;  %2818 = vmatpush.msra.mxu0 %v726_v33 }
 0x345   :  { %v854_v35 = vld [vmem:[#allocation5 + $0x15f0] sm:$0xff]  ;;  %2838 = vmatpush.msra.mxu1 %v790_v34 }
 0x346   :  { %v602_v38 = vld [vmem:[#allocation5 + $0xe10] sm:$0xff] }
 0x347   :  { %v722_v39 = vld [vmem:[#allocation5 + $0x11d0] sm:$0xff]  ;;  %2813 = vmatpush.msrb.mxu3 %v602_v38 }
 0x348   :  { %v3872_v40 = vld [vmem:[#allocation2 + $0x10] sm:$0xff]  ;;  %2819 = vmatpush.msra.mxu0 %v722_v39  ;;  %2814 = vmatmul.f32.vlgmr.msrb.gmra.mxu3 %v3876_v63 }
 0x349   :  { %2714 = vmatmul.f32.vlgmr.msra.gmra.mxu2 %v3872_v40  ;;  %v786_v41 = vld [vmem:[#allocation5 + $0x13d0] sm:$0xff] }
 0x34a   :  { %2858 = vmatpush.msra.mxu2 %v854_v35  ;;  %v850_v42 = vld [vmem:[#allocation5 + $0x15d0] sm:$0xff]  ;;  %2839 = vmatpush.msra.mxu1 %v786_v41 }
 0x34b   :  { %v918_v43 = vld [vmem:[#allocation5 + $0x17f0] sm:$0xff] }
 0x34c   :  { %v718_v44 = vld [vmem:[#allocation5 + $0x11b0] sm:$0xff]  ;;  %2859 = vmatpush.msra.mxu2 %v850_v42  ;;  %2878 = vmatpush.msra.mxu3 %v918_v43 }
 0x34d   :  { %v782_v45 = vld [vmem:[#allocation5 + $0x13b0] sm:$0xff]  ;;  %2820 = vmatpush.msra.mxu0 %v718_v44 }
 0x34e   :  { %v846_v47 = vld [vmem:[#allocation5 + $0x15b0] sm:$0xff]  ;;  %2840 = vmatpush.msra.mxu1 %v782_v45 }
 0x34f   :  { %v914_v48 = vld [vmem:[#allocation5 + $0x17d0] sm:$0xff]  ;;  %2860 = vmatpush.msra.mxu2 %v846_v47 }
 0x350   :  { %v714_v49 = vld [vmem:[#allocation5 + $0x1190] sm:$0xff]  ;;  %2879 = vmatpush.msra.mxu3 %v914_v48 }
 0x351   :  { %v778_v50 = vld [vmem:[#allocation5 + $0x1390] sm:$0xff]  ;;  %2821 = vmatpush.msra.mxu0 %v714_v49 }
 0x352   :  { %v842_v51 = vld [vmem:[#allocation5 + $0x1590] sm:$0xff]  ;;  %2841 = vmatpush.msra.mxu1 %v778_v50 }
 0x353   :  { %v910_v52 = vld [vmem:[#allocation5 + $0x17b0] sm:$0xff]  ;;  %2861 = vmatpush.msra.mxu2 %v842_v51 }
 0x354   :  { %v710_v53 = vld [vmem:[#allocation5 + $0x1170] sm:$0xff]  ;;  %2880 = vmatpush.msra.mxu3 %v910_v52  ;;  %v3880_v52 = vld [vmem:[#allocation2 + $0x48] sm:$0xff] }
 0x355   :  { %v774_v54 = vld [vmem:[#allocation5 + $0x1370] sm:$0xff]  ;;  %2822 = vmatpush.msra.mxu0 %v710_v53  ;;  %v3881_v53 = vld [vmem:[#allocation2 + $0x58] sm:$0xff] }
 0x356   :  { %v838_v55 = vld [vmem:[#allocation5 + $0x1570] sm:$0xff]  ;;  %2842 = vmatpush.msra.mxu1 %v774_v54 }
 0x357   :  { %v906_v56 = vld [vmem:[#allocation5 + $0x1790] sm:$0xff]  ;;  %2862 = vmatpush.msra.mxu2 %v838_v55 }
 0x358   :  { %v3874_v57 = vld [vmem:[#allocation2 + $0x30] sm:$0xff]  ;;  %2881 = vmatpush.msra.mxu3 %v906_v56 }
 0x359   :  { %2794 = vmatmul.f32.vlgmr.msrb.gmra.mxu2 %v3874_v57  ;;  %v706_v58 = vld [vmem:[#allocation5 + $0x1150] sm:$0xff] }
 0x35a   :  { %v770_v59 = vld [vmem:[#allocation5 + $0x1350] sm:$0xff]  ;;  %2823 = vmatpush.msra.mxu0 %v706_v58 }
 0x35b   :  { %v834_v60 = vld [vmem:[#allocation5 + $0x1550] sm:$0xff]  ;;  %2843 = vmatpush.msra.mxu1 %v770_v59 }
 0x35c   :  { %v902_v62 = vld [vmem:[#allocation5 + $0x1770] sm:$0xff]  ;;  %2863 = vmatpush.msra.mxu2 %v834_v60 }
 0x35d   :  { %v702_v0 = vld [vmem:[#allocation5 + $0x1130] sm:$0xff]  ;;  %2882 = vmatpush.msra.mxu3 %v902_v62 }
 0x35e   :  { %v766_v1 = vld [vmem:[#allocation5 + $0x1330] sm:$0xff]  ;;  %2824 = vmatpush.msra.mxu0 %v702_v0 }
 0x35f   :  { %v830_v2 = vld [vmem:[#allocation5 + $0x1530] sm:$0xff]  ;;  %2844 = vmatpush.msra.mxu1 %v766_v1 }
 0x360   :  { %v898_v3 = vld [vmem:[#allocation5 + $0x1750] sm:$0xff]  ;;  %2864 = vmatpush.msra.mxu2 %v830_v2 }
 0x361   :  { %v698_v5 = vld [vmem:[#allocation5 + $0x1110] sm:$0xff]  ;;  %2883 = vmatpush.msra.mxu3 %v898_v3 }
 0x362   :  { %v762_v6 = vld [vmem:[#allocation5 + $0x1310] sm:$0xff]  ;;  %2825 = vmatpush.msra.mxu0 %v698_v5 }
 0x363   :  { %v826_v7 = vld [vmem:[#allocation5 + $0x1510] sm:$0xff]  ;;  %2845 = vmatpush.msra.mxu1 %v762_v6 }
 0x364   :  { %v894_v8 = vld [vmem:[#allocation5 + $0x1730] sm:$0xff]  ;;  %2865 = vmatpush.msra.mxu2 %v826_v7 }
 0x365   :  { %v694_v9 = vld [vmem:[#allocation5 + $0x10f0] sm:$0xff]  ;;  %2884 = vmatpush.msra.mxu3 %v894_v8 }
 0x366   :  { %v758_v11 = vld [vmem:[#allocation5 + $0x12f0] sm:$0xff]  ;;  %2826 = vmatpush.msra.mxu0 %v694_v9 }
 0x367   :  { %v822_v13 = vld [vmem:[#allocation5 + $0x14f0] sm:$0xff]  ;;  %2846 = vmatpush.msra.mxu1 %v758_v11 }
 0x368   :  { %v890_v12 = vld [vmem:[#allocation5 + $0x1710] sm:$0xff]  ;;  %2866 = vmatpush.msra.mxu2 %v822_v13 }
 0x369   :  { %v690_v14 = vld [vmem:[#allocation5 + $0x10d0] sm:$0xff]  ;;  %2885 = vmatpush.msra.mxu3 %v890_v12 }
 0x36a   :  { %v754_v15 = vld [vmem:[#allocation5 + $0x12d0] sm:$0xff]  ;;  %2827 = vmatpush.msra.mxu0 %v690_v14 }
 0x36b   :  { %v818_v16 = vld [vmem:[#allocation5 + $0x14d0] sm:$0xff]  ;;  %2847 = vmatpush.msra.mxu1 %v754_v15 }
 0x36c   :  { %v886_v17 = vld [vmem:[#allocation5 + $0x16f0] sm:$0xff]  ;;  %2867 = vmatpush.msra.mxu2 %v818_v16 }
 0x36d   :  { %v686_v18 = vld [vmem:[#allocation5 + $0x10b0] sm:$0xff]  ;;  %2886 = vmatpush.msra.mxu3 %v886_v17 }
 0x36e   :  { %v750_v19 = vld [vmem:[#allocation5 + $0x12b0] sm:$0xff]  ;;  %2828 = vmatpush.msra.mxu0 %v686_v18 }
 0x36f   :  { %v814_v20 = vld [vmem:[#allocation5 + $0x14b0] sm:$0xff]  ;;  %2848 = vmatpush.msra.mxu1 %v750_v19 }
 0x370   :  { %v882_v21 = vld [vmem:[#allocation5 + $0x16d0] sm:$0xff]  ;;  %2868 = vmatpush.msra.mxu2 %v814_v20 }
 0x371   :  { %v682_v22 = vld [vmem:[#allocation5 + $0x1090] sm:$0xff]  ;;  %2887 = vmatpush.msra.mxu3 %v882_v21 }
 0x372   :  { %v746_v23 = vld [vmem:[#allocation5 + $0x1290] sm:$0xff]  ;;  %2829 = vmatpush.msra.mxu0 %v682_v22 }
 0x373   :  { %v810_v24 = vld [vmem:[#allocation5 + $0x1490] sm:$0xff]  ;;  %2849 = vmatpush.msra.mxu1 %v746_v23 }
 0x374   :  { %v878_v25 = vld [vmem:[#allocation5 + $0x16b0] sm:$0xff]  ;;  %2869 = vmatpush.msra.mxu2 %v810_v24 }
 0x375   :  { %v678_v26 = vld [vmem:[#allocation5 + $0x1070] sm:$0xff]  ;;  %2888 = vmatpush.msra.mxu3 %v878_v25 }
 0x376   :  { %v742_v27 = vld [vmem:[#allocation5 + $0x1270] sm:$0xff]  ;;  %2830 = vmatpush.msra.mxu0 %v678_v26 }
 0x377   :  { %v806_v28 = vld [vmem:[#allocation5 + $0x1470] sm:$0xff]  ;;  %2850 = vmatpush.msra.mxu1 %v742_v27 }
 0x378   :  { %v874_v29 = vld [vmem:[#allocation5 + $0x1690] sm:$0xff]  ;;  %2870 = vmatpush.msra.mxu2 %v806_v28 }
 0x379   :  { %v674_v30 = vld [vmem:[#allocation5 + $0x1050] sm:$0xff]  ;;  %2889 = vmatpush.msra.mxu3 %v874_v29 }
 0x37a   :  { %v738_v31 = vld [vmem:[#allocation5 + $0x1250] sm:$0xff]  ;;  %2831 = vmatpush.msra.mxu0 %v674_v30 }
 0x37b   :  { %v802_v32 = vld [vmem:[#allocation5 + $0x1450] sm:$0xff]  ;;  %2851 = vmatpush.msra.mxu1 %v738_v31 }
 0x37c   :  { %v870_v33 = vld [vmem:[#allocation5 + $0x1670] sm:$0xff]  ;;  %2871 = vmatpush.msra.mxu2 %v802_v32 }
 0x37d   :  { %v670_v34 = vld [vmem:[#allocation5 + $0x1030] sm:$0xff]  ;;  %2890 = vmatpush.msra.mxu3 %v870_v33 }
 0x37e   :  { %v734_v35 = vld [vmem:[#allocation5 + $0x1230] sm:$0xff]  ;;  %2832 = vmatpush.msra.mxu0 %v670_v34 }
 0x37f   :  { %v798_v36 = vld [vmem:[#allocation5 + $0x1430] sm:$0xff]  ;;  %2852 = vmatpush.msra.mxu1 %v734_v35 }
 0x380   :  { %v866_v37 = vld [vmem:[#allocation5 + $0x1650] sm:$0xff]  ;;  %2872 = vmatpush.msra.mxu2 %v798_v36 }
 0x381   :  { %v666_v38 = vld [vmem:[#allocation5 + $0x1010] sm:$0xff]  ;;  %2891 = vmatpush.msra.mxu3 %v866_v37 }
 0x382   :  { %v730_v39 = vld [vmem:[#allocation5 + $0x1210] sm:$0xff]  ;;  %2833 = vmatpush.msra.mxu0 %v666_v38 }
 0x383   :  { %v794_v40 = vld [vmem:[#allocation5 + $0x1410] sm:$0xff]  ;;  %2853 = vmatpush.msra.mxu1 %v730_v39  ;;  %2834 = vmatmul.f32.vlgmr.msra.gmra.mxu0 %v3878_v46 }
 0x384   :  { %v862_v41 = vld [vmem:[#allocation5 + $0x1630] sm:$0xff]  ;;  %2873 = vmatpush.msra.mxu2 %v794_v40  ;;  %2854 = vmatmul.f32.vlgmr.msra.gmra.mxu1 %v3880_v52 }
 0x385   :  { %v982_v42 = vld [vmem:[#allocation5 + $0x19f0] sm:$0xff]  ;;  %2892 = vmatpush.msra.mxu3 %v862_v41 }
 0x386   :  { %v1046_v43 = vld [vmem:[#allocation5 + $0x1bf0] sm:$0xff]  ;;  %2898 = vmatpush.msrb.mxu0 %v982_v42 }
 0x387   :  { %v1110_v44 = vld [vmem:[#allocation5 + $0x1df0] sm:$0xff]  ;;  %2918 = vmatpush.msrb.mxu1 %v1046_v43 }
 0x388   :  { %v858_v45 = vld [vmem:[#allocation5 + $0x1610] sm:$0xff]  ;;  %2938 = vmatpush.msrb.mxu2 %v1110_v44 }
 0x389   :  { %v3879_v47 = vld [vmem:[#allocation2 + $0x50] sm:$0xff]  ;;  %2893 = vmatpush.msra.mxu3 %v858_v45 }
 0x38a   :  { %2874 = vmatmul.f32.vlgmr.msra.gmra.mxu2 %v3879_v47  ;;  %v978_v48 = vld [vmem:[#allocation5 + $0x19d0] sm:$0xff]  ;;  %2894 = vmatmul.f32.vlgmr.msra.gmra.mxu3 %v3881_v53 }
 0x38b   :  { %v1042_v49 = vld [vmem:[#allocation5 + $0x1bd0] sm:$0xff]  ;;  %2899 = vmatpush.msrb.mxu0 %v978_v48 }
 0x38c   :  { %v1106_v50 = vld [vmem:[#allocation5 + $0x1dd0] sm:$0xff]  ;;  %2919 = vmatpush.msrb.mxu1 %v1042_v49 }
 0x38d   :  { %v1174_v51 = vld [vmem:[#allocation5 + $0x1ff0] sm:$0xff]  ;;  %2939 = vmatpush.msrb.mxu2 %v1106_v50 }
 0x38e   :  { %v974_v54 = vld [vmem:[#allocation5 + $0x19b0] sm:$0xff]  ;;  %2958 = vmatpush.msrb.mxu3 %v1174_v51  ;;  %v3882_v51 = vld [vmem:[#allocation2 + $0x60] sm:$0xff] }
 0x38f   :  { %v1038_v55 = vld [vmem:[#allocation5 + $0x1bb0] sm:$0xff]  ;;  %2900 = vmatpush.msrb.mxu0 %v974_v54 }
 0x390   :  { %v1102_v56 = vld [vmem:[#allocation5 + $0x1db0] sm:$0xff]  ;;  %2920 = vmatpush.msrb.mxu1 %v1038_v55 }
 0x391   :  { %v1170_v57 = vld [vmem:[#allocation5 + $0x1fd0] sm:$0xff]  ;;  %2940 = vmatpush.msrb.mxu2 %v1102_v56 }
 0x392   :  { %v970_v58 = vld [vmem:[#allocation5 + $0x1990] sm:$0xff]  ;;  %2959 = vmatpush.msrb.mxu3 %v1170_v57  ;;  %v3884_v57 = vld [vmem:[#allocation2 + $0x68] sm:$0xff] }
 0x393   :  { %v1034_v59 = vld [vmem:[#allocation5 + $0x1b90] sm:$0xff]  ;;  %2901 = vmatpush.msrb.mxu0 %v970_v58  ;;  %v3885_v58 = vld [vmem:[#allocation2 + $0x78] sm:$0xff] }
 0x394   :  { %v1098_v60 = vld [vmem:[#allocation5 + $0x1d90] sm:$0xff]  ;;  %2921 = vmatpush.msrb.mxu1 %v1034_v59 }
 0x395   :  { %v1166_v61 = vld [vmem:[#allocation5 + $0x1fb0] sm:$0xff]  ;;  %2941 = vmatpush.msrb.mxu2 %v1098_v60 }
 0x396   :  { %v966_v62 = vld [vmem:[#allocation5 + $0x1970] sm:$0xff]  ;;  %2960 = vmatpush.msrb.mxu3 %v1166_v61 }
 0x397   :  { %v1030_v63 = vld [vmem:[#allocation5 + $0x1b70] sm:$0xff]  ;;  %2902 = vmatpush.msrb.mxu0 %v966_v62 }
 0x398   :  { %v1094_v0 = vld [vmem:[#allocation5 + $0x1d70] sm:$0xff]  ;;  %2922 = vmatpush.msrb.mxu1 %v1030_v63 }
 0x399   :  { %v1162_v1 = vld [vmem:[#allocation5 + $0x1f90] sm:$0xff]  ;;  %2942 = vmatpush.msrb.mxu2 %v1094_v0 }
 0x39a   :  { %v962_v2 = vld [vmem:[#allocation5 + $0x1950] sm:$0xff]  ;;  %2961 = vmatpush.msrb.mxu3 %v1162_v1 }
 0x39b   :  { %v1026_v3 = vld [vmem:[#allocation5 + $0x1b50] sm:$0xff]  ;;  %2903 = vmatpush.msrb.mxu0 %v962_v2 }
 0x39c   :  { %v1090_v4 = vld [vmem:[#allocation5 + $0x1d50] sm:$0xff]  ;;  %2923 = vmatpush.msrb.mxu1 %v1026_v3 }
 0x39d   :  { %v1158_v5 = vld [vmem:[#allocation5 + $0x1f70] sm:$0xff]  ;;  %2943 = vmatpush.msrb.mxu2 %v1090_v4 }
 0x39e   :  { %v958_v6 = vld [vmem:[#allocation5 + $0x1930] sm:$0xff]  ;;  %2962 = vmatpush.msrb.mxu3 %v1158_v5 }
 0x39f   :  { %v1022_v7 = vld [vmem:[#allocation5 + $0x1b30] sm:$0xff]  ;;  %2904 = vmatpush.msrb.mxu0 %v958_v6 }
 0x3a0   :  { %v1086_v8 = vld [vmem:[#allocation5 + $0x1d30] sm:$0xff]  ;;  %2924 = vmatpush.msrb.mxu1 %v1022_v7 }
 0x3a1   :  { %v1154_v9 = vld [vmem:[#allocation5 + $0x1f50] sm:$0xff]  ;;  %2944 = vmatpush.msrb.mxu2 %v1086_v8 }
 0x3a2   :  { %v954_v11 = vld [vmem:[#allocation5 + $0x1910] sm:$0xff]  ;;  %2963 = vmatpush.msrb.mxu3 %v1154_v9 }
 0x3a3   :  { %v1018_v13 = vld [vmem:[#allocation5 + $0x1b10] sm:$0xff]  ;;  %2905 = vmatpush.msrb.mxu0 %v954_v11 }
 0x3a4   :  { %v1082_v12 = vld [vmem:[#allocation5 + $0x1d10] sm:$0xff]  ;;  %2925 = vmatpush.msrb.mxu1 %v1018_v13 }
 0x3a5   :  { %v1150_v14 = vld [vmem:[#allocation5 + $0x1f30] sm:$0xff]  ;;  %2945 = vmatpush.msrb.mxu2 %v1082_v12 }
 0x3a6   :  { %v950_v15 = vld [vmem:[#allocation5 + $0x18f0] sm:$0xff]  ;;  %2964 = vmatpush.msrb.mxu3 %v1150_v14 }
 0x3a7   :  { %v1014_v16 = vld [vmem:[#allocation5 + $0x1af0] sm:$0xff]  ;;  %2906 = vmatpush.msrb.mxu0 %v950_v15 }
 0x3a8   :  { %v1078_v17 = vld [vmem:[#allocation5 + $0x1cf0] sm:$0xff]  ;;  %2926 = vmatpush.msrb.mxu1 %v1014_v16 }
 0x3a9   :  { %v1146_v18 = vld [vmem:[#allocation5 + $0x1f10] sm:$0xff]  ;;  %2946 = vmatpush.msrb.mxu2 %v1078_v17 }
 0x3aa   :  { %v946_v19 = vld [vmem:[#allocation5 + $0x18d0] sm:$0xff]  ;;  %2965 = vmatpush.msrb.mxu3 %v1146_v18 }
 0x3ab   :  { %v1010_v20 = vld [vmem:[#allocation5 + $0x1ad0] sm:$0xff]  ;;  %2907 = vmatpush.msrb.mxu0 %v946_v19 }
 0x3ac   :  { %v1074_v21 = vld [vmem:[#allocation5 + $0x1cd0] sm:$0xff]  ;;  %2927 = vmatpush.msrb.mxu1 %v1010_v20 }
 0x3ad   :  { %v1142_v22 = vld [vmem:[#allocation5 + $0x1ef0] sm:$0xff]  ;;  %2947 = vmatpush.msrb.mxu2 %v1074_v21 }
 0x3ae   :  { %v942_v23 = vld [vmem:[#allocation5 + $0x18b0] sm:$0xff]  ;;  %2966 = vmatpush.msrb.mxu3 %v1142_v22 }
 0x3af   :  { %v1006_v24 = vld [vmem:[#allocation5 + $0x1ab0] sm:$0xff]  ;;  %2908 = vmatpush.msrb.mxu0 %v942_v23 }
 0x3b0   :  { %v1070_v25 = vld [vmem:[#allocation5 + $0x1cb0] sm:$0xff]  ;;  %2928 = vmatpush.msrb.mxu1 %v1006_v24 }
 0x3b1   :  { %v1138_v26 = vld [vmem:[#allocation5 + $0x1ed0] sm:$0xff]  ;;  %2948 = vmatpush.msrb.mxu2 %v1070_v25 }
 0x3b2   :  { %v938_v27 = vld [vmem:[#allocation5 + $0x1890] sm:$0xff]  ;;  %2967 = vmatpush.msrb.mxu3 %v1138_v26 }
 0x3b3   :  { %v1002_v28 = vld [vmem:[#allocation5 + $0x1a90] sm:$0xff]  ;;  %2909 = vmatpush.msrb.mxu0 %v938_v27 }
 0x3b4   :  { %v1066_v29 = vld [vmem:[#allocation5 + $0x1c90] sm:$0xff]  ;;  %2929 = vmatpush.msrb.mxu1 %v1002_v28 }
 0x3b5   :  { %v1134_v30 = vld [vmem:[#allocation5 + $0x1eb0] sm:$0xff]  ;;  %2949 = vmatpush.msrb.mxu2 %v1066_v29 }
 0x3b6   :  { %v934_v31 = vld [vmem:[#allocation5 + $0x1870] sm:$0xff]  ;;  %2968 = vmatpush.msrb.mxu3 %v1134_v30 }
 0x3b7   :  { %v998_v32 = vld [vmem:[#allocation5 + $0x1a70] sm:$0xff]  ;;  %2910 = vmatpush.msrb.mxu0 %v934_v31 }
 0x3b8   :  { %v1062_v33 = vld [vmem:[#allocation5 + $0x1c70] sm:$0xff]  ;;  %2930 = vmatpush.msrb.mxu1 %v998_v32 }
 0x3b9   :  { %v1130_v34 = vld [vmem:[#allocation5 + $0x1e90] sm:$0xff]  ;;  %2950 = vmatpush.msrb.mxu2 %v1062_v33 }
 0x3ba   :  { %v930_v35 = vld [vmem:[#allocation5 + $0x1850] sm:$0xff]  ;;  %2969 = vmatpush.msrb.mxu3 %v1130_v34 }
 0x3bb   :  { %v994_v36 = vld [vmem:[#allocation5 + $0x1a50] sm:$0xff]  ;;  %2911 = vmatpush.msrb.mxu0 %v930_v35 }
 0x3bc   :  { %v1058_v37 = vld [vmem:[#allocation5 + $0x1c50] sm:$0xff]  ;;  %2931 = vmatpush.msrb.mxu1 %v994_v36 }
 0x3bd   :  { %v1126_v38 = vld [vmem:[#allocation5 + $0x1e70] sm:$0xff]  ;;  %2951 = vmatpush.msrb.mxu2 %v1058_v37 }
 0x3be   :  { %v926_v39 = vld [vmem:[#allocation5 + $0x1830] sm:$0xff]  ;;  %2970 = vmatpush.msrb.mxu3 %v1126_v38 }
 0x3bf   :  { %v990_v40 = vld [vmem:[#allocation5 + $0x1a30] sm:$0xff]  ;;  %2912 = vmatpush.msrb.mxu0 %v926_v39 }
 0x3c0   :  { %v1054_v41 = vld [vmem:[#allocation5 + $0x1c30] sm:$0xff]  ;;  %2932 = vmatpush.msrb.mxu1 %v990_v40 }
 0x3c1   :  { %v1122_v42 = vld [vmem:[#allocation5 + $0x1e50] sm:$0xff]  ;;  %2952 = vmatpush.msrb.mxu2 %v1054_v41 }
 0x3c2   :  { %v922_v43 = vld [vmem:[#allocation5 + $0x1810] sm:$0xff]  ;;  %2971 = vmatpush.msrb.mxu3 %v1122_v42 }
 0x3c3   :  { %v986_v44 = vld [vmem:[#allocation5 + $0x1a10] sm:$0xff]  ;;  %2913 = vmatpush.msrb.mxu0 %v922_v43 }
 0x3c4   :  { %v1050_v45 = vld [vmem:[#allocation5 + $0x1c10] sm:$0xff]  ;;  %2933 = vmatpush.msrb.mxu1 %v986_v44  ;;  %2914 = vmatmul.f32.vlgmr.msrb.gmra.mxu0 %v3882_v51 }
 0x3c5   :  { %v1118_v46 = vld [vmem:[#allocation5 + $0x1e30] sm:$0xff]  ;;  %2953 = vmatpush.msrb.mxu2 %v1050_v45  ;;  %2934 = vmatmul.f32.vlgmr.msrb.gmra.mxu1 %v3884_v57 }
 0x3c6   :  { %v1238_v47 = vld [vmem:[#allocation5 + $0x21f0] sm:$0xff]  ;;  %2972 = vmatpush.msrb.mxu3 %v1118_v46 }
 0x3c7   :  { %v1302_v48 = vld [vmem:[#allocation5 + $0x23f0] sm:$0xff]  ;;  %2978 = vmatpush.msra.mxu0 %v1238_v47 }
 0x3c8   :  { %v1366_v49 = vld [vmem:[#allocation5 + $0x25f0] sm:$0xff]  ;;  %2998 = vmatpush.msra.mxu1 %v1302_v48 }
 0x3c9   :  { %v1114_v50 = vld [vmem:[#allocation5 + $0x1e10] sm:$0xff]  ;;  %3018 = vmatpush.msra.mxu2 %v1366_v49 }
 0x3ca   :  { %v3883_v52 = vld [vmem:[#allocation2 + $0x70] sm:$0xff]  ;;  %2973 = vmatpush.msrb.mxu3 %v1114_v50 }
 0x3cb   :  { %2954 = vmatmul.f32.vlgmr.msrb.gmra.mxu2 %v3883_v52  ;;  %v1234_v53 = vld [vmem:[#allocation5 + $0x21d0] sm:$0xff]  ;;  %2974 = vmatmul.f32.vlgmr.msrb.gmra.mxu3 %v3885_v58 }
 0x3cc   :  { %v1298_v54 = vld [vmem:[#allocation5 + $0x23d0] sm:$0xff]  ;;  %2979 = vmatpush.msra.mxu0 %v1234_v53 }
 0x3cd   :  { %v1362_v55 = vld [vmem:[#allocation5 + $0x25d0] sm:$0xff]  ;;  %2999 = vmatpush.msra.mxu1 %v1298_v54 }
 0x3ce   :  { %v1430_v56 = vld [vmem:[#allocation5 + $0x27f0] sm:$0xff]  ;;  %3019 = vmatpush.msra.mxu2 %v1362_v55 }
 0x3cf   :  { %v1230_v59 = vld [vmem:[#allocation5 + $0x21b0] sm:$0xff]  ;;  %3038 = vmatpush.msra.mxu3 %v1430_v56  ;;  %v3886_v56 = vld [vmem:[#allocation2 + $0x80] sm:$0xff] }
 0x3d0   :  { %v1294_v60 = vld [vmem:[#allocation5 + $0x23b0] sm:$0xff]  ;;  %2980 = vmatpush.msra.mxu0 %v1230_v59 }
 0x3d1   :  { %v1358_v61 = vld [vmem:[#allocation5 + $0x25b0] sm:$0xff]  ;;  %3000 = vmatpush.msra.mxu1 %v1294_v60 }
 0x3d2   :  { %v1426_v62 = vld [vmem:[#allocation5 + $0x27d0] sm:$0xff]  ;;  %3020 = vmatpush.msra.mxu2 %v1358_v61 }
 0x3d3   :  { %v1226_v63 = vld [vmem:[#allocation5 + $0x2190] sm:$0xff]  ;;  %3039 = vmatpush.msra.mxu3 %v1426_v62  ;;  %v3888_v62 = vld [vmem:[#allocation2 + $0x88] sm:$0xff] }
 0x3d4   :  { %v1290_v0 = vld [vmem:[#allocation5 + $0x2390] sm:$0xff]  ;;  %2981 = vmatpush.msra.mxu0 %v1226_v63  ;;  %v3889_v63 = vld [vmem:[#allocation2 + $0x98] sm:$0xff] }
 0x3d5   :  { %v1354_v1 = vld [vmem:[#allocation5 + $0x2590] sm:$0xff]  ;;  %3001 = vmatpush.msra.mxu1 %v1290_v0 }
 0x3d6   :  { %v1422_v2 = vld [vmem:[#allocation5 + $0x27b0] sm:$0xff]  ;;  %3021 = vmatpush.msra.mxu2 %v1354_v1 }
 0x3d7   :  { %v1222_v3 = vld [vmem:[#allocation5 + $0x2170] sm:$0xff]  ;;  %3040 = vmatpush.msra.mxu3 %v1422_v2 }
 0x3d8   :  { %v1286_v4 = vld [vmem:[#allocation5 + $0x2370] sm:$0xff]  ;;  %2982 = vmatpush.msra.mxu0 %v1222_v3 }
 0x3d9   :  { %v1350_v5 = vld [vmem:[#allocation5 + $0x2570] sm:$0xff]  ;;  %3002 = vmatpush.msra.mxu1 %v1286_v4 }
 0x3da   :  { %v1418_v6 = vld [vmem:[#allocation5 + $0x2790] sm:$0xff]  ;;  %3022 = vmatpush.msra.mxu2 %v1350_v5 }
 0x3db   :  { %v1218_v7 = vld [vmem:[#allocation5 + $0x2150] sm:$0xff]  ;;  %3041 = vmatpush.msra.mxu3 %v1418_v6 }
 0x3dc   :  { %v1282_v8 = vld [vmem:[#allocation5 + $0x2350] sm:$0xff]  ;;  %2983 = vmatpush.msra.mxu0 %v1218_v7 }
 0x3dd   :  { %v1346_v9 = vld [vmem:[#allocation5 + $0x2550] sm:$0xff]  ;;  %3003 = vmatpush.msra.mxu1 %v1282_v8 }
 0x3de   :  { %v1414_v11 = vld [vmem:[#allocation5 + $0x2770] sm:$0xff]  ;;  %3023 = vmatpush.msra.mxu2 %v1346_v9 }
 0x3df   :  { %v1214_v13 = vld [vmem:[#allocation5 + $0x2130] sm:$0xff]  ;;  %3042 = vmatpush.msra.mxu3 %v1414_v11 }
 0x3e0   :  { %v1278_v12 = vld [vmem:[#allocation5 + $0x2330] sm:$0xff]  ;;  %2984 = vmatpush.msra.mxu0 %v1214_v13 }
 0x3e1   :  { %v1342_v14 = vld [vmem:[#allocation5 + $0x2530] sm:$0xff]  ;;  %3004 = vmatpush.msra.mxu1 %v1278_v12 }
 0x3e2   :  { %v1410_v15 = vld [vmem:[#allocation5 + $0x2750] sm:$0xff]  ;;  %3024 = vmatpush.msra.mxu2 %v1342_v14 }
 0x3e3   :  { %v1210_v16 = vld [vmem:[#allocation5 + $0x2110] sm:$0xff]  ;;  %3043 = vmatpush.msra.mxu3 %v1410_v15 }
 0x3e4   :  { %v1274_v17 = vld [vmem:[#allocation5 + $0x2310] sm:$0xff]  ;;  %2985 = vmatpush.msra.mxu0 %v1210_v16 }
 0x3e5   :  { %v1338_v18 = vld [vmem:[#allocation5 + $0x2510] sm:$0xff]  ;;  %3005 = vmatpush.msra.mxu1 %v1274_v17 }
 0x3e6   :  { %v1406_v19 = vld [vmem:[#allocation5 + $0x2730] sm:$0xff]  ;;  %3025 = vmatpush.msra.mxu2 %v1338_v18 }
 0x3e7   :  { %v1206_v20 = vld [vmem:[#allocation5 + $0x20f0] sm:$0xff]  ;;  %3044 = vmatpush.msra.mxu3 %v1406_v19 }
 0x3e8   :  { %v1270_v21 = vld [vmem:[#allocation5 + $0x22f0] sm:$0xff]  ;;  %2986 = vmatpush.msra.mxu0 %v1206_v20 }
 0x3e9   :  { %v1334_v22 = vld [vmem:[#allocation5 + $0x24f0] sm:$0xff]  ;;  %3006 = vmatpush.msra.mxu1 %v1270_v21 }
 0x3ea   :  { %v1402_v23 = vld [vmem:[#allocation5 + $0x2710] sm:$0xff]  ;;  %3026 = vmatpush.msra.mxu2 %v1334_v22 }
 0x3eb   :  { %v1202_v24 = vld [vmem:[#allocation5 + $0x20d0] sm:$0xff]  ;;  %3045 = vmatpush.msra.mxu3 %v1402_v23 }
 0x3ec   :  { %v1266_v25 = vld [vmem:[#allocation5 + $0x22d0] sm:$0xff]  ;;  %2987 = vmatpush.msra.mxu0 %v1202_v24 }
 0x3ed   :  { %v1330_v26 = vld [vmem:[#allocation5 + $0x24d0] sm:$0xff]  ;;  %3007 = vmatpush.msra.mxu1 %v1266_v25 }
 0x3ee   :  { %v1398_v27 = vld [vmem:[#allocation5 + $0x26f0] sm:$0xff]  ;;  %3027 = vmatpush.msra.mxu2 %v1330_v26 }
 0x3ef   :  { %v1198_v28 = vld [vmem:[#allocation5 + $0x20b0] sm:$0xff]  ;;  %3046 = vmatpush.msra.mxu3 %v1398_v27 }
 0x3f0   :  { %v1262_v29 = vld [vmem:[#allocation5 + $0x22b0] sm:$0xff]  ;;  %2988 = vmatpush.msra.mxu0 %v1198_v28 }
 0x3f1   :  { %v1326_v30 = vld [vmem:[#allocation5 + $0x24b0] sm:$0xff]  ;;  %3008 = vmatpush.msra.mxu1 %v1262_v29 }
 0x3f2   :  { %v1394_v31 = vld [vmem:[#allocation5 + $0x26d0] sm:$0xff]  ;;  %3028 = vmatpush.msra.mxu2 %v1326_v30 }
 0x3f3   :  { %v1194_v32 = vld [vmem:[#allocation5 + $0x2090] sm:$0xff]  ;;  %3047 = vmatpush.msra.mxu3 %v1394_v31 }
 0x3f4   :  { %v1258_v33 = vld [vmem:[#allocation5 + $0x2290] sm:$0xff]  ;;  %2989 = vmatpush.msra.mxu0 %v1194_v32 }
 0x3f5   :  { %v1322_v34 = vld [vmem:[#allocation5 + $0x2490] sm:$0xff]  ;;  %3009 = vmatpush.msra.mxu1 %v1258_v33 }
 0x3f6   :  { %v1390_v35 = vld [vmem:[#allocation5 + $0x26b0] sm:$0xff]  ;;  %3029 = vmatpush.msra.mxu2 %v1322_v34 }
 0x3f7   :  { %v1190_v36 = vld [vmem:[#allocation5 + $0x2070] sm:$0xff]  ;;  %3048 = vmatpush.msra.mxu3 %v1390_v35 }
 0x3f8   :  { %v1254_v37 = vld [vmem:[#allocation5 + $0x2270] sm:$0xff]  ;;  %2990 = vmatpush.msra.mxu0 %v1190_v36 }
 0x3f9   :  { %v1318_v38 = vld [vmem:[#allocation5 + $0x2470] sm:$0xff]  ;;  %3010 = vmatpush.msra.mxu1 %v1254_v37 }
 0x3fa   :  { %v1386_v39 = vld [vmem:[#allocation5 + $0x2690] sm:$0xff]  ;;  %3030 = vmatpush.msra.mxu2 %v1318_v38 }
 0x3fb   :  { %v1186_v40 = vld [vmem:[#allocation5 + $0x2050] sm:$0xff]  ;;  %3049 = vmatpush.msra.mxu3 %v1386_v39 }
 0x3fc   :  { %v1250_v41 = vld [vmem:[#allocation5 + $0x2250] sm:$0xff]  ;;  %2991 = vmatpush.msra.mxu0 %v1186_v40 }
 0x3fd   :  { %v1314_v42 = vld [vmem:[#allocation5 + $0x2450] sm:$0xff]  ;;  %3011 = vmatpush.msra.mxu1 %v1250_v41 }
 0x3fe   :  { %v1382_v43 = vld [vmem:[#allocation5 + $0x2670] sm:$0xff]  ;;  %3031 = vmatpush.msra.mxu2 %v1314_v42 }
 0x3ff   :  { %v1182_v44 = vld [vmem:[#allocation5 + $0x2030] sm:$0xff]  ;;  %3050 = vmatpush.msra.mxu3 %v1382_v43 }
 0x400   :  { %v1246_v45 = vld [vmem:[#allocation5 + $0x2230] sm:$0xff]  ;;  %2992 = vmatpush.msra.mxu0 %v1182_v44 }
 0x401   :  { %v1310_v46 = vld [vmem:[#allocation5 + $0x2430] sm:$0xff]  ;;  %3012 = vmatpush.msra.mxu1 %v1246_v45 }
 0x402   :  { %v1378_v47 = vld [vmem:[#allocation5 + $0x2650] sm:$0xff]  ;;  %3032 = vmatpush.msra.mxu2 %v1310_v46 }
 0x403   :  { %v1178_v48 = vld [vmem:[#allocation5 + $0x2010] sm:$0xff]  ;;  %3051 = vmatpush.msra.mxu3 %v1378_v47 }
 0x404   :  { %v1242_v49 = vld [vmem:[#allocation5 + $0x2210] sm:$0xff]  ;;  %2993 = vmatpush.msra.mxu0 %v1178_v48 }
 0x405   :  { %v1306_v50 = vld [vmem:[#allocation5 + $0x2410] sm:$0xff]  ;;  %3013 = vmatpush.msra.mxu1 %v1242_v49  ;;  %2994 = vmatmul.f32.vlgmr.msra.gmra.mxu0 %v3886_v56 }
 0x406   :  { %v1374_v51 = vld [vmem:[#allocation5 + $0x2630] sm:$0xff]  ;;  %3033 = vmatpush.msra.mxu2 %v1306_v50  ;;  %3014 = vmatmul.f32.vlgmr.msra.gmra.mxu1 %v3888_v62 }
 0x407   :  { %v1494_v52 = vld [vmem:[#allocation5 + $0x29f0] sm:$0xff]  ;;  %3052 = vmatpush.msra.mxu3 %v1374_v51 }
 0x408   :  { %v1558_v53 = vld [vmem:[#allocation5 + $0x2bf0] sm:$0xff]  ;;  %3058 = vmatpush.msrb.mxu0 %v1494_v52 }
 0x409   :  { %v1622_v54 = vld [vmem:[#allocation5 + $0x2df0] sm:$0xff]  ;;  %3078 = vmatpush.msrb.mxu1 %v1558_v53 }
 0x40a   :  { %v1370_v55 = vld [vmem:[#allocation5 + $0x2610] sm:$0xff]  ;;  %3098 = vmatpush.msrb.mxu2 %v1622_v54 }
 0x40b   :  { %v3887_v57 = vld [vmem:[#allocation2 + $0x90] sm:$0xff]  ;;  %3053 = vmatpush.msra.mxu3 %v1370_v55 }
 0x40c   :  { %3034 = vmatmul.f32.vlgmr.msra.gmra.mxu2 %v3887_v57  ;;  %v1490_v58 = vld [vmem:[#allocation5 + $0x29d0] sm:$0xff]  ;;  %3054 = vmatmul.f32.vlgmr.msra.gmra.mxu3 %v3889_v63  ;;  %v215_v57 = vld [vmem:[#allocation5 + $0x1f8] sm:$0xff] }
 0x40d   :  { %v1554_v59 = vld [vmem:[#allocation5 + $0x2bd0] sm:$0xff]  ;;  %3059 = vmatpush.msrb.mxu0 %v1490_v58  ;;  %v279_v58 = vld [vmem:[#allocation5 + $0x3f8] sm:$0xff] }
 0x40e   :  { %v1618_v60 = vld [vmem:[#allocation5 + $0x2dd0] sm:$0xff]  ;;  %3079 = vmatpush.msrb.mxu1 %v1554_v59  ;;  %v343_v59 = vld [vmem:[#allocation5 + $0x5f8] sm:$0xff] }
 0x40f   :  { %v1686_v61 = vld [vmem:[#allocation5 + $0x2ff0] sm:$0xff]  ;;  %3099 = vmatpush.msrb.mxu2 %v1618_v60  ;;  %v211_v63 = vld [vmem:[#allocation5 + $0x1d8] sm:$0xff] }
 0x410   :  { %v1486_v0 = vld [vmem:[#allocation5 + $0x29b0] sm:$0xff]  ;;  %3118 = vmatpush.msrb.mxu3 %v1686_v61  ;;  %v3890_v61 = vld [vmem:[#allocation2 + $0xa0] sm:$0xff] }
 0x411   :  { %v1550_v1 = vld [vmem:[#allocation5 + $0x2bb0] sm:$0xff]  ;;  %3060 = vmatpush.msrb.mxu0 %v1486_v0  ;;  %v275_v0 = vld [vmem:[#allocation5 + $0x3d8] sm:$0xff] }
 0x412   :  { %v1614_v2 = vld [vmem:[#allocation5 + $0x2db0] sm:$0xff]  ;;  %3080 = vmatpush.msrb.mxu1 %v1550_v1  ;;  %v339_v1 = vld [vmem:[#allocation5 + $0x5d8] sm:$0xff] }
 0x413   :  { %v1682_v3 = vld [vmem:[#allocation5 + $0x2fd0] sm:$0xff]  ;;  %3100 = vmatpush.msrb.mxu2 %v1614_v2  ;;  %v407_v2 = vld [vmem:[#allocation5 + $0x7f8] sm:$0xff] }
 0x414   :  { %v1482_v4 = vld [vmem:[#allocation5 + $0x2990] sm:$0xff]  ;;  %3119 = vmatpush.msrb.mxu3 %v1682_v3  ;;  %v3892_v3 = vld [vmem:[#allocation2 + $0xa8] sm:$0xff] }
 0x415   :  { %v1546_v5 = vld [vmem:[#allocation5 + $0x2b90] sm:$0xff]  ;;  %3061 = vmatpush.msrb.mxu0 %v1482_v4  ;;  %v3893_v4 = vld [vmem:[#allocation2 + $0xb8] sm:$0xff] }
 0x416   :  { %v1610_v6 = vld [vmem:[#allocation5 + $0x2d90] sm:$0xff]  ;;  %3081 = vmatpush.msrb.mxu1 %v1546_v5  ;;  %v207_v5 = vld [vmem:[#allocation5 + $0x1b8] sm:$0xff] }
 0x417   :  { %v1678_v7 = vld [vmem:[#allocation5 + $0x2fb0] sm:$0xff]  ;;  %3101 = vmatpush.msrb.mxu2 %v1610_v6  ;;  %v271_v6 = vld [vmem:[#allocation5 + $0x3b8] sm:$0xff] }
 0x418   :  { %v1478_v8 = vld [vmem:[#allocation5 + $0x2970] sm:$0xff]  ;;  %3120 = vmatpush.msrb.mxu3 %v1678_v7  ;;  %v335_v7 = vld [vmem:[#allocation5 + $0x5b8] sm:$0xff] }
 0x419   :  { %v1542_v9 = vld [vmem:[#allocation5 + $0x2b70] sm:$0xff]  ;;  %3062 = vmatpush.msrb.mxu0 %v1478_v8  ;;  %v403_v8 = vld [vmem:[#allocation5 + $0x7d8] sm:$0xff] }
 0x41a   :  { %v1606_v11 = vld [vmem:[#allocation5 + $0x2d70] sm:$0xff]  ;;  %3082 = vmatpush.msrb.mxu1 %v1542_v9  ;;  %v203_v9 = vld [vmem:[#allocation5 + $0x198] sm:$0xff] }
 0x41b   :  { %v1674_v13 = vld [vmem:[#allocation5 + $0x2f90] sm:$0xff]  ;;  %3102 = vmatpush.msrb.mxu2 %v1606_v11  ;;  %v267_v11 = vld [vmem:[#allocation5 + $0x398] sm:$0xff] }
 0x41c   :  { %v1474_v12 = vld [vmem:[#allocation5 + $0x2950] sm:$0xff]  ;;  %3121 = vmatpush.msrb.mxu3 %v1674_v13  ;;  %v331_v13 = vld [vmem:[#allocation5 + $0x598] sm:$0xff] }
 0x41d   :  { %v1538_v14 = vld [vmem:[#allocation5 + $0x2b50] sm:$0xff]  ;;  %3063 = vmatpush.msrb.mxu0 %v1474_v12  ;;  %v399_v12 = vld [vmem:[#allocation5 + $0x7b8] sm:$0xff] }
 0x41e   :  { %v1602_v15 = vld [vmem:[#allocation5 + $0x2d50] sm:$0xff]  ;;  %3083 = vmatpush.msrb.mxu1 %v1538_v14  ;;  %v199_v14 = vld [vmem:[#allocation5 + $0x178] sm:$0xff] }
 0x41f   :  { %v1670_v16 = vld [vmem:[#allocation5 + $0x2f70] sm:$0xff]  ;;  %3103 = vmatpush.msrb.mxu2 %v1602_v15  ;;  %v263_v15 = vld [vmem:[#allocation5 + $0x378] sm:$0xff] }
 0x420   :  { %v1470_v17 = vld [vmem:[#allocation5 + $0x2930] sm:$0xff]  ;;  %3122 = vmatpush.msrb.mxu3 %v1670_v16  ;;  %v327_v16 = vld [vmem:[#allocation5 + $0x578] sm:$0xff] }
 0x421   :  { %v1534_v18 = vld [vmem:[#allocation5 + $0x2b30] sm:$0xff]  ;;  %3064 = vmatpush.msrb.mxu0 %v1470_v17  ;;  %v395_v17 = vld [vmem:[#allocation5 + $0x798] sm:$0xff] }
 0x422   :  { %v1598_v19 = vld [vmem:[#allocation5 + $0x2d30] sm:$0xff]  ;;  %3084 = vmatpush.msrb.mxu1 %v1534_v18  ;;  %v195_v18 = vld [vmem:[#allocation5 + $0x158] sm:$0xff] }
 0x423   :  { %v1666_v20 = vld [vmem:[#allocation5 + $0x2f50] sm:$0xff]  ;;  %3104 = vmatpush.msrb.mxu2 %v1598_v19  ;;  %v259_v19 = vld [vmem:[#allocation5 + $0x358] sm:$0xff] }
 0x424   :  { %v1466_v21 = vld [vmem:[#allocation5 + $0x2910] sm:$0xff]  ;;  %3123 = vmatpush.msrb.mxu3 %v1666_v20  ;;  %v323_v20 = vld [vmem:[#allocation5 + $0x558] sm:$0xff] }
 0x425   :  { %v1530_v22 = vld [vmem:[#allocation5 + $0x2b10] sm:$0xff]  ;;  %3065 = vmatpush.msrb.mxu0 %v1466_v21  ;;  %v391_v21 = vld [vmem:[#allocation5 + $0x778] sm:$0xff] }
 0x426   :  { %v1594_v23 = vld [vmem:[#allocation5 + $0x2d10] sm:$0xff]  ;;  %3085 = vmatpush.msrb.mxu1 %v1530_v22  ;;  %v191_v22 = vld [vmem:[#allocation5 + $0x138] sm:$0xff] }
 0x427   :  { %v1662_v24 = vld [vmem:[#allocation5 + $0x2f30] sm:$0xff]  ;;  %3105 = vmatpush.msrb.mxu2 %v1594_v23  ;;  %v255_v23 = vld [vmem:[#allocation5 + $0x338] sm:$0xff] }
 0x428   :  { %v1462_v25 = vld [vmem:[#allocation5 + $0x28f0] sm:$0xff]  ;;  %3124 = vmatpush.msrb.mxu3 %v1662_v24  ;;  %v319_v24 = vld [vmem:[#allocation5 + $0x538] sm:$0xff] }
 0x429   :  { %v1526_v26 = vld [vmem:[#allocation5 + $0x2af0] sm:$0xff]  ;;  %3066 = vmatpush.msrb.mxu0 %v1462_v25  ;;  %v387_v25 = vld [vmem:[#allocation5 + $0x758] sm:$0xff] }
 0x42a   :  { %v1590_v27 = vld [vmem:[#allocation5 + $0x2cf0] sm:$0xff]  ;;  %3086 = vmatpush.msrb.mxu1 %v1526_v26  ;;  %v187_v26 = vld [vmem:[#allocation5 + $0x118] sm:$0xff] }
 0x42b   :  { %v1658_v28 = vld [vmem:[#allocation5 + $0x2f10] sm:$0xff]  ;;  %3106 = vmatpush.msrb.mxu2 %v1590_v27  ;;  %v251_v27 = vld [vmem:[#allocation5 + $0x318] sm:$0xff] }
 0x42c   :  { %v1458_v29 = vld [vmem:[#allocation5 + $0x28d0] sm:$0xff]  ;;  %3125 = vmatpush.msrb.mxu3 %v1658_v28  ;;  %v315_v28 = vld [vmem:[#allocation5 + $0x518] sm:$0xff] }
 0x42d   :  { %v1522_v30 = vld [vmem:[#allocation5 + $0x2ad0] sm:$0xff]  ;;  %3067 = vmatpush.msrb.mxu0 %v1458_v29  ;;  %v383_v29 = vld [vmem:[#allocation5 + $0x738] sm:$0xff] }
 0x42e   :  { %v1586_v31 = vld [vmem:[#allocation5 + $0x2cd0] sm:$0xff]  ;;  %3087 = vmatpush.msrb.mxu1 %v1522_v30  ;;  %v183_v30 = vld [vmem:[#allocation5 + $0xf8] sm:$0xff] }
 0x42f   :  { %v1654_v32 = vld [vmem:[#allocation5 + $0x2ef0] sm:$0xff]  ;;  %3107 = vmatpush.msrb.mxu2 %v1586_v31  ;;  %v247_v31 = vld [vmem:[#allocation5 + $0x2f8] sm:$0xff] }
 0x430   :  { %v1454_v33 = vld [vmem:[#allocation5 + $0x28b0] sm:$0xff]  ;;  %3126 = vmatpush.msrb.mxu3 %v1654_v32  ;;  %v311_v32 = vld [vmem:[#allocation5 + $0x4f8] sm:$0xff] }
 0x431   :  { %v1518_v34 = vld [vmem:[#allocation5 + $0x2ab0] sm:$0xff]  ;;  %3068 = vmatpush.msrb.mxu0 %v1454_v33  ;;  %v379_v33 = vld [vmem:[#allocation5 + $0x718] sm:$0xff] }
 0x432   :  { %v1582_v35 = vld [vmem:[#allocation5 + $0x2cb0] sm:$0xff]  ;;  %3088 = vmatpush.msrb.mxu1 %v1518_v34  ;;  %v179_v34 = vld [vmem:[#allocation5 + $0xd8] sm:$0xff] }
 0x433   :  { %v1650_v36 = vld [vmem:[#allocation5 + $0x2ed0] sm:$0xff]  ;;  %3108 = vmatpush.msrb.mxu2 %v1582_v35  ;;  %v243_v35 = vld [vmem:[#allocation5 + $0x2d8] sm:$0xff] }
 0x434   :  { %v1450_v37 = vld [vmem:[#allocation5 + $0x2890] sm:$0xff]  ;;  %3127 = vmatpush.msrb.mxu3 %v1650_v36  ;;  %v307_v36 = vld [vmem:[#allocation5 + $0x4d8] sm:$0xff] }
 0x435   :  { %v1514_v38 = vld [vmem:[#allocation5 + $0x2a90] sm:$0xff]  ;;  %3069 = vmatpush.msrb.mxu0 %v1450_v37  ;;  %v375_v37 = vld [vmem:[#allocation5 + $0x6f8] sm:$0xff] }
 0x436   :  { %v1578_v39 = vld [vmem:[#allocation5 + $0x2c90] sm:$0xff]  ;;  %3089 = vmatpush.msrb.mxu1 %v1514_v38  ;;  %v175_v38 = vld [vmem:[#allocation5 + $0xb8] sm:$0xff] }
 0x437   :  { %v1646_v40 = vld [vmem:[#allocation5 + $0x2eb0] sm:$0xff]  ;;  %3109 = vmatpush.msrb.mxu2 %v1578_v39  ;;  %v239_v39 = vld [vmem:[#allocation5 + $0x2b8] sm:$0xff] }
 0x438   :  { %v1446_v41 = vld [vmem:[#allocation5 + $0x2870] sm:$0xff]  ;;  %3128 = vmatpush.msrb.mxu3 %v1646_v40  ;;  %v303_v40 = vld [vmem:[#allocation5 + $0x4b8] sm:$0xff] }
 0x439   :  { %v1510_v42 = vld [vmem:[#allocation5 + $0x2a70] sm:$0xff]  ;;  %3070 = vmatpush.msrb.mxu0 %v1446_v41  ;;  %v371_v41 = vld [vmem:[#allocation5 + $0x6d8] sm:$0xff] }
 0x43a   :  { %v1574_v43 = vld [vmem:[#allocation5 + $0x2c70] sm:$0xff]  ;;  %3090 = vmatpush.msrb.mxu1 %v1510_v42  ;;  %v171_v42 = vld [vmem:[#allocation5 + $0x98] sm:$0xff] }
 0x43b   :  { %v1642_v44 = vld [vmem:[#allocation5 + $0x2e90] sm:$0xff]  ;;  %3110 = vmatpush.msrb.mxu2 %v1574_v43  ;;  %v235_v43 = vld [vmem:[#allocation5 + $0x298] sm:$0xff] }
 0x43c   :  { %v1442_v45 = vld [vmem:[#allocation5 + $0x2850] sm:$0xff]  ;;  %3129 = vmatpush.msrb.mxu3 %v1642_v44  ;;  %v299_v44 = vld [vmem:[#allocation5 + $0x498] sm:$0xff] }
 0x43d   :  { %v1506_v46 = vld [vmem:[#allocation5 + $0x2a50] sm:$0xff]  ;;  %3071 = vmatpush.msrb.mxu0 %v1442_v45  ;;  %v367_v45 = vld [vmem:[#allocation5 + $0x6b8] sm:$0xff] }
 0x43e   :  { %v1570_v47 = vld [vmem:[#allocation5 + $0x2c50] sm:$0xff]  ;;  %3091 = vmatpush.msrb.mxu1 %v1506_v46  ;;  %v167_v46 = vld [vmem:[#allocation5 + $0x78] sm:$0xff] }
 0x43f   :  { %v1638_v48 = vld [vmem:[#allocation5 + $0x2e70] sm:$0xff]  ;;  %3111 = vmatpush.msrb.mxu2 %v1570_v47  ;;  %v231_v47 = vld [vmem:[#allocation5 + $0x278] sm:$0xff] }
 0x440   :  { %v1438_v49 = vld [vmem:[#allocation5 + $0x2830] sm:$0xff]  ;;  %3130 = vmatpush.msrb.mxu3 %v1638_v48  ;;  %v295_v48 = vld [vmem:[#allocation5 + $0x478] sm:$0xff] }
 0x441   :  { %v1502_v50 = vld [vmem:[#allocation5 + $0x2a30] sm:$0xff]  ;;  %3072 = vmatpush.msrb.mxu0 %v1438_v49  ;;  %v363_v49 = vld [vmem:[#allocation5 + $0x698] sm:$0xff] }
 0x442   :  { %v1566_v51 = vld [vmem:[#allocation5 + $0x2c30] sm:$0xff]  ;;  %3092 = vmatpush.msrb.mxu1 %v1502_v50  ;;  %v163_v50 = vld [vmem:[#allocation5 + $0x58] sm:$0xff] }
 0x443   :  { %v1634_v52 = vld [vmem:[#allocation5 + $0x2e50] sm:$0xff]  ;;  %3112 = vmatpush.msrb.mxu2 %v1566_v51  ;;  %v227_v51 = vld [vmem:[#allocation5 + $0x258] sm:$0xff] }
 0x444   :  { %v1434_v53 = vld [vmem:[#allocation5 + $0x2810] sm:$0xff]  ;;  %3131 = vmatpush.msrb.mxu3 %v1634_v52  ;;  %v291_v52 = vld [vmem:[#allocation5 + $0x458] sm:$0xff] }
 0x445   :  { %v1498_v54 = vld [vmem:[#allocation5 + $0x2a10] sm:$0xff]  ;;  %3073 = vmatpush.msrb.mxu0 %v1434_v53  ;;  %v359_v53 = vld [vmem:[#allocation5 + $0x678] sm:$0xff] }
 0x446   :  { %v1562_v55 = vld [vmem:[#allocation5 + $0x2c10] sm:$0xff]  ;;  %3093 = vmatpush.msrb.mxu1 %v1498_v54  ;;  %3074 = vmatmul.f32.vlgmr.msrb.gmra.mxu0 %v3890_v61  ;;  %v159_v54 = vld [vmem:[#allocation5 + $0x38] sm:$0xff] }
 0x447   :  { %v1630_v56 = vld [vmem:[#allocation5 + $0x2e30] sm:$0xff]  ;;  %3113 = vmatpush.msrb.mxu2 %v1562_v55  ;;  %3138 = vmatpush.msra.mxu0 %v215_v57  ;;  %v223_v55 = vld [vmem:[#allocation5 + $0x238] sm:$0xff] }
 0x448   :  { %3132 = vmatpush.msrb.mxu3 %v1630_v56  ;;  %v1626_v60 = vld [vmem:[#allocation5 + $0x2e10] sm:$0xff]  ;;  %3158 = vmatpush.msra.mxu1 %v279_v58  ;;  %v287_v56 = vld [vmem:[#allocation5 + $0x438] sm:$0xff] }
 0x449   :  { %v3891_v62 = vld [vmem:[#allocation2 + $0xb0] sm:$0xff]  ;;  %3178 = vmatpush.msra.mxu2 %v343_v59  ;;  %3094 = vmatmul.f32.vlgmr.msrb.gmra.mxu1 %v3892_v3  ;;  %v355_v57 = vld [vmem:[#allocation5 + $0x658] sm:$0xff] }
 0x44a   :  { %3114 = vmatmul.f32.vlgmr.msrb.gmra.mxu2 %v3891_v62  ;;  %3133 = vmatpush.msrb.mxu3 %v1626_v60  ;;  %v155_v58 = vld [vmem:[#allocation5 + $0x18] sm:$0xff] }
 0x44b   :  { %3134 = vmatmul.f32.vlgmr.msrb.gmra.mxu3 %v3893_v4  ;;  %3139 = vmatpush.msra.mxu0 %v211_v63  ;;  %v219_v59 = vld [vmem:[#allocation5 + $0x218] sm:$0xff] }
 0x44c   :  { %3159 = vmatpush.msra.mxu1 %v275_v0  ;;  %3179 = vmatpush.msra.mxu2 %v339_v1  ;;  %v283_v60 = vld [vmem:[#allocation5 + $0x418] sm:$0xff] }
 0x44d   :  { %3198 = vmatpush.msra.mxu3 %v407_v2  ;;  %3140 = vmatpush.msra.mxu0 %v207_v5  ;;  %v351_v61 = vld [vmem:[#allocation5 + $0x638] sm:$0xff] }
 0x44e   :  { %3160 = vmatpush.msra.mxu1 %v271_v6  ;;  %3180 = vmatpush.msra.mxu2 %v335_v7  ;;  %v471_v62 = vld [vmem:[#allocation5 + $0x9f8] sm:$0xff] }
 0x44f   :  { %3199 = vmatpush.msra.mxu3 %v403_v8  ;;  %3141 = vmatpush.msra.mxu0 %v203_v9  ;;  %v535_v63 = vld [vmem:[#allocation5 + $0xbf8] sm:$0xff] }
 0x450   :  { %3161 = vmatpush.msra.mxu1 %v267_v11  ;;  %3181 = vmatpush.msra.mxu2 %v331_v13  ;;  %v599_v0 = vld [vmem:[#allocation5 + $0xdf8] sm:$0xff] }
 0x451   :  { %3200 = vmatpush.msra.mxu3 %v399_v12  ;;  %3142 = vmatpush.msra.mxu0 %v199_v14  ;;  %v347_v1 = vld [vmem:[#allocation5 + $0x618] sm:$0xff] }
 0x452   :  { %3162 = vmatpush.msra.mxu1 %v263_v15  ;;  %3182 = vmatpush.msra.mxu2 %v327_v16  ;;  %v467_v2 = vld [vmem:[#allocation5 + $0x9d8] sm:$0xff] }
 0x453   :  { %3201 = vmatpush.msra.mxu3 %v395_v17  ;;  %3143 = vmatpush.msra.mxu0 %v195_v18  ;;  %v531_v3 = vld [vmem:[#allocation5 + $0xbd8] sm:$0xff] }
 0x454   :  { %3163 = vmatpush.msra.mxu1 %v259_v19  ;;  %3183 = vmatpush.msra.mxu2 %v323_v20  ;;  %v595_v4 = vld [vmem:[#allocation5 + $0xdd8] sm:$0xff] }
 0x455   :  { %3202 = vmatpush.msra.mxu3 %v391_v21  ;;  %3144 = vmatpush.msra.mxu0 %v191_v22  ;;  %v663_v5 = vld [vmem:[#allocation5 + $0xff8] sm:$0xff] }
 0x456   :  { %3164 = vmatpush.msra.mxu1 %v255_v23  ;;  %3184 = vmatpush.msra.mxu2 %v319_v24  ;;  %v463_v6 = vld [vmem:[#allocation5 + $0x9b8] sm:$0xff] }
 0x457   :  { %3203 = vmatpush.msra.mxu3 %v387_v25  ;;  %3145 = vmatpush.msra.mxu0 %v187_v26  ;;  %v527_v7 = vld [vmem:[#allocation5 + $0xbb8] sm:$0xff] }
 0x458   :  { %3165 = vmatpush.msra.mxu1 %v251_v27  ;;  %3185 = vmatpush.msra.mxu2 %v315_v28  ;;  %v591_v8 = vld [vmem:[#allocation5 + $0xdb8] sm:$0xff] }
 0x459   :  { %3204 = vmatpush.msra.mxu3 %v383_v29  ;;  %3146 = vmatpush.msra.mxu0 %v183_v30  ;;  %v659_v9 = vld [vmem:[#allocation5 + $0xfd8] sm:$0xff] }
 0x45a   :  { %3166 = vmatpush.msra.mxu1 %v247_v31  ;;  %3186 = vmatpush.msra.mxu2 %v311_v32  ;;  %v459_v11 = vld [vmem:[#allocation5 + $0x998] sm:$0xff] }
 0x45b   :  { %3205 = vmatpush.msra.mxu3 %v379_v33  ;;  %3147 = vmatpush.msra.mxu0 %v179_v34  ;;  %v523_v13 = vld [vmem:[#allocation5 + $0xb98] sm:$0xff] }
 0x45c   :  { %3167 = vmatpush.msra.mxu1 %v243_v35  ;;  %3187 = vmatpush.msra.mxu2 %v307_v36  ;;  %v587_v12 = vld [vmem:[#allocation5 + $0xd98] sm:$0xff] }
 0x45d   :  { %3206 = vmatpush.msra.mxu3 %v375_v37  ;;  %3148 = vmatpush.msra.mxu0 %v175_v38  ;;  %v655_v14 = vld [vmem:[#allocation5 + $0xfb8] sm:$0xff] }
 0x45e   :  { %3168 = vmatpush.msra.mxu1 %v239_v39  ;;  %3188 = vmatpush.msra.mxu2 %v303_v40  ;;  %v455_v15 = vld [vmem:[#allocation5 + $0x978] sm:$0xff] }
 0x45f   :  { %3207 = vmatpush.msra.mxu3 %v371_v41  ;;  %3149 = vmatpush.msra.mxu0 %v171_v42  ;;  %v519_v16 = vld [vmem:[#allocation5 + $0xb78] sm:$0xff] }
 0x460   :  { %3169 = vmatpush.msra.mxu1 %v235_v43  ;;  %3189 = vmatpush.msra.mxu2 %v299_v44  ;;  %v583_v17 = vld [vmem:[#allocation5 + $0xd78] sm:$0xff] }
 0x461   :  { %3208 = vmatpush.msra.mxu3 %v367_v45  ;;  %3150 = vmatpush.msra.mxu0 %v167_v46  ;;  %v651_v18 = vld [vmem:[#allocation5 + $0xf98] sm:$0xff] }
 0x462   :  { %3170 = vmatpush.msra.mxu1 %v231_v47  ;;  %3190 = vmatpush.msra.mxu2 %v295_v48  ;;  %v451_v19 = vld [vmem:[#allocation5 + $0x958] sm:$0xff] }
 0x463   :  { %3209 = vmatpush.msra.mxu3 %v363_v49  ;;  %3151 = vmatpush.msra.mxu0 %v163_v50  ;;  %v515_v20 = vld [vmem:[#allocation5 + $0xb58] sm:$0xff] }
 0x464   :  { %3171 = vmatpush.msra.mxu1 %v227_v51  ;;  %3191 = vmatpush.msra.mxu2 %v291_v52  ;;  %v579_v21 = vld [vmem:[#allocation5 + $0xd58] sm:$0xff] }
 0x465   :  { %3210 = vmatpush.msra.mxu3 %v359_v53  ;;  %3152 = vmatpush.msra.mxu0 %v159_v54  ;;  %v647_v22 = vld [vmem:[#allocation5 + $0xf78] sm:$0xff] }
 0x466   :  { %3172 = vmatpush.msra.mxu1 %v223_v55  ;;  %3192 = vmatpush.msra.mxu2 %v287_v56  ;;  %v447_v23 = vld [vmem:[#allocation5 + $0x938] sm:$0xff] }
 0x467   :  { %3211 = vmatpush.msra.mxu3 %v355_v57  ;;  %3153 = vmatpush.msra.mxu0 %v155_v58  ;;  %v511_v24 = vld [vmem:[#allocation5 + $0xb38] sm:$0xff] }
 0x468   :  { %3173 = vmatpush.msra.mxu1 %v219_v59  ;;  %3193 = vmatpush.msra.mxu2 %v283_v60  ;;  %v575_v25 = vld [vmem:[#allocation5 + $0xd38] sm:$0xff] }
 0x469   :  { %3212 = vmatpush.msra.mxu3 %v351_v61  ;;  %3218 = vmatpush.msrb.mxu0 %v471_v62  ;;  %v643_v26 = vld [vmem:[#allocation5 + $0xf58] sm:$0xff] }
 0x46a   :  { %3238 = vmatpush.msrb.mxu1 %v535_v63  ;;  %3258 = vmatpush.msrb.mxu2 %v599_v0  ;;  %v443_v27 = vld [vmem:[#allocation5 + $0x918] sm:$0xff] }
 0x46b   :  { %3213 = vmatpush.msra.mxu3 %v347_v1  ;;  %3219 = vmatpush.msrb.mxu0 %v467_v2  ;;  %v507_v28 = vld [vmem:[#allocation5 + $0xb18] sm:$0xff]  ;;  %v3894_v2 = vld [vmem:[#allocation2] sm:$0xff] }
 0x46c   :  { %3239 = vmatpush.msrb.mxu1 %v531_v3  ;;  %3259 = vmatpush.msrb.mxu2 %v595_v4  ;;  %v571_v29 = vld [vmem:[#allocation5 + $0xd18] sm:$0xff]  ;;  %v3895_v3 = vld [vmem:[#allocation2 + $0x8] sm:$0xff] }
 0x46d   :  { %3278 = vmatpush.msrb.mxu3 %v663_v5  ;;  %3220 = vmatpush.msrb.mxu0 %v463_v6  ;;  %v639_v30 = vld [vmem:[#allocation5 + $0xf38] sm:$0xff]  ;;  %v3896_v6 = vld [vmem:[#allocation2 + $0x10] sm:$0xff] }
 0x46e   :  { %3240 = vmatpush.msrb.mxu1 %v527_v7  ;;  %3260 = vmatpush.msrb.mxu2 %v591_v8  ;;  %v439_v31 = vld [vmem:[#allocation5 + $0x8f8] sm:$0xff] }
 0x46f   :  { %3279 = vmatpush.msrb.mxu3 %v659_v9  ;;  %3221 = vmatpush.msrb.mxu0 %v459_v11  ;;  %v503_v32 = vld [vmem:[#allocation5 + $0xaf8] sm:$0xff] }
 0x470   :  { %3241 = vmatpush.msrb.mxu1 %v523_v13  ;;  %3261 = vmatpush.msrb.mxu2 %v587_v12  ;;  %v567_v33 = vld [vmem:[#allocation5 + $0xcf8] sm:$0xff] }
 0x471   :  { %3280 = vmatpush.msrb.mxu3 %v655_v14  ;;  %3222 = vmatpush.msrb.mxu0 %v455_v15  ;;  %v635_v34 = vld [vmem:[#allocation5 + $0xf18] sm:$0xff] }
 0x472   :  { %3242 = vmatpush.msrb.mxu1 %v519_v16  ;;  %3262 = vmatpush.msrb.mxu2 %v583_v17  ;;  %v435_v35 = vld [vmem:[#allocation5 + $0x8d8] sm:$0xff] }
 0x473   :  { %3281 = vmatpush.msrb.mxu3 %v651_v18  ;;  %3223 = vmatpush.msrb.mxu0 %v451_v19  ;;  %v499_v36 = vld [vmem:[#allocation5 + $0xad8] sm:$0xff] }
 0x474   :  { %3243 = vmatpush.msrb.mxu1 %v515_v20  ;;  %3263 = vmatpush.msrb.mxu2 %v579_v21  ;;  %v563_v37 = vld [vmem:[#allocation5 + $0xcd8] sm:$0xff] }
 0x475   :  { %3282 = vmatpush.msrb.mxu3 %v647_v22  ;;  %3224 = vmatpush.msrb.mxu0 %v447_v23  ;;  %v631_v38 = vld [vmem:[#allocation5 + $0xef8] sm:$0xff] }
 0x476   :  { %3244 = vmatpush.msrb.mxu1 %v511_v24  ;;  %3264 = vmatpush.msrb.mxu2 %v575_v25  ;;  %v431_v39 = vld [vmem:[#allocation5 + $0x8b8] sm:$0xff]  ;;  %v3898_v24 = vld [vmem:[#allocation2 + $0x30] sm:$0xff] }
 0x477   :  { %3283 = vmatpush.msrb.mxu3 %v643_v26  ;;  %3225 = vmatpush.msrb.mxu0 %v443_v27  ;;  %v495_v40 = vld [vmem:[#allocation5 + $0xab8] sm:$0xff] }
 0x478   :  { %3245 = vmatpush.msrb.mxu1 %v507_v28  ;;  %3265 = vmatpush.msrb.mxu2 %v571_v29  ;;  %v559_v41 = vld [vmem:[#allocation5 + $0xcb8] sm:$0xff]  ;;  %v3899_v28 = vld [vmem:[#allocation2 + $0x20] sm:$0xff] }
 0x479   :  { %3284 = vmatpush.msrb.mxu3 %v639_v30  ;;  %3226 = vmatpush.msrb.mxu0 %v439_v31  ;;  %v627_v42 = vld [vmem:[#allocation5 + $0xed8] sm:$0xff] }
 0x47a   :  { %3246 = vmatpush.msrb.mxu1 %v503_v32  ;;  %3266 = vmatpush.msrb.mxu2 %v567_v33  ;;  %v427_v43 = vld [vmem:[#allocation5 + $0x898] sm:$0xff] }
 0x47b   :  { %3285 = vmatpush.msrb.mxu3 %v635_v34  ;;  %3227 = vmatpush.msrb.mxu0 %v435_v35  ;;  %v491_v44 = vld [vmem:[#allocation5 + $0xa98] sm:$0xff]  ;;  %v3901_v35 = vld [vmem:[#allocation2 + $0x28] sm:$0xff] }
 0x47c   :  { %3247 = vmatpush.msrb.mxu1 %v499_v36  ;;  %3267 = vmatpush.msrb.mxu2 %v563_v37  ;;  %v555_v45 = vld [vmem:[#allocation5 + $0xc98] sm:$0xff] }
 0x47d   :  { %3286 = vmatpush.msrb.mxu3 %v631_v38  ;;  %3228 = vmatpush.msrb.mxu0 %v431_v39  ;;  %v623_v46 = vld [vmem:[#allocation5 + $0xeb8] sm:$0xff] }
 0x47e   :  { %3248 = vmatpush.msrb.mxu1 %v495_v40  ;;  %3268 = vmatpush.msrb.mxu2 %v559_v41  ;;  %v423_v47 = vld [vmem:[#allocation5 + $0x878] sm:$0xff] }
 0x47f   :  { %3287 = vmatpush.msrb.mxu3 %v627_v42  ;;  %v487_v48 = vld [vmem:[#allocation5 + $0xa78] sm:$0xff]  ;;  %3229 = vmatpush.msrb.mxu0 %v427_v43 }
 0x480   :  { %3249 = vmatpush.msrb.mxu1 %v491_v44  ;;  %v551_v49 = vld [vmem:[#allocation5 + $0xc78] sm:$0xff]  ;;  %3269 = vmatpush.msrb.mxu2 %v555_v45 }
 0x481   :  { %v619_v50 = vld [vmem:[#allocation5 + $0xe98] sm:$0xff]  ;;  %3288 = vmatpush.msrb.mxu3 %v623_v46  ;;  %3230 = vmatpush.msrb.mxu0 %v423_v47 }
 0x482   :  { %v419_v51 = vld [vmem:[#allocation5 + $0x858] sm:$0xff]  ;;  %3250 = vmatpush.msrb.mxu1 %v487_v48  ;;  %3270 = vmatpush.msrb.mxu2 %v551_v49 }
 0x483   :  { %v483_v52 = vld [vmem:[#allocation5 + $0xa58] sm:$0xff]  ;;  %3289 = vmatpush.msrb.mxu3 %v619_v50  ;;  %3231 = vmatpush.msrb.mxu0 %v419_v51 }
 0x484   :  { %v547_v53 = vld [vmem:[#allocation5 + $0xc58] sm:$0xff]  ;;  %3251 = vmatpush.msrb.mxu1 %v483_v52  ;;  %3154 = vmatmul.f32.vlgmr.msra.gmra.mxu0 %v3894_v2 }
 0x485   :  { %v615_v54 = vld [vmem:[#allocation5 + $0xe78] sm:$0xff]  ;;  %3271 = vmatpush.msrb.mxu2 %v547_v53  ;;  %3174 = vmatmul.f32.vlgmr.msra.gmra.mxu1 %v3895_v3 }
 0x486   :  { %v415_v55 = vld [vmem:[#allocation5 + $0x838] sm:$0xff]  ;;  %3290 = vmatpush.msrb.mxu3 %v615_v54  ;;  %3194 = vmatmul.f32.vlgmr.msra.gmra.mxu2 %v3896_v6 }
 0x487   :  { %v479_v56 = vld [vmem:[#allocation5 + $0xa38] sm:$0xff]  ;;  %3232 = vmatpush.msrb.mxu0 %v415_v55 }
 0x488   :  { %v543_v57 = vld [vmem:[#allocation5 + $0xc38] sm:$0xff]  ;;  %3252 = vmatpush.msrb.mxu1 %v479_v56 }
 0x489   :  { %v611_v58 = vld [vmem:[#allocation5 + $0xe58] sm:$0xff]  ;;  %3272 = vmatpush.msrb.mxu2 %v543_v57 }
 0x48a   :  { %v411_v59 = vld [vmem:[#allocation5 + $0x818] sm:$0xff]  ;;  %3291 = vmatpush.msrb.mxu3 %v611_v58 }
 0x48b   :  { %v475_v60 = vld [vmem:[#allocation5 + $0xa18] sm:$0xff]  ;;  %3233 = vmatpush.msrb.mxu0 %v411_v59 }
 0x48c   :  { %v539_v61 = vld [vmem:[#allocation5 + $0xc18] sm:$0xff]  ;;  %3253 = vmatpush.msrb.mxu1 %v475_v60  ;;  %3234 = vmatmul.f32.vlgmr.msrb.gmra.mxu0 %v3899_v28  ;;  %v4214_v28 = vpop.f32.mrf.mxu1 }
 0x48d   :  { %v607_v62 = vld [vmem:[#allocation5 + $0xe38] sm:$0xff]  ;;  %3273 = vmatpush.msrb.mxu2 %v539_v61  ;;  %3254 = vmatmul.f32.vlgmr.msrb.gmra.mxu1 %v3901_v35 }
 0x48e   :  { %v727_v63 = vld [vmem:[#allocation5 + $0x11f8] sm:$0xff]  ;;  %3292 = vmatpush.msrb.mxu3 %v607_v62  ;;  %3274 = vmatmul.f32.vlgmr.msrb.gmra.mxu2 %v3898_v24 }
 0x48f   :  { %v791_v0 = vld [vmem:[#allocation5 + $0x13f8] sm:$0xff]  ;;  %3298 = vmatpush.msra.mxu0 %v727_v63 }
 0x490   :  { %v855_v1 = vld [vmem:[#allocation5 + $0x15f8] sm:$0xff]  ;;  %3318 = vmatpush.msra.mxu1 %v791_v0 }
 0x491   :  { %v603_v4 = vld [vmem:[#allocation5 + $0xe18] sm:$0xff]  ;;  %3338 = vmatpush.msra.mxu2 %v855_v1 }
 0x492   :  { %v723_v5 = vld [vmem:[#allocation5 + $0x11d8] sm:$0xff]  ;;  %3293 = vmatpush.msrb.mxu3 %v603_v4 }
 0x493   :  { %v787_v7 = vld [vmem:[#allocation5 + $0x13d8] sm:$0xff]  ;;  %3299 = vmatpush.msra.mxu0 %v723_v5 }
 0x494   :  { %v851_v8 = vld [vmem:[#allocation5 + $0x15d8] sm:$0xff]  ;;  %3319 = vmatpush.msra.mxu1 %v787_v7 }
 0x495   :  { %v919_v9 = vld [vmem:[#allocation5 + $0x17f8] sm:$0xff]  ;;  %3339 = vmatpush.msra.mxu2 %v851_v8 }
 0x496   :  { %v719_v11 = vld [vmem:[#allocation5 + $0x11b8] sm:$0xff] }
 0x497   :  { %v783_v13 = vld [vmem:[#allocation5 + $0x13b8] sm:$0xff]  ;;  %3300 = vmatpush.msra.mxu0 %v719_v11 }
 0x498   :  { %v3897_v12 = vld [vmem:[#allocation2 + $0x18] sm:$0xff]  ;;  %3320 = vmatpush.msra.mxu1 %v783_v13 }
 0x499   :  { %3214 = vmatmul.f32.vlgmr.msra.gmra.mxu3 %v3897_v12  ;;  %v847_v14 = vld [vmem:[#allocation5 + $0x15b8] sm:$0xff]  ;;  %v3902_v12 = vld [vmem:[#allocation2 + $0x40] sm:$0xff] }
 0x49a   :  { %v915_v15 = vld [vmem:[#allocation5 + $0x17d8] sm:$0xff]  ;;  %3358 = vmatpush.msra.mxu3 %v919_v9  ;;  %3340 = vmatpush.msra.mxu2 %v847_v14  ;;  %v3903_v14 = vld [vmem:[#allocation2 + $0x50] sm:$0xff] }
 0x49b   :  { %v715_v16 = vld [vmem:[#allocation5 + $0x1198] sm:$0xff] }
 0x49c   :  { %v779_v17 = vld [vmem:[#allocation5 + $0x1398] sm:$0xff]  ;;  %3359 = vmatpush.msra.mxu3 %v915_v15  ;;  %3301 = vmatpush.msra.mxu0 %v715_v16  ;;  %v4208_v15 = vpop.f32.mrf.mxu2  ;;  %v4210_v16 = vpop.f32.mrf.mxu0 }
 0x49d   :  { %v843_v18 = vld [vmem:[#allocation5 + $0x1598] sm:$0xff]  ;;  %3321 = vmatpush.msra.mxu1 %v779_v17 }
 0x49e   :  { %v911_v19 = vld [vmem:[#allocation5 + $0x17b8] sm:$0xff]  ;;  %3341 = vmatpush.msra.mxu2 %v843_v18 }
 0x49f   :  { %v711_v20 = vld [vmem:[#allocation5 + $0x1178] sm:$0xff]  ;;  %3360 = vmatpush.msra.mxu3 %v911_v19 }
 0x4a0   :  { %v775_v21 = vld [vmem:[#allocation5 + $0x1378] sm:$0xff]  ;;  %3302 = vmatpush.msra.mxu0 %v711_v20 }
 0x4a1   :  { %v839_v22 = vld [vmem:[#allocation5 + $0x1578] sm:$0xff]  ;;  %3322 = vmatpush.msra.mxu1 %v775_v21  ;;  %v3904_v21 = vld [vmem:[#allocation2 + $0x48] sm:$0xff] }
 0x4a2   :  { %v907_v23 = vld [vmem:[#allocation5 + $0x1798] sm:$0xff]  ;;  %3342 = vmatpush.msra.mxu2 %v839_v22 }
 0x4a3   :  { %v707_v25 = vld [vmem:[#allocation5 + $0x1158] sm:$0xff]  ;;  %3361 = vmatpush.msra.mxu3 %v907_v23 }
 0x4a4   :  { %v771_v26 = vld [vmem:[#allocation5 + $0x1358] sm:$0xff]  ;;  %3303 = vmatpush.msra.mxu0 %v707_v25 }
 0x4a5   :  { %v835_v27 = vld [vmem:[#allocation5 + $0x1558] sm:$0xff]  ;;  %3323 = vmatpush.msra.mxu1 %v771_v26 }
 0x4a6   :  { %v903_v29 = vld [vmem:[#allocation5 + $0x1778] sm:$0xff]  ;;  %3343 = vmatpush.msra.mxu2 %v835_v27  ;;  %v4212_v27 = vpop.f32.mrf.mxu3 }
 0x4a7   :  { %v3900_v30 = vld [vmem:[#allocation2 + $0x38] sm:$0xff]  ;;  %3362 = vmatpush.msra.mxu3 %v903_v29 }
 0x4a8   :  { %3294 = vmatmul.f32.vlgmr.msrb.gmra.mxu3 %v3900_v30  ;;  %v703_v31 = vld [vmem:[#allocation5 + $0x1138] sm:$0xff] }
 0x4a9   :  { %v767_v32 = vld [vmem:[#allocation5 + $0x1338] sm:$0xff]  ;;  %3304 = vmatpush.msra.mxu0 %v703_v31 }
 0x4aa   :  { %v831_v33 = vld [vmem:[#allocation5 + $0x1538] sm:$0xff]  ;;  %3324 = vmatpush.msra.mxu1 %v767_v32 }
 0x4ab   :  { %v899_v34 = vld [vmem:[#allocation5 + $0x1758] sm:$0xff]  ;;  %3344 = vmatpush.msra.mxu2 %v831_v33 }
 0x4ac   :  { %v699_v36 = vld [vmem:[#allocation5 + $0x1118] sm:$0xff]  ;;  %3363 = vmatpush.msra.mxu3 %v899_v34 }
 0x4ad   :  { %v763_v37 = vld [vmem:[#allocation5 + $0x1318] sm:$0xff]  ;;  %3305 = vmatpush.msra.mxu0 %v699_v36 }
 0x4ae   :  { %v827_v38 = vld [vmem:[#allocation5 + $0x1518] sm:$0xff]  ;;  %3325 = vmatpush.msra.mxu1 %v763_v37  ;;  %v4216_v37 = vpop.f32.mrf.mxu2 }
 0x4af   :  { %v895_v39 = vld [vmem:[#allocation5 + $0x1738] sm:$0xff]  ;;  %3345 = vmatpush.msra.mxu2 %v827_v38 }
 0x4b0   :  { %v695_v40 = vld [vmem:[#allocation5 + $0x10f8] sm:$0xff]  ;;  %3364 = vmatpush.msra.mxu3 %v895_v39 }
 0x4b1   :  { %v759_v41 = vld [vmem:[#allocation5 + $0x12f8] sm:$0xff]  ;;  %3306 = vmatpush.msra.mxu0 %v695_v40 }
 0x4b2   :  { %v823_v42 = vld [vmem:[#allocation5 + $0x14f8] sm:$0xff]  ;;  %3326 = vmatpush.msra.mxu1 %v759_v41 }
 0x4b3   :  { %v891_v43 = vld [vmem:[#allocation5 + $0x1718] sm:$0xff]  ;;  %3346 = vmatpush.msra.mxu2 %v823_v42  ;;  %v4218_v42 = vpop.f32.mrf.mxu0 }
 0x4b4   :  { %v691_v44 = vld [vmem:[#allocation5 + $0x10d8] sm:$0xff]  ;;  %3365 = vmatpush.msra.mxu3 %v891_v43 }
 0x4b5   :  { %v755_v45 = vld [vmem:[#allocation5 + $0x12d8] sm:$0xff]  ;;  %3307 = vmatpush.msra.mxu0 %v691_v44 }
 0x4b6   :  { %v819_v46 = vld [vmem:[#allocation5 + $0x14d8] sm:$0xff]  ;;  %3327 = vmatpush.msra.mxu1 %v755_v45 }
 0x4b7   :  { %v887_v47 = vld [vmem:[#allocation5 + $0x16f8] sm:$0xff]  ;;  %3347 = vmatpush.msra.mxu2 %v819_v46 }
 0x4b8   :  { %v687_v48 = vld [vmem:[#allocation5 + $0x10b8] sm:$0xff]  ;;  %3366 = vmatpush.msra.mxu3 %v887_v47  ;;  %v4220_v47 = vpop.f32.mrf.mxu3 }
 0x4b9   :  { %v751_v49 = vld [vmem:[#allocation5 + $0x12b8] sm:$0xff]  ;;  %3308 = vmatpush.msra.mxu0 %v687_v48 }
 0x4ba   :  { %v815_v50 = vld [vmem:[#allocation5 + $0x14b8] sm:$0xff]  ;;  %3328 = vmatpush.msra.mxu1 %v751_v49 }
 0x4bb   :  { %v883_v51 = vld [vmem:[#allocation5 + $0x16d8] sm:$0xff]  ;;  %3348 = vmatpush.msra.mxu2 %v815_v50 }
 0x4bc   :  { %v683_v52 = vld [vmem:[#allocation5 + $0x1098] sm:$0xff]  ;;  %3367 = vmatpush.msra.mxu3 %v883_v51 }
 0x4bd   :  { %v747_v53 = vld [vmem:[#allocation5 + $0x1298] sm:$0xff]  ;;  %3309 = vmatpush.msra.mxu0 %v683_v52  ;;  %v4222_v52 = vpop.f32.mrf.mxu1 }
 0x4be   :  { %v811_v54 = vld [vmem:[#allocation5 + $0x1498] sm:$0xff]  ;;  %3329 = vmatpush.msra.mxu1 %v747_v53 }
 0x4bf   :  { %v879_v55 = vld [vmem:[#allocation5 + $0x16b8] sm:$0xff]  ;;  %3349 = vmatpush.msra.mxu2 %v811_v54 }
 0x4c0   :  { %v679_v56 = vld [vmem:[#allocation5 + $0x1078] sm:$0xff]  ;;  %3368 = vmatpush.msra.mxu3 %v879_v55 }
 0x4c1   :  { %v743_v57 = vld [vmem:[#allocation5 + $0x1278] sm:$0xff]  ;;  %3310 = vmatpush.msra.mxu0 %v679_v56 }
 0x4c2   :  { %v807_v58 = vld [vmem:[#allocation5 + $0x1478] sm:$0xff]  ;;  %3330 = vmatpush.msra.mxu1 %v743_v57 }
 0x4c3   :  { %v875_v59 = vld [vmem:[#allocation5 + $0x1698] sm:$0xff]  ;;  %3350 = vmatpush.msra.mxu2 %v807_v58 }
 0x4c4   :  { %v675_v60 = vld [vmem:[#allocation5 + $0x1058] sm:$0xff]  ;;  %3369 = vmatpush.msra.mxu3 %v875_v59 }
 0x4c5   :  { %v739_v61 = vld [vmem:[#allocation5 + $0x1258] sm:$0xff]  ;;  %3311 = vmatpush.msra.mxu0 %v675_v60 }
 0x4c6   :  { %v803_v62 = vld [vmem:[#allocation5 + $0x1458] sm:$0xff]  ;;  %3331 = vmatpush.msra.mxu1 %v739_v61  ;;  %v4224_v61 = vpop.f32.mrf.mxu2 }
 0x4c7   :  { %v871_v63 = vld [vmem:[#allocation5 + $0x1678] sm:$0xff]  ;;  %3351 = vmatpush.msra.mxu2 %v803_v62  ;;  %v4226_v62 = vpop.f32.mrf.mxu0 }
 0x4c8   :  { %v671_v0 = vld [vmem:[#allocation5 + $0x1038] sm:$0xff]  ;;  %3370 = vmatpush.msra.mxu3 %v871_v63 }
 0x4c9   :  { %v735_v1 = vld [vmem:[#allocation5 + $0x1238] sm:$0xff]  ;;  %3312 = vmatpush.msra.mxu0 %v671_v0 }
 0x4ca   :  { %v799_v2 = vld [vmem:[#allocation5 + $0x1438] sm:$0xff]  ;;  %3332 = vmatpush.msra.mxu1 %v735_v1 }
 0x4cb   :  { %v867_v3 = vld [vmem:[#allocation5 + $0x1658] sm:$0xff]  ;;  %3352 = vmatpush.msra.mxu2 %v799_v2 }
 0x4cc   :  { %v667_v4 = vld [vmem:[#allocation5 + $0x1018] sm:$0xff]  ;;  %3371 = vmatpush.msra.mxu3 %v867_v3 }
 0x4cd   :  { %v731_v5 = vld [vmem:[#allocation5 + $0x1218] sm:$0xff]  ;;  %3313 = vmatpush.msra.mxu0 %v667_v4 }
 0x4ce   :  { %v795_v6 = vld [vmem:[#allocation5 + $0x1418] sm:$0xff]  ;;  %3333 = vmatpush.msra.mxu1 %v731_v5  ;;  %3314 = vmatmul.f32.vlgmr.msra.gmra.mxu0 %v3902_v12 }
 0x4cf   :  { %v863_v7 = vld [vmem:[#allocation5 + $0x1638] sm:$0xff]  ;;  %3353 = vmatpush.msra.mxu2 %v795_v6  ;;  %3334 = vmatmul.f32.vlgmr.msra.gmra.mxu1 %v3904_v21  ;;  %v4234_v21 = vpop.f32.mrf.mxu0 }
 0x4d0   :  { %v983_v8 = vld [vmem:[#allocation5 + $0x19f8] sm:$0xff]  ;;  %3372 = vmatpush.msra.mxu3 %v863_v7  ;;  %3354 = vmatmul.f32.vlgmr.msra.gmra.mxu2 %v3903_v14  ;;  %v4228_v7 = vpop.f32.mrf.mxu3 }
 0x4d1   :  { %v1047_v9 = vld [vmem:[#allocation5 + $0x1bf8] sm:$0xff]  ;;  %3378 = vmatpush.msrb.mxu0 %v983_v8  ;;  %v4230_v8 = vpop.f32.mrf.mxu1 }
 0x4d2   :  { %v1111_v11 = vld [vmem:[#allocation5 + $0x1df8] sm:$0xff]  ;;  %3398 = vmatpush.msrb.mxu1 %v1047_v9 }
 0x4d3   :  { %v859_v13 = vld [vmem:[#allocation5 + $0x1618] sm:$0xff]  ;;  %3418 = vmatpush.msrb.mxu2 %v1111_v11 }
 0x4d4   :  { %v979_v17 = vld [vmem:[#allocation5 + $0x19d8] sm:$0xff]  ;;  %3373 = vmatpush.msra.mxu3 %v859_v13 }
 0x4d5   :  { %v1043_v18 = vld [vmem:[#allocation5 + $0x1bd8] sm:$0xff]  ;;  %3379 = vmatpush.msrb.mxu0 %v979_v17 }
 0x4d6   :  { %v1107_v19 = vld [vmem:[#allocation5 + $0x1dd8] sm:$0xff]  ;;  %3399 = vmatpush.msrb.mxu1 %v1043_v18 }
 0x4d7   :  { %v1175_v20 = vld [vmem:[#allocation5 + $0x1ff8] sm:$0xff]  ;;  %3419 = vmatpush.msrb.mxu2 %v1107_v19 }
 0x4d8   :  { %v3905_v22 = vld [vmem:[#allocation2 + $0x58] sm:$0xff]  ;;  %3438 = vmatpush.msrb.mxu3 %v1175_v20  ;;  %v4232_v20 = vpop.f32.mrf.mxu2 }
 0x4d9   :  { %3374 = vmatmul.f32.vlgmr.msra.gmra.mxu3 %v3905_v22  ;;  %v975_v23 = vld [vmem:[#allocation5 + $0x19b8] sm:$0xff] }
 0x4da   :  { %v1039_v24 = vld [vmem:[#allocation5 + $0x1bb8] sm:$0xff]  ;;  %3380 = vmatpush.msrb.mxu0 %v975_v23 }
 0x4db   :  { %v1103_v25 = vld [vmem:[#allocation5 + $0x1db8] sm:$0xff]  ;;  %3400 = vmatpush.msrb.mxu1 %v1039_v24 }
 0x4dc   :  { %v1171_v26 = vld [vmem:[#allocation5 + $0x1fd8] sm:$0xff]  ;;  %3420 = vmatpush.msrb.mxu2 %v1103_v25 }
 0x4dd   :  { %v971_v29 = vld [vmem:[#allocation5 + $0x1998] sm:$0xff]  ;;  %3439 = vmatpush.msrb.mxu3 %v1171_v26 }
 0x4de   :  { %v1035_v30 = vld [vmem:[#allocation5 + $0x1b98] sm:$0xff]  ;;  %3381 = vmatpush.msrb.mxu0 %v971_v29 }
 0x4df   :  { %v1099_v31 = vld [vmem:[#allocation5 + $0x1d98] sm:$0xff]  ;;  %3401 = vmatpush.msrb.mxu1 %v1035_v30 }
 0x4e0   :  { %v1167_v32 = vld [vmem:[#allocation5 + $0x1fb8] sm:$0xff]  ;;  %3421 = vmatpush.msrb.mxu2 %v1099_v31 }
 0x4e1   :  { %v967_v33 = vld [vmem:[#allocation5 + $0x1978] sm:$0xff]  ;;  %3440 = vmatpush.msrb.mxu3 %v1167_v32  ;;  %v4236_v32 = vpop.f32.mrf.mxu3 }
 0x4e2   :  { %v1031_v34 = vld [vmem:[#allocation5 + $0x1b78] sm:$0xff]  ;;  %3382 = vmatpush.msrb.mxu0 %v967_v33  ;;  %v4238_v33 = vpop.f32.mrf.mxu1 }
 0x4e3   :  { %v1095_v35 = vld [vmem:[#allocation5 + $0x1d78] sm:$0xff]  ;;  %3402 = vmatpush.msrb.mxu1 %v1031_v34 }
 0x4e4   :  { %v1163_v36 = vld [vmem:[#allocation5 + $0x1f98] sm:$0xff]  ;;  %3422 = vmatpush.msrb.mxu2 %v1095_v35 }
 0x4e5   :  { %v963_v38 = vld [vmem:[#allocation5 + $0x1958] sm:$0xff]  ;;  %3441 = vmatpush.msrb.mxu3 %v1163_v36 }
 0x4e6   :  { %v1027_v39 = vld [vmem:[#allocation5 + $0x1b58] sm:$0xff]  ;;  %3383 = vmatpush.msrb.mxu0 %v963_v38 }
 0x4e7   :  { %v1091_v40 = vld [vmem:[#allocation5 + $0x1d58] sm:$0xff]  ;;  %3403 = vmatpush.msrb.mxu1 %v1027_v39  ;;  %v3906_v39 = vld [vmem:[#allocation2 + $0x60] sm:$0xff] }
 0x4e8   :  { %v1159_v41 = vld [vmem:[#allocation5 + $0x1f78] sm:$0xff]  ;;  %3423 = vmatpush.msrb.mxu2 %v1091_v40  ;;  %v3907_v40 = vld [vmem:[#allocation2 + $0x70] sm:$0xff] }
 0x4e9   :  { %v959_v43 = vld [vmem:[#allocation5 + $0x1938] sm:$0xff]  ;;  %3442 = vmatpush.msrb.mxu3 %v1159_v41  ;;  %v4240_v41 = vpop.f32.mrf.mxu2 }
 0x4ea   :  { %v1023_v44 = vld [vmem:[#allocation5 + $0x1b38] sm:$0xff]  ;;  %3384 = vmatpush.msrb.mxu0 %v959_v43  ;;  %v4242_v43 = vpop.f32.mrf.mxu0 }
 0x4eb   :  { %v1087_v45 = vld [vmem:[#allocation5 + $0x1d38] sm:$0xff]  ;;  %3404 = vmatpush.msrb.mxu1 %v1023_v44 }
 0x4ec   :  { %v1155_v46 = vld [vmem:[#allocation5 + $0x1f58] sm:$0xff]  ;;  %3424 = vmatpush.msrb.mxu2 %v1087_v45 }
 0x4ed   :  { %v955_v48 = vld [vmem:[#allocation5 + $0x1918] sm:$0xff]  ;;  %3443 = vmatpush.msrb.mxu3 %v1155_v46 }
 0x4ee   :  { %v1019_v49 = vld [vmem:[#allocation5 + $0x1b18] sm:$0xff]  ;;  %3385 = vmatpush.msrb.mxu0 %v955_v48 }
 0x4ef   :  { %v1083_v50 = vld [vmem:[#allocation5 + $0x1d18] sm:$0xff]  ;;  %3405 = vmatpush.msrb.mxu1 %v1019_v49  ;;  %v3908_v49 = vld [vmem:[#allocation2 + $0x68] sm:$0xff] }
 0x4f0   :  { %v1151_v51 = vld [vmem:[#allocation5 + $0x1f38] sm:$0xff]  ;;  %3425 = vmatpush.msrb.mxu2 %v1083_v50 }
 0x4f1   :  { %v951_v53 = vld [vmem:[#allocation5 + $0x18f8] sm:$0xff]  ;;  %3444 = vmatpush.msrb.mxu3 %v1151_v51 }
 0x4f2   :  { %v1015_v54 = vld [vmem:[#allocation5 + $0x1af8] sm:$0xff]  ;;  %3386 = vmatpush.msrb.mxu0 %v951_v53 }
 0x4f3   :  { %v1079_v55 = vld [vmem:[#allocation5 + $0x1cf8] sm:$0xff]  ;;  %3406 = vmatpush.msrb.mxu1 %v1015_v54 }
 0x4f4   :  { %v1147_v56 = vld [vmem:[#allocation5 + $0x1f18] sm:$0xff]  ;;  %3426 = vmatpush.msrb.mxu2 %v1079_v55 }
 0x4f5   :  { %v947_v57 = vld [vmem:[#allocation5 + $0x18d8] sm:$0xff]  ;;  %3445 = vmatpush.msrb.mxu3 %v1147_v56  ;;  %v4244_v56 = vpop.f32.mrf.mxu3 }
 0x4f6   :  { %v1011_v58 = vld [vmem:[#allocation5 + $0x1ad8] sm:$0xff]  ;;  %3387 = vmatpush.msrb.mxu0 %v947_v57  ;;  %v4246_v57 = vpop.f32.mrf.mxu1 }
 0x4f7   :  { %v1075_v59 = vld [vmem:[#allocation5 + $0x1cd8] sm:$0xff]  ;;  %3407 = vmatpush.msrb.mxu1 %v1011_v58 }
 0x4f8   :  { %v1143_v60 = vld [vmem:[#allocation5 + $0x1ef8] sm:$0xff]  ;;  %3427 = vmatpush.msrb.mxu2 %v1075_v59 }
 0x4f9   :  { %v943_v63 = vld [vmem:[#allocation5 + $0x18b8] sm:$0xff]  ;;  %3446 = vmatpush.msrb.mxu3 %v1143_v60 }
 0x4fa   :  { %v1007_v0 = vld [vmem:[#allocation5 + $0x1ab8] sm:$0xff]  ;;  %3388 = vmatpush.msrb.mxu0 %v943_v63 }
 0x4fb   :  { %v1071_v1 = vld [vmem:[#allocation5 + $0x1cb8] sm:$0xff]  ;;  %3408 = vmatpush.msrb.mxu1 %v1007_v0 }
 0x4fc   :  { %v1139_v2 = vld [vmem:[#allocation5 + $0x1ed8] sm:$0xff]  ;;  %3428 = vmatpush.msrb.mxu2 %v1071_v1 }
 0x4fd   :  { %v939_v3 = vld [vmem:[#allocation5 + $0x1898] sm:$0xff]  ;;  %3447 = vmatpush.msrb.mxu3 %v1139_v2 }
 0x4fe   :  { %v1003_v4 = vld [vmem:[#allocation5 + $0x1a98] sm:$0xff]  ;;  %3389 = vmatpush.msrb.mxu0 %v939_v3 }
 0x4ff   :  { %v1067_v5 = vld [vmem:[#allocation5 + $0x1c98] sm:$0xff]  ;;  %3409 = vmatpush.msrb.mxu1 %v1003_v4  ;;  %v4248_v4 = vpop.f32.mrf.mxu2 }
 0x500   :  { %v1135_v6 = vld [vmem:[#allocation5 + $0x1eb8] sm:$0xff]  ;;  %3429 = vmatpush.msrb.mxu2 %v1067_v5  ;;  %v4250_v5 = vpop.f32.mrf.mxu0 }
 0x501   :  { %v935_v9 = vld [vmem:[#allocation5 + $0x1878] sm:$0xff]  ;;  %3448 = vmatpush.msrb.mxu3 %v1135_v6 }
 0x502   :  { %v999_v11 = vld [vmem:[#allocation5 + $0x1a78] sm:$0xff]  ;;  %3390 = vmatpush.msrb.mxu0 %v935_v9 }
 0x503   :  { %v1063_v13 = vld [vmem:[#allocation5 + $0x1c78] sm:$0xff]  ;;  %3410 = vmatpush.msrb.mxu1 %v999_v11 }
 0x504   :  { %v1131_v12 = vld [vmem:[#allocation5 + $0x1e98] sm:$0xff]  ;;  %3430 = vmatpush.msrb.mxu2 %v1063_v13 }
 0x505   :  { %v931_v14 = vld [vmem:[#allocation5 + $0x1858] sm:$0xff]  ;;  %3449 = vmatpush.msrb.mxu3 %v1131_v12 }
 0x506   :  { %v995_v17 = vld [vmem:[#allocation5 + $0x1a58] sm:$0xff]  ;;  %3391 = vmatpush.msrb.mxu0 %v931_v14 }
 0x507   :  { %v1059_v18 = vld [vmem:[#allocation5 + $0x1c58] sm:$0xff]  ;;  %3411 = vmatpush.msrb.mxu1 %v995_v17 }
 0x508   :  { %v1127_v19 = vld [vmem:[#allocation5 + $0x1e78] sm:$0xff]  ;;  %3431 = vmatpush.msrb.mxu2 %v1059_v18 }
 0x509   :  { %v927_v22 = vld [vmem:[#allocation5 + $0x1838] sm:$0xff]  ;;  %3450 = vmatpush.msrb.mxu3 %v1127_v19  ;;  %v4252_v19 = vpop.f32.mrf.mxu3 }
 0x50a   :  { %v991_v23 = vld [vmem:[#allocation5 + $0x1a38] sm:$0xff]  ;;  %3392 = vmatpush.msrb.mxu0 %v927_v22  ;;  %v4254_v22 = vpop.f32.mrf.mxu1 }
 0x50b   :  { %v1055_v24 = vld [vmem:[#allocation5 + $0x1c38] sm:$0xff]  ;;  %3412 = vmatpush.msrb.mxu1 %v991_v23 }
 0x50c   :  { %v1123_v25 = vld [vmem:[#allocation5 + $0x1e58] sm:$0xff]  ;;  %3432 = vmatpush.msrb.mxu2 %v1055_v24 }
 0x50d   :  { %v923_v26 = vld [vmem:[#allocation5 + $0x1818] sm:$0xff]  ;;  %3451 = vmatpush.msrb.mxu3 %v1123_v25 }
 0x50e   :  { %v987_v29 = vld [vmem:[#allocation5 + $0x1a18] sm:$0xff]  ;;  %3393 = vmatpush.msrb.mxu0 %v923_v26 }
 0x50f   :  { %v1051_v30 = vld [vmem:[#allocation5 + $0x1c18] sm:$0xff]  ;;  %3413 = vmatpush.msrb.mxu1 %v987_v29  ;;  %3394 = vmatmul.f32.vlgmr.msrb.gmra.mxu0 %v3906_v39  ;;  %v4260_v39 = vpop.f32.mrf.mxu2 }
 0x510   :  { %v1119_v31 = vld [vmem:[#allocation5 + $0x1e38] sm:$0xff]  ;;  %3433 = vmatpush.msrb.mxu2 %v1051_v30  ;;  %3414 = vmatmul.f32.vlgmr.msrb.gmra.mxu1 %v3908_v49 }
 0x511   :  { %v1239_v34 = vld [vmem:[#allocation5 + $0x21f8] sm:$0xff]  ;;  %3452 = vmatpush.msrb.mxu3 %v1119_v31  ;;  %3434 = vmatmul.f32.vlgmr.msrb.gmra.mxu2 %v3907_v40  ;;  %v4256_v31 = vld [vmem:[#allocation7] sm:$0xf]  ;;  %v2675_v40 = vpop.f32.mrf.mxu0 }
 0x512   :  { %v1303_v35 = vld [vmem:[#allocation5 + $0x23f8] sm:$0xff]  ;;  %3458 = vmatpush.msra.mxu0 %v1239_v34  ;;  %v1691_v34 = vperm.slane %v4256_v31, 1 }
 0x513   :  { %v1367_v36 = vld [vmem:[#allocation5 + $0x25f8] sm:$0xff]  ;;  %3478 = vmatpush.msra.mxu1 %v1303_v35  ;;  %v1692_v35 = vperm.slane %v4256_v31, 2 }
 0x514   :  { %v1115_v38 = vld [vmem:[#allocation5 + $0x1e18] sm:$0xff]  ;;  %3498 = vmatpush.msra.mxu2 %v1367_v36 }
 0x515   :  { %v1235_v44 = vld [vmem:[#allocation5 + $0x21d8] sm:$0xff]  ;;  %3453 = vmatpush.msrb.mxu3 %v1115_v38 }
 0x516   :  { %v1299_v45 = vld [vmem:[#allocation5 + $0x23d8] sm:$0xff]  ;;  %3459 = vmatpush.msra.mxu0 %v1235_v44 }
 0x517   :  { %v1363_v46 = vld [vmem:[#allocation5 + $0x25d8] sm:$0xff]  ;;  %3479 = vmatpush.msra.mxu1 %v1299_v45 }
 0x518   :  { %v1431_v48 = vld [vmem:[#allocation5 + $0x27f8] sm:$0xff]  ;;  %3499 = vmatpush.msra.mxu2 %v1363_v46 }
 0x519   :  { %v3909_v50 = vld [vmem:[#allocation2 + $0x78] sm:$0xff]  ;;  %3518 = vmatpush.msra.mxu3 %v1431_v48 }
 0x51a   :  { %3454 = vmatmul.f32.vlgmr.msrb.gmra.mxu3 %v3909_v50  ;;  %v1231_v51 = vld [vmem:[#allocation5 + $0x21b8] sm:$0xff] }
 0x51b   :  { %v1295_v53 = vld [vmem:[#allocation5 + $0x23b8] sm:$0xff]  ;;  %3460 = vmatpush.msra.mxu0 %v1231_v51  ;;  %v2196_v51 = vadd.f32 %v4210_v16, %v1691_v34 }
 0x51c   :  { %v1359_v54 = vld [vmem:[#allocation5 + $0x25b8] sm:$0xff]  ;;  %3480 = vmatpush.msra.mxu1 %v1295_v53  ;;  %v2676_v53 = vadd.f32 %v2675_v40, %v1692_v35 }
 0x51d   :  { %v1427_v55 = vld [vmem:[#allocation5 + $0x27d8] sm:$0xff]  ;;  %3500 = vmatpush.msra.mxu2 %v1359_v54 }
 0x51e   :  { %v1227_v58 = vld [vmem:[#allocation5 + $0x2198] sm:$0xff]  ;;  %3519 = vmatpush.msra.mxu3 %v1427_v55 }
 0x51f   :  { %v1291_v59 = vld [vmem:[#allocation5 + $0x2398] sm:$0xff]  ;;  %3461 = vmatpush.msra.mxu0 %v1227_v58  ;;  %v4263_v58 = vpop.f32.mrf.mxu3 }
 0x520   :  { %v1355_v60 = vld [vmem:[#allocation5 + $0x2598] sm:$0xff]  ;;  %3481 = vmatpush.msra.mxu1 %v1291_v59  ;;  %v2695_v59 = vpop.f32.mrf.mxu1 }
 0x521   :  { %v1423_v63 = vld [vmem:[#allocation5 + $0x27b8] sm:$0xff]  ;;  %3501 = vmatpush.msra.mxu2 %v1355_v60 }
 0x522   :  { %v1223_v0 = vld [vmem:[#allocation5 + $0x2178] sm:$0xff]  ;;  %3520 = vmatpush.msra.mxu3 %v1423_v63 }
 0x523   :  { %v1287_v1 = vld [vmem:[#allocation5 + $0x2378] sm:$0xff]  ;;  %3462 = vmatpush.msra.mxu0 %v1223_v0 }
 0x524   :  { %v1351_v2 = vld [vmem:[#allocation5 + $0x2578] sm:$0xff]  ;;  %3482 = vmatpush.msra.mxu1 %v1287_v1 }
 0x525   :  { %v1419_v3 = vld [vmem:[#allocation5 + $0x2798] sm:$0xff]  ;;  %3502 = vmatpush.msra.mxu2 %v1351_v2 }
 0x526   :  { %v1219_v6 = vld [vmem:[#allocation5 + $0x2158] sm:$0xff]  ;;  %3521 = vmatpush.msra.mxu3 %v1419_v3  ;;  %v2216_v3 = vadd.f32 %v4214_v28, %v2196_v51  ;;  %v3912_v51 = vld [vmem:[#allocation2 + $0x90] sm:$0xff] }
 0x527   :  { %v1283_v9 = vld [vmem:[#allocation5 + $0x2358] sm:$0xff]  ;;  %3463 = vmatpush.msra.mxu0 %v1219_v6  ;;  %v2696_v6 = vadd.f32 %v2695_v59, %v2676_v53 }
 0x528   :  { %v1347_v11 = vld [vmem:[#allocation5 + $0x2558] sm:$0xff]  ;;  %3483 = vmatpush.msra.mxu1 %v1283_v9  ;;  %v2236_v28 = vadd.f32 %v4216_v37, %v2216_v3 }
 0x529   :  { %v1415_v13 = vld [vmem:[#allocation5 + $0x2778] sm:$0xff]  ;;  %3503 = vmatpush.msra.mxu2 %v1347_v11 }
 0x52a   :  { %v1215_v12 = vld [vmem:[#allocation5 + $0x2138] sm:$0xff]  ;;  %3522 = vmatpush.msra.mxu3 %v1415_v13  ;;  %v2715_v13 = vpop.f32.mrf.mxu2  ;;  %v2256_v40 = vadd.f32 %v4220_v47, %v2236_v28 }
 0x52b   :  { %v1279_v14 = vld [vmem:[#allocation5 + $0x2338] sm:$0xff]  ;;  %3464 = vmatpush.msra.mxu0 %v1215_v12 }
 0x52c   :  { %v1343_v17 = vld [vmem:[#allocation5 + $0x2538] sm:$0xff]  ;;  %3484 = vmatpush.msra.mxu1 %v1279_v14  ;;  %v2276_v47 = vadd.f32 %v4218_v42, %v2256_v40 }
 0x52d   :  { %v1411_v18 = vld [vmem:[#allocation5 + $0x2758] sm:$0xff]  ;;  %3504 = vmatpush.msra.mxu2 %v1343_v17 }
 0x52e   :  { %v1211_v23 = vld [vmem:[#allocation5 + $0x2118] sm:$0xff]  ;;  %3523 = vmatpush.msra.mxu3 %v1411_v18 }
 0x52f   :  { %v1275_v24 = vld [vmem:[#allocation5 + $0x2318] sm:$0xff]  ;;  %3465 = vmatpush.msra.mxu0 %v1211_v23 }
 0x530   :  { %v1339_v25 = vld [vmem:[#allocation5 + $0x2518] sm:$0xff]  ;;  %3485 = vmatpush.msra.mxu1 %v1275_v24 }
 0x531   :  { %v1407_v26 = vld [vmem:[#allocation5 + $0x2738] sm:$0xff]  ;;  %3505 = vmatpush.msra.mxu2 %v1339_v25  ;;  %v2716_v25 = vadd.f32 %v2715_v13, %v2696_v6 }
 0x532   :  { %v1207_v29 = vld [vmem:[#allocation5 + $0x20f8] sm:$0xff]  ;;  %3524 = vmatpush.msra.mxu3 %v1407_v26 }
 0x533   :  { %v1271_v30 = vld [vmem:[#allocation5 + $0x22f8] sm:$0xff]  ;;  %3466 = vmatpush.msra.mxu0 %v1207_v29 }
 0x534   :  { %v1335_v36 = vld [vmem:[#allocation5 + $0x24f8] sm:$0xff]  ;;  %3486 = vmatpush.msra.mxu1 %v1271_v30  ;;  %v2735_v30 = vpop.f32.mrf.mxu3 }
 0x535   :  { %v1403_v38 = vld [vmem:[#allocation5 + $0x2718] sm:$0xff]  ;;  %3506 = vmatpush.msra.mxu2 %v1335_v36 }
 0x536   :  { %v1203_v44 = vld [vmem:[#allocation5 + $0x20d8] sm:$0xff]  ;;  %3525 = vmatpush.msra.mxu3 %v1403_v38 }
 0x537   :  { %v1267_v45 = vld [vmem:[#allocation5 + $0x22d8] sm:$0xff]  ;;  %3467 = vmatpush.msra.mxu0 %v1203_v44  ;;  %v2736_v44 = vadd.f32 %v2735_v30, %v2716_v25 }
 0x538   :  { %v1331_v46 = vld [vmem:[#allocation5 + $0x24d8] sm:$0xff]  ;;  %3487 = vmatpush.msra.mxu1 %v1267_v45 }
 0x539   :  { %v1399_v48 = vld [vmem:[#allocation5 + $0x26f8] sm:$0xff]  ;;  %3507 = vmatpush.msra.mxu2 %v1331_v46  ;;  %v2755_v46 = vpop.f32.mrf.mxu0 }
 0x53a   :  { %v1199_v49 = vld [vmem:[#allocation5 + $0x20b8] sm:$0xff]  ;;  %3526 = vmatpush.msra.mxu3 %v1399_v48 }
 0x53b   :  { %v1263_v50 = vld [vmem:[#allocation5 + $0x22b8] sm:$0xff]  ;;  %3468 = vmatpush.msra.mxu0 %v1199_v49 }
 0x53c   :  { %v1327_v54 = vld [vmem:[#allocation5 + $0x24b8] sm:$0xff]  ;;  %3488 = vmatpush.msra.mxu1 %v1263_v50  ;;  %v3911_v50 = vld [vmem:[#allocation2 + $0x80] sm:$0xff] }
 0x53d   :  { %v1395_v55 = vld [vmem:[#allocation5 + $0x26d8] sm:$0xff]  ;;  %3508 = vmatpush.msra.mxu2 %v1327_v54 }
 0x53e   :  { %v1195_v60 = vld [vmem:[#allocation5 + $0x2098] sm:$0xff]  ;;  %3527 = vmatpush.msra.mxu3 %v1395_v55  ;;  %v2756_v55 = vadd.f32 %v2755_v46, %v2736_v44 }
 0x53f   :  { %v1259_v63 = vld [vmem:[#allocation5 + $0x2298] sm:$0xff]  ;;  %3469 = vmatpush.msra.mxu0 %v1195_v60 }
 0x540   :  { %v1323_v0 = vld [vmem:[#allocation5 + $0x2498] sm:$0xff]  ;;  %3489 = vmatpush.msra.mxu1 %v1259_v63  ;;  %v2775_v63 = vpop.f32.mrf.mxu1 }
 0x541   :  { %v1391_v1 = vld [vmem:[#allocation5 + $0x26b8] sm:$0xff]  ;;  %3509 = vmatpush.msra.mxu2 %v1323_v0  ;;  %v3913_v0 = vld [vmem:[#allocation2 + $0x88] sm:$0xff]  ;;  %v2776_v13 = vadd.f32 %v2775_v63, %v2756_v55 }
 0x542   :  { %v1191_v2 = vld [vmem:[#allocation5 + $0x2078] sm:$0xff]  ;;  %3528 = vmatpush.msra.mxu3 %v1391_v1 }
 0x543   :  { %v1255_v16 = vld [vmem:[#allocation5 + $0x2278] sm:$0xff]  ;;  %3470 = vmatpush.msra.mxu0 %v1191_v2 }
 0x544   :  { %v1319_v9 = vld [vmem:[#allocation5 + $0x2478] sm:$0xff]  ;;  %3490 = vmatpush.msra.mxu1 %v1255_v16 }
 0x545   :  { %v1387_v11 = vld [vmem:[#allocation5 + $0x2698] sm:$0xff]  ;;  %3510 = vmatpush.msra.mxu2 %v1319_v9 }
 0x546   :  { %v1187_v12 = vld [vmem:[#allocation5 + $0x2058] sm:$0xff]  ;;  %3529 = vmatpush.msra.mxu3 %v1387_v11  ;;  %v2296_v11 = vadd.f32 %v4222_v52, %v2276_v47 }
 0x547   :  { %v1251_v14 = vld [vmem:[#allocation5 + $0x2258] sm:$0xff]  ;;  %3471 = vmatpush.msra.mxu0 %v1187_v12 }
 0x548   :  { %v1315_v17 = vld [vmem:[#allocation5 + $0x2458] sm:$0xff]  ;;  %3491 = vmatpush.msra.mxu1 %v1251_v14  ;;  %v2316_v52 = vadd.f32 %v4224_v61, %v2296_v11 }
 0x549   :  { %v1383_v18 = vld [vmem:[#allocation5 + $0x2678] sm:$0xff]  ;;  %3511 = vmatpush.msra.mxu2 %v1315_v17  ;;  %v2795_v17 = vpop.f32.mrf.mxu2 }
 0x54a   :  { %v1183_v23 = vld [vmem:[#allocation5 + $0x2038] sm:$0xff]  ;;  %3530 = vmatpush.msra.mxu3 %v1383_v18  ;;  %v2336_v61 = vadd.f32 %v4228_v7, %v2316_v52 }
 0x54b   :  { %v1247_v24 = vld [vmem:[#allocation5 + $0x2238] sm:$0xff]  ;;  %3472 = vmatpush.msra.mxu0 %v1183_v23 }
 0x54c   :  { %v1311_v26 = vld [vmem:[#allocation5 + $0x2438] sm:$0xff]  ;;  %3492 = vmatpush.msra.mxu1 %v1247_v24 }
 0x54d   :  { %v1379_v29 = vld [vmem:[#allocation5 + $0x2658] sm:$0xff]  ;;  %3512 = vmatpush.msra.mxu2 %v1311_v26 }
 0x54e   :  { %v1179_v34 = vld [vmem:[#allocation5 + $0x2018] sm:$0xff]  ;;  %3531 = vmatpush.msra.mxu3 %v1379_v29  ;;  %v2796_v29 = vadd.f32 %v2795_v17, %v2776_v13 }
 0x54f   :  { %v1243_v35 = vld [vmem:[#allocation5 + $0x2218] sm:$0xff]  ;;  %3473 = vmatpush.msra.mxu0 %v1179_v34 }
 0x550   :  { %v1307_v36 = vld [vmem:[#allocation5 + $0x2418] sm:$0xff]  ;;  %3493 = vmatpush.msra.mxu1 %v1243_v35  ;;  %3474 = vmatmul.f32.vlgmr.msra.gmra.mxu0 %v3911_v50  ;;  %v2815_v35 = vpop.f32.mrf.mxu3 }
 0x551   :  { %v1375_v38 = vld [vmem:[#allocation5 + $0x2638] sm:$0xff]  ;;  %3513 = vmatpush.msra.mxu2 %v1307_v36  ;;  %3494 = vmatmul.f32.vlgmr.msra.gmra.mxu1 %v3913_v0 }
 0x552   :  { %v1495_v37 = vld [vmem:[#allocation5 + $0x29f8] sm:$0xff]  ;;  %3532 = vmatpush.msra.mxu3 %v1375_v38  ;;  %3514 = vmatmul.f32.vlgmr.msra.gmra.mxu2 %v3912_v51 }
 0x553   :  { %v1559_v45 = vld [vmem:[#allocation5 + $0x2bf8] sm:$0xff]  ;;  %3538 = vmatpush.msrb.mxu0 %v1495_v37  ;;  %v2835_v37 = vpop.f32.mrf.mxu0 }
 0x554   :  { %v1623_v48 = vld [vmem:[#allocation5 + $0x2df8] sm:$0xff]  ;;  %3558 = vmatpush.msrb.mxu1 %v1559_v45 }
 0x555   :  { %v1371_v49 = vld [vmem:[#allocation5 + $0x2618] sm:$0xff]  ;;  %3578 = vmatpush.msrb.mxu2 %v1623_v48  ;;  %v2816_v48 = vadd.f32 %v2815_v35, %v2796_v29 }
 0x556   :  { %v1491_v53 = vld [vmem:[#allocation5 + $0x29d8] sm:$0xff]  ;;  %3533 = vmatpush.msra.mxu3 %v1371_v49 }
 0x557   :  { %v1555_v54 = vld [vmem:[#allocation5 + $0x2bd8] sm:$0xff]  ;;  %3539 = vmatpush.msrb.mxu0 %v1491_v53  ;;  %v2836_v47 = vadd.f32 %v2835_v37, %v2816_v48 }
 0x558   :  { %v1619_v59 = vld [vmem:[#allocation5 + $0x2dd8] sm:$0xff]  ;;  %3559 = vmatpush.msrb.mxu1 %v1555_v54  ;;  %v2356_v54 = vadd.f32 %v4226_v62, %v2336_v61 }
 0x559   :  { %v1687_v60 = vld [vmem:[#allocation5 + $0x2ff8] sm:$0xff]  ;;  %3579 = vmatpush.msrb.mxu2 %v1619_v59 }
 0x55a   :  { %v3914_v1 = vld [vmem:[#allocation2 + $0x98] sm:$0xff]  ;;  %3598 = vmatpush.msrb.mxu3 %v1687_v60  ;;  %v2855_v60 = vpop.f32.mrf.mxu1  ;;  %v2376_v62 = vadd.f32 %v4230_v8, %v2356_v54 }
 0x55b   :  { %3534 = vmatmul.f32.vlgmr.msra.gmra.mxu3 %v3914_v1  ;;  %v1487_v2 = vld [vmem:[#allocation5 + $0x29b8] sm:$0xff] }
 0x55c   :  { %v1551_v16 = vld [vmem:[#allocation5 + $0x2bb8] sm:$0xff]  ;;  %3540 = vmatpush.msrb.mxu0 %v1487_v2  ;;  %v2875_v2 = vpop.f32.mrf.mxu2 }
 0x55d   :  { %v1615_v3 = vld [vmem:[#allocation5 + $0x2db8] sm:$0xff]  ;;  %3560 = vmatpush.msrb.mxu1 %v1551_v16 }
 0x55e   :  { %v1683_v6 = vld [vmem:[#allocation5 + $0x2fd8] sm:$0xff]  ;;  %3580 = vmatpush.msrb.mxu2 %v1615_v3 }
 0x55f   :  { %v1483_v9 = vld [vmem:[#allocation5 + $0x2998] sm:$0xff]  ;;  %3599 = vmatpush.msrb.mxu3 %v1683_v6  ;;  %v2856_v6 = vadd.f32 %v2855_v60, %v2836_v47 }
 0x560   :  { %v1547_v42 = vld [vmem:[#allocation5 + $0x2b98] sm:$0xff]  ;;  %3541 = vmatpush.msrb.mxu0 %v1483_v9 }
 0x561   :  { %v1611_v12 = vld [vmem:[#allocation5 + $0x2d98] sm:$0xff]  ;;  %3561 = vmatpush.msrb.mxu1 %v1547_v42 }
 0x562   :  { %v1679_v14 = vld [vmem:[#allocation5 + $0x2fb8] sm:$0xff]  ;;  %3581 = vmatpush.msrb.mxu2 %v1611_v12  ;;  %v2396_v12 = vadd.f32 %v4232_v20, %v2376_v62 }
 0x563   :  { %v1479_v18 = vld [vmem:[#allocation5 + $0x2978] sm:$0xff]  ;;  %3600 = vmatpush.msrb.mxu3 %v1679_v14  ;;  %v2876_v14 = vadd.f32 %v2875_v2, %v2856_v6  ;;  %v3635_v6 = vld [vmem:[#allocation8 + $0x68] sm:$0xff] }
 0x564   :  { %v1543_v23 = vld [vmem:[#allocation5 + $0x2b78] sm:$0xff]  ;;  %3542 = vmatpush.msrb.mxu0 %v1479_v18  ;;  %v2416_v20 = vadd.f32 %v4236_v32, %v2396_v12  ;;  %v3650_v12 = vld [vmem:[#allocation8 + $0xe0] sm:$0xff] }
 0x565   :  { %v1607_v24 = vld [vmem:[#allocation5 + $0x2d78] sm:$0xff]  ;;  %3562 = vmatpush.msrb.mxu1 %v1543_v23  ;;  %v2895_v23 = vpop.f32.mrf.mxu3 }
 0x566   :  { %v1675_v28 = vld [vmem:[#allocation5 + $0x2f98] sm:$0xff]  ;;  %3582 = vmatpush.msrb.mxu2 %v1607_v24 }
 0x567   :  { %v1475_v25 = vld [vmem:[#allocation5 + $0x2958] sm:$0xff]  ;;  %3601 = vmatpush.msrb.mxu3 %v1675_v28 }
 0x568   :  { %v1539_v26 = vld [vmem:[#allocation5 + $0x2b58] sm:$0xff]  ;;  %3543 = vmatpush.msrb.mxu0 %v1475_v25 }
 0x569   :  { %v1603_v30 = vld [vmem:[#allocation5 + $0x2d58] sm:$0xff]  ;;  %3563 = vmatpush.msrb.mxu1 %v1539_v26  ;;  %v2915_v26 = vpop.f32.mrf.mxu0 }
 0x56a   :  { %v1671_v34 = vld [vmem:[#allocation5 + $0x2f78] sm:$0xff]  ;;  %3583 = vmatpush.msrb.mxu2 %v1603_v30  ;;  %v2896_v30 = vadd.f32 %v2895_v23, %v2876_v14 }
 0x56b   :  { %v1471_v36 = vld [vmem:[#allocation5 + $0x2938] sm:$0xff]  ;;  %3602 = vmatpush.msrb.mxu3 %v1671_v34 }
 0x56c   :  { %v1535_v38 = vld [vmem:[#allocation5 + $0x2b38] sm:$0xff]  ;;  %3544 = vmatpush.msrb.mxu0 %v1471_v36 }
 0x56d   :  { %v1599_v40 = vld [vmem:[#allocation5 + $0x2d38] sm:$0xff]  ;;  %3564 = vmatpush.msrb.mxu1 %v1535_v38 }
 0x56e   :  { %v1667_v44 = vld [vmem:[#allocation5 + $0x2f58] sm:$0xff]  ;;  %3584 = vmatpush.msrb.mxu2 %v1599_v40  ;;  %v2436_v40 = vadd.f32 %v4234_v21, %v2416_v20  ;;  %v3631_v20 = vld [vmem:[#allocation8 + $0x48] sm:$0xff] }
 0x56f   :  { %v1467_v45 = vld [vmem:[#allocation5 + $0x2918] sm:$0xff]  ;;  %3603 = vmatpush.msrb.mxu3 %v1667_v44  ;;  %v2916_v44 = vadd.f32 %v2915_v26, %v2896_v30  ;;  %v3647_v30 = vld [vmem:[#allocation8 + $0xc8] sm:$0xff] }
 0x570   :  { %v1531_v46 = vld [vmem:[#allocation5 + $0x2b18] sm:$0xff]  ;;  %3545 = vmatpush.msrb.mxu0 %v1467_v45 }
 0x571   :  { %v1595_v49 = vld [vmem:[#allocation5 + $0x2d18] sm:$0xff]  ;;  %3565 = vmatpush.msrb.mxu1 %v1531_v46  ;;  %v2935_v46 = vpop.f32.mrf.mxu1 }
 0x572   :  { %v1663_v50 = vld [vmem:[#allocation5 + $0x2f38] sm:$0xff]  ;;  %3585 = vmatpush.msrb.mxu2 %v1595_v49  ;;  %v2936_v21 = vadd.f32 %v2935_v46, %v2916_v44  ;;  %v3646_v44 = vld [vmem:[#allocation8 + $0xc0] sm:$0xff] }
 0x573   :  { %v1463_v51 = vld [vmem:[#allocation5 + $0x28f8] sm:$0xff]  ;;  %3604 = vmatpush.msrb.mxu3 %v1663_v50  ;;  %v2955_v50 = vpop.f32.mrf.mxu2 }
 0x574   :  { %v1527_v53 = vld [vmem:[#allocation5 + $0x2af8] sm:$0xff]  ;;  %3546 = vmatpush.msrb.mxu0 %v1463_v51  ;;  %v2456_v51 = vadd.f32 %v4238_v33, %v2436_v40  ;;  %v2956_v60 = vadd.f32 %v2955_v50, %v2936_v21  ;;  %v3630_v40 = vld [vmem:[#allocation8 + $0x40] sm:$0xff] }
 0x575   :  { %v1591_v55 = vld [vmem:[#allocation5 + $0x2cf8] sm:$0xff]  ;;  %3566 = vmatpush.msrb.mxu1 %v1527_v53 }
 0x576   :  { %v1659_v59 = vld [vmem:[#allocation5 + $0x2f18] sm:$0xff]  ;;  %3586 = vmatpush.msrb.mxu2 %v1591_v55 }
 0x577   :  { %v1459_v7 = vld [vmem:[#allocation5 + $0x28d8] sm:$0xff]  ;;  %3605 = vmatpush.msrb.mxu3 %v1659_v59  ;;  %v2476_v59 = vadd.f32 %v4240_v41, %v2456_v51  ;;  %v3651_v41 = vld [vmem:[#allocation8 + $0xe8] sm:$0xff] }
 0x578   :  { %v1523_v63 = vld [vmem:[#allocation5 + $0x2ad8] sm:$0xff]  ;;  %3547 = vmatpush.msrb.mxu0 %v1459_v7  ;;  %v3915_v7 = vld [vmem:[#allocation2 + $0xa0] sm:$0xff] }
 0x579   :  { %v1587_v0 = vld [vmem:[#allocation5 + $0x2cd8] sm:$0xff]  ;;  %3567 = vmatpush.msrb.mxu1 %v1523_v63  ;;  %v3916_v63 = vld [vmem:[#allocation2 + $0xb0] sm:$0xff]  ;;  %v3015_v23 = vpop.f32.mrf.mxu1 }
 0x57a   :  { %v1655_v1 = vld [vmem:[#allocation5 + $0x2ef8] sm:$0xff]  ;;  %3587 = vmatpush.msrb.mxu2 %v1587_v0  ;;  %v2975_v0 = vpop.f32.mrf.mxu3 }
 0x57b   :  { %v1455_v16 = vld [vmem:[#allocation5 + $0x28b8] sm:$0xff]  ;;  %3606 = vmatpush.msrb.mxu3 %v1655_v1 }
 0x57c   :  { %v1519_v3 = vld [vmem:[#allocation5 + $0x2ab8] sm:$0xff]  ;;  %3548 = vmatpush.msrb.mxu0 %v1455_v16  ;;  %v2995_v16 = vpop.f32.mrf.mxu0 }
 0x57d   :  { %v1583_v9 = vld [vmem:[#allocation5 + $0x2cb8] sm:$0xff]  ;;  %3568 = vmatpush.msrb.mxu1 %v1519_v3  ;;  %v3917_v3 = vld [vmem:[#allocation2 + $0xa8] sm:$0xff] }
 0x57e   :  { %v1651_v42 = vld [vmem:[#allocation5 + $0x2ed8] sm:$0xff]  ;;  %3588 = vmatpush.msrb.mxu2 %v1583_v9  ;;  %v2496_v9 = vadd.f32 %v4244_v56, %v2476_v59  ;;  %v3626_v59 = vld [vmem:[#allocation8 + $0x20] sm:$0xff] }
 0x57f   :  { %v1451_v11 = vld [vmem:[#allocation5 + $0x2898] sm:$0xff]  ;;  %3607 = vmatpush.msrb.mxu3 %v1651_v42  ;;  %v2976_v42 = vadd.f32 %v2975_v0, %v2956_v60  ;;  %v3642_v60 = vld [vmem:[#allocation8 + $0xa0] sm:$0xff]  ;;  %v2156_v0 = vadd.f32 %v4208_v15, %v4206_v10  ;;  %v3623_v10 = vld [vmem:[#allocation8 + $0x8] sm:$0xff] }
 0x580   :  { %v1515_v13 = vld [vmem:[#allocation5 + $0x2a98] sm:$0xff]  ;;  %3549 = vmatpush.msrb.mxu0 %v1451_v11  ;;  %v3667_v11 = vld [vmem:[#allocation8 + $0x168] sm:$0xff]  ;;  %v2516_v14 = vadd.f32 %v4242_v43, %v2496_v9 }
 0x581   :  { %v1579_v17 = vld [vmem:[#allocation5 + $0x2c98] sm:$0xff]  ;;  %3569 = vmatpush.msrb.mxu1 %v1515_v13  ;;  %v3634_v13 = vld [vmem:[#allocation8 + $0x60] sm:$0xff]  ;;  %v2176_v9 = vadd.f32 %v4212_v27, %v2156_v0  ;;  %v3639_v15 = vld [vmem:[#allocation8 + $0x88] sm:$0xff]  ;;  %v1693_v27 = vperm.slane %v4256_v31, 3 }
 0x582   :  { %v1647_v18 = vld [vmem:[#allocation5 + $0x2eb8] sm:$0xff]  ;;  %3589 = vmatpush.msrb.mxu2 %v1579_v17  ;;  %v2996_v17 = vadd.f32 %v2995_v16, %v2976_v42 }
 0x583   :  { %v1447_v8 = vld [vmem:[#allocation5 + $0x2878] sm:$0xff]  ;;  %3608 = vmatpush.msrb.mxu3 %v1647_v18  ;;  %v3666_v18 = vld [vmem:[#allocation8 + $0x160] sm:$0xff] }
 0x584   :  { %v1511_v24 = vld [vmem:[#allocation5 + $0x2a78] sm:$0xff]  ;;  %3550 = vmatpush.msrb.mxu0 %v1447_v8 }
 0x585   :  { %v1575_v28 = vld [vmem:[#allocation5 + $0x2c78] sm:$0xff]  ;;  %3570 = vmatpush.msrb.mxu1 %v1511_v24 }
 0x586   :  { %v1643_v25 = vld [vmem:[#allocation5 + $0x2e98] sm:$0xff]  ;;  %3590 = vmatpush.msrb.mxu2 %v1575_v28  ;;  %v3035_v28 = vpop.f32.mrf.mxu2 }
 0x587   :  { %v1443_v52 = vld [vmem:[#allocation5 + $0x2858] sm:$0xff]  ;;  %3609 = vmatpush.msrb.mxu3 %v1643_v25 }
 0x588   :  { %v1507_v29 = vld [vmem:[#allocation5 + $0x2a58] sm:$0xff]  ;;  %3551 = vmatpush.msrb.mxu0 %v1443_v52  ;;  %v2536_v52 = vadd.f32 %v4246_v57, %v2516_v14  ;;  %v3662_v57 = vld [vmem:[#allocation8 + $0x140] sm:$0xff] }
 0x589   :  { %v1571_v34 = vld [vmem:[#allocation5 + $0x2c58] sm:$0xff]  ;;  %3571 = vmatpush.msrb.mxu1 %v1507_v29  ;;  %v3016_v29 = vadd.f32 %v3015_v23, %v2996_v17  ;;  %v3654_v14 = vld [vmem:[#allocation8 + $0x100] sm:$0xff]  ;;  %v3618_v17 = vmax.f32 %v2176_v9, 0.0 }
 0x58a   :  { %v1639_v35 = vld [vmem:[#allocation5 + $0x2e78] sm:$0xff]  ;;  %3591 = vmatpush.msrb.mxu2 %v1571_v34  ;;  %v2556_v34 = vadd.f32 %v4248_v4, %v2536_v52 }
 0x58b   :  { %v1439_v36 = vld [vmem:[#allocation5 + $0x2838] sm:$0xff]  ;;  %3610 = vmatpush.msrb.mxu3 %v1639_v35  ;;  %v3036_v35 = vadd.f32 %v3035_v28, %v3016_v29 }
 0x58c   :  { %v1503_v38 = vld [vmem:[#allocation5 + $0x2a38] sm:$0xff]  ;;  %3552 = vmatpush.msrb.mxu0 %v1439_v36  ;;  %v3663_v36 = vld [vmem:[#allocation8 + $0x148] sm:$0xff] }
 0x58d   :  { %v1567_v37 = vld [vmem:[#allocation5 + $0x2c38] sm:$0xff]  ;;  %3572 = vmatpush.msrb.mxu1 %v1503_v38  ;;  %v3055_v38 = vpop.f32.mrf.mxu3 }
 0x58e   :  { %v1635_v45 = vld [vmem:[#allocation5 + $0x2e58] sm:$0xff]  ;;  %3592 = vmatpush.msrb.mxu2 %v1567_v37  ;;  %v3075_v37 = vpop.f32.mrf.mxu0 }
 0x58f   :  { %v1435_v32 = vld [vmem:[#allocation5 + $0x2818] sm:$0xff]  ;;  %3611 = vmatpush.msrb.mxu3 %v1635_v45 }
 0x590   :  { %v1499_v61 = vld [vmem:[#allocation5 + $0x2a18] sm:$0xff]  ;;  %3553 = vmatpush.msrb.mxu0 %v1435_v32  ;;  %v2576_v32 = vadd.f32 %v4252_v19, %v2556_v34  ;;  %v3659_v19 = vld [vmem:[#allocation8 + $0x128] sm:$0xff]  ;;  %v3682_v34 = vld [vmem:[#allocation8 + $0x1e0] sm:$0xff] }
 0x591   :  { %v1563_v48 = vld [vmem:[#allocation5 + $0x2c18] sm:$0xff]  ;;  %3573 = vmatpush.msrb.mxu1 %v1499_v61  ;;  %3554 = vmatmul.f32.vlgmr.msrb.gmra.mxu0 %v3915_v7  ;;  %v3056_v61 = vadd.f32 %v3055_v38, %v3036_v35 }
 0x592   :  { %v1631_v49 = vld [vmem:[#allocation5 + $0x2e38] sm:$0xff]  ;;  %3593 = vmatpush.msrb.mxu2 %v1563_v48  ;;  %3574 = vmatmul.f32.vlgmr.msrb.gmra.mxu1 %v3917_v3  ;;  %v2596_v50 = vadd.f32 %v4250_v5, %v2576_v32  ;;  %v3658_v5 = vld [vmem:[#allocation8 + $0x120] sm:$0xff] }
 0x593   :  { %v3637_v53 = vld [vmem:[#allocation8 + $0x78] sm:$0xff]  ;;  %3612 = vmatpush.msrb.mxu3 %v1631_v49  ;;  %3594 = vmatmul.f32.vlgmr.msrb.gmra.mxu2 %v3916_v63  ;;  %v3636_v33 = vld [vmem:[#allocation8 + $0x70] sm:$0xff]  ;;  %v3076_v51 = vadd.f32 %v3075_v37, %v3056_v61  ;;  %v3678_v37 = vld [vmem:[#allocation8 + $0x1c0] sm:$0xff] }
 0x594   :  { %v3653_v54 = vld [vmem:[#allocation8 + $0xf8] sm:$0xff]  ;;  %3690 = vmatpush.msra.mxu0 %v3637_v53  ;;  %v3652_v1 = vld [vmem:[#allocation8 + $0xf0] sm:$0xff]  ;;  %v3095_v53 = vpop.f32.mrf.mxu1  ;;  %v2616_v7 = vadd.f32 %v4254_v22, %v2596_v50 }
 0x595   :  { %v3669_v47 = vld [vmem:[#allocation8 + $0x178] sm:$0xff]  ;;  %3710 = vmatpush.msra.mxu1 %v3653_v54  ;;  %v3668_v2 = vld [vmem:[#allocation8 + $0x170] sm:$0xff]  ;;  %v3627_v54 = vld [vmem:[#allocation8 + $0x28] sm:$0xff]  ;;  %v3096_v63 = vadd.f32 %v3095_v53, %v3076_v51 }
 0x596   :  { %v1627_v55 = vld [vmem:[#allocation5 + $0x2e18] sm:$0xff]  ;;  %3730 = vmatpush.msra.mxu2 %v3669_v47  ;;  %3691 = vmatpush.msra.mxu0 %v3636_v33  ;;  %v3643_v47 = vld [vmem:[#allocation8 + $0xa8] sm:$0xff] }
 0x597   :  { %3613 = vmatpush.msrb.mxu3 %v1627_v55  ;;  %v3918_v62 = vld [vmem:[#allocation2 + $0xb8] sm:$0xff]  ;;  %3711 = vmatpush.msra.mxu1 %v3652_v1  ;;  %v3115_v55 = vpop.f32.mrf.mxu2 }
 0x598   :  { %3614 = vmatmul.f32.vlgmr.msrb.gmra.mxu3 %v3918_v62  ;;  %3731 = vmatpush.msra.mxu2 %v3668_v2  ;;  %v3633_v8 = vld [vmem:[#allocation8 + $0x58] sm:$0xff]  ;;  %v3632_v25 = vld [vmem:[#allocation8 + $0x50] sm:$0xff]  ;;  %v2636_v2 = vadd.f32 %v4260_v39, %v2616_v7  ;;  %v3116_v16 = vadd.f32 %v3115_v55, %v3096_v63  ;;  %v3135_v62 = vpop.f32.mrf.mxu3  ;;  %v3655_v39 = vld [vmem:[#allocation8 + $0x108] sm:$0xff] }
 0x599   :  { %3692 = vmatpush.msra.mxu0 %v3635_v6  ;;  %3712 = vmatpush.msra.mxu1 %v3651_v41  ;;  %v3649_v24 = vld [vmem:[#allocation8 + $0xd8] sm:$0xff]  ;;  %v3648_v26 = vld [vmem:[#allocation8 + $0xd0] sm:$0xff] }
 0x59a   :  { %3732 = vmatpush.msra.mxu2 %v3667_v11  ;;  %v3665_v56 = vld [vmem:[#allocation8 + $0x158] sm:$0xff]  ;;  %v3664_v43 = vld [vmem:[#allocation8 + $0x150] sm:$0xff]  ;;  %v2656_v42 = vadd.f32 %v4263_v58, %v2636_v2  ;;  %v3136_v11 = vadd.f32 %v3135_v62, %v3116_v16  ;;  %v3155_v58 = vpop.f32.mrf.mxu0 }
 0x59b   :  { %3693 = vmatpush.msra.mxu0 %v3634_v13  ;;  %3713 = vmatpush.msra.mxu1 %v3650_v12  ;;  %v3629_v45 = vld [vmem:[#allocation8 + $0x38] sm:$0xff]  ;;  %v3628_v48 = vld [vmem:[#allocation8 + $0x30] sm:$0xff]  ;;  %v3622_v13 = vld [vmem:[#allocation8] sm:$0xff] }
 0x59c   :  { %3733 = vmatpush.msra.mxu2 %v3666_v18  ;;  %v3645_v46 = vld [vmem:[#allocation8 + $0xb8] sm:$0xff]  ;;  %v3644_v49 = vld [vmem:[#allocation8 + $0xb0] sm:$0xff]  ;;  %v3638_v12 = vld [vmem:[#allocation8 + $0x80] sm:$0xff]  ;;  %v3619_v18 = vmax.f32 %v2656_v42, 0.0  ;;  %v3620_v23 = vmax.f32 %v3136_v11, 0.0 }
 0x59d   :  { %3694 = vmatpush.msra.mxu0 %v3633_v8  ;;  %3714 = vmatpush.msra.mxu1 %v3649_v24  ;;  %v3661_v4 = vld [vmem:[#allocation8 + $0x138] sm:$0xff]  ;;  %v3660_v21 = vld [vmem:[#allocation8 + $0x130] sm:$0xff]  ;;  %v3156_v8 = vadd.f32 %v3155_v58, %v1693_v27  ;;  %v3175_v24 = vpop.f32.mrf.mxu1 }
 0x59e   :  { %3734 = vmatpush.msra.mxu2 %v3665_v56  ;;  %v3625_v33 = vld [vmem:[#allocation8 + $0x18] sm:$0xff]  ;;  %v3624_v6 = vld [vmem:[#allocation8 + $0x10] sm:$0xff] }
 0x59f   :  { %3695 = vmatpush.msra.mxu0 %v3632_v25  ;;  %3715 = vmatpush.msra.mxu1 %v3648_v26  ;;  %v3641_v1 = vld [vmem:[#allocation8 + $0x98] sm:$0xff]  ;;  %v3640_v22 = vld [vmem:[#allocation8 + $0x90] sm:$0xff]  ;;  %v3176_v56 = vadd.f32 %v3175_v24, %v3156_v8  ;;  %v3195_v28 = vpop.f32.mrf.mxu2 }
 0x5a0   :  { %3735 = vmatpush.msra.mxu2 %v3664_v43  ;;  %v3657_v3 = vld [vmem:[#allocation8 + $0x118] sm:$0xff]  ;;  %v3656_v41 = vld [vmem:[#allocation8 + $0x110] sm:$0xff]  ;;  %v3215_v26 = vpop.f32.mrf.mxu3  ;;  %v3683_v43 = vld [vmem:[#allocation8 + $0x1e8] sm:$0xff] }
 0x5a1   :  { %3696 = vmatpush.msra.mxu0 %v3631_v20  ;;  %3716 = vmatpush.msra.mxu1 %v3647_v30  ;;  %v3196_v25 = vadd.f32 %v3195_v28, %v3176_v56  ;;  %v3685_v52 = vld [vmem:[#allocation8 + $0x1f8] sm:$0xff]  ;;  %v3684_v29 = vld [vmem:[#allocation8 + $0x1f0] sm:$0xff]  ;;  %v3783_v28 = vld [vmem:[#allocation11 + $0x60] sm:$0xff] }
 0x5a2   :  { %3736 = vmatpush.msra.mxu2 %v3663_v36  ;;  %3750 = vmatpush.msra.mxu3 %v3685_v52  ;;  %v3235_v30 = vpop.f32.mrf.mxu0  ;;  %v3681_v35 = vld [vmem:[#allocation8 + $0x1d8] sm:$0xff]  ;;  %v3680_v38 = vld [vmem:[#allocation8 + $0x1d0] sm:$0xff] }
 0x5a3   :  { %3697 = vmatpush.msra.mxu0 %v3630_v40  ;;  %3717 = vmatpush.msra.mxu1 %v3646_v44  ;;  %v3216_v20 = vadd.f32 %v3215_v26, %v3196_v25  ;;  %v3679_v40 = vld [vmem:[#allocation8 + $0x1c8] sm:$0xff]  ;;  %v3786_v27 = vld [vmem:[#allocation11 + $0x78] sm:$0xff]  ;;  %v3785_v58 = vld [vmem:[#allocation11 + $0x70] sm:$0xff] }
 0x5a4   :  { %3737 = vmatpush.msra.mxu2 %v3662_v57  ;;  %3751 = vmatpush.msra.mxu3 %v3684_v29  ;;  %v3784_v24 = vld [vmem:[#allocation11 + $0x68] sm:$0xff]  ;;  %v3782_v25 = vld [vmem:[#allocation11 + $0x58] sm:$0xff]  ;;  %v3781_v26 = vld [vmem:[#allocation11 + $0x50] sm:$0xff] }
 0x5a5   :  { %3698 = vmatpush.msra.mxu0 %v3629_v45  ;;  %3718 = vmatpush.msra.mxu1 %v3645_v46  ;;  %v3236_v36 = vadd.f32 %v3235_v30, %v3216_v20  ;;  %v3255_v31 = vpop.f32.mrf.mxu1  ;;  %v3677_v45 = vld [vmem:[#allocation8 + $0x1b8] sm:$0xff]  ;;  %v3780_v52 = vld [vmem:[#allocation11 + $0x48] sm:$0xff]  ;;  %v3779_v29 = vld [vmem:[#allocation11 + $0x40] sm:$0xff] }
 0x5a6   :  { %3738 = vmatpush.msra.mxu2 %v3661_v4  ;;  %3752 = vmatpush.msra.mxu3 %v3683_v43  ;;  %v3778_v43 = vld [vmem:[#allocation11 + $0x38] sm:$0xff]  ;;  %v3777_v20 = vld [vmem:[#allocation11 + $0x30] sm:$0xff]  ;;  %v3776_v30 = vld [vmem:[#allocation11 + $0x28] sm:$0xff] }
 0x5a7   :  { %3699 = vmatpush.msra.mxu0 %v3628_v48  ;;  %3719 = vmatpush.msra.mxu1 %v3644_v49  ;;  %v3256_v44 = vadd.f32 %v3255_v31, %v3236_v36  ;;  %v3275_v57 = vpop.f32.mrf.mxu2  ;;  %v3773_v36 = vld [vmem:[#allocation11 + $0x10] sm:$0xff]  ;;  %v3772_v31 = vld [vmem:[#allocation11 + $0x8] sm:$0xff] }
 0x5a8   :  { %3739 = vmatpush.msra.mxu2 %v3660_v21  ;;  %3753 = vmatpush.msra.mxu3 %v3682_v34  ;;  %v3295_v32 = vpop.f32.mrf.mxu3  ;;  %v3676_v21 = vld [vmem:[#allocation8 + $0x1b0] sm:$0xff]  ;;  %v3775_v34 = vld [vmem:[#allocation11 + $0x20] sm:$0xff] }
 0x5a9   :  { %3700 = vmatpush.msra.mxu0 %v3627_v54  ;;  %3720 = vmatpush.msra.mxu1 %v3643_v47  ;;  %v3276_v46 = vadd.f32 %v3275_v57, %v3256_v44  ;;  %v3675_v47 = vld [vmem:[#allocation8 + $0x1a8] sm:$0xff] }
 0x5aa   :  { %3740 = vmatpush.msra.mxu2 %v3659_v19  ;;  %3754 = vmatpush.msra.mxu3 %v3681_v35  ;;  %v3315_v61 = vpop.f32.mrf.mxu0  ;;  %v3674_v19 = vld [vmem:[#allocation8 + $0x1a0] sm:$0xff] }
 0x5ab   :  { %3701 = vmatpush.msra.mxu0 %v3626_v59  ;;  %3721 = vmatpush.msra.mxu1 %v3642_v60  ;;  %v3296_v4 = vadd.f32 %v3295_v32, %v3276_v46  ;;  %v3673_v60 = vld [vmem:[#allocation8 + $0x198] sm:$0xff] }
 0x5ac   :  { %3741 = vmatpush.msra.mxu2 %v3658_v5  ;;  %3755 = vmatpush.msra.mxu3 %v3680_v38  ;;  %v3672_v5 = vld [vmem:[#allocation8 + $0x190] sm:$0xff]  ;;  %v3774_v35 = vld [vmem:[#allocation11 + $0x18] sm:$0xff]  ;;  %v3771_v38 = vld [vmem:[#allocation11] sm:$0xff] }
 0x5ad   :  { %3702 = vmatpush.msra.mxu0 %v3625_v33  ;;  %3722 = vmatpush.msra.mxu1 %v3641_v1  ;;  %v3316_v48 = vadd.f32 %v3315_v61, %v3296_v4  ;;  %v3335_v49 = vpop.f32.mrf.mxu1  ;;  %v3671_v33 = vld [vmem:[#allocation8 + $0x188] sm:$0xff]  ;;  %v3670_v1 = vld [vmem:[#allocation8 + $0x180] sm:$0xff] }
 0x5ae   :  { %3742 = vmatpush.msra.mxu2 %v3657_v3  ;;  %3756 = vmatpush.msra.mxu3 %v3679_v40  ;;  %v3844_v40 = vld [vmem:[#allocation10] ss:$0 sm:$0xff] }
 0x5af   :  { %3703 = vmatpush.msra.mxu0 %v3624_v6  ;;  %3723 = vmatpush.msra.mxu1 %v3640_v22  ;;  %v3355_v50 = vpop.f32.mrf.mxu2  ;;  %v3336_v51 = vadd.f32 %v3335_v49, %v3316_v48  ;;  %v3845_v49 = vld [vmem:[#allocation13] ss:$0 sm:$0xff] }
 0x5b0   :  { %3743 = vmatpush.msra.mxu2 %v3656_v41  ;;  %3757 = vmatpush.msra.mxu3 %v3678_v37  ;;  %v3375_v54 = vpop.f32.mrf.mxu3 }
 0x5b1   :  { %3704 = vmatpush.msra.mxu0 %v3623_v10  ;;  %3724 = vmatpush.msra.mxu1 %v3639_v15  ;;  %v3356_v53 = vadd.f32 %v3355_v50, %v3336_v51 }
 0x5b2   :  { %3744 = vmatpush.msra.mxu2 %v3655_v39  ;;  %3758 = vmatpush.msra.mxu3 %v3677_v45  ;;  %v3395_v55 = vpop.f32.mrf.mxu0 }
 0x5b3   :  { %3705 = vmatpush.msra.mxu0 %v3622_v13  ;;  %3725 = vmatpush.msra.mxu1 %v3638_v12  ;;  %v3376_v59 = vadd.f32 %v3375_v54, %v3356_v53 }
 0x5b4   :  { %3745 = vmatpush.msra.mxu2 %v3654_v14  ;;  %3706 = vmatmul.f32.vlgmr.msra.gmra.mxu0 %v3618_v17 }
 0x5b5   :  { %3726 = vmatmul.f32.vlgmr.msra.gmra.mxu1 %v3619_v18  ;;  %3746 = vmatmul.f32.vlgmr.msra.gmra.mxu2 %v3620_v23  ;;  %v3396_v7 = vadd.f32 %v3395_v55, %v3376_v59  ;;  %v3415_v63 = vpop.f32.mrf.mxu1 }
 0x5b6   :  { %3759 = vmatpush.msra.mxu3 %v3676_v21  ;;  %3791 = vmatpush.msrb.mxu0 %v3786_v27 }
 0x5b7   :  { %v3435_v0 = vpop.f32.mrf.mxu2  ;;  %v3416_v2 = vadd.f32 %v3415_v63, %v3396_v7 }
 0x5b8   :  { %3760 = vmatpush.msra.mxu3 %v3675_v47  ;;  %v3455_v3 = vpop.f32.mrf.mxu3  ;;  %3792 = vmatpush.msrb.mxu0 %v3785_v58 }
 0x5b9   :  { %v3436_v16 = vadd.f32 %v3435_v0, %v3416_v2 }
 0x5ba   :  { %3761 = vmatpush.msra.mxu3 %v3674_v19  ;;  %3793 = vmatpush.msrb.mxu0 %v3784_v24 }
 0x5bb   :  { %v3456_v6 = vadd.f32 %v3455_v3, %v3436_v16 }
 0x5bc   :  { %3762 = vmatpush.msra.mxu3 %v3673_v60  ;;  %3794 = vmatpush.msrb.mxu0 %v3783_v28 }
 0x5be   :  { %3763 = vmatpush.msra.mxu3 %v3672_v5  ;;  %3795 = vmatpush.msrb.mxu0 %v3782_v25 }
 0x5c0   :  { %3764 = vmatpush.msra.mxu3 %v3671_v33  ;;  %3796 = vmatpush.msrb.mxu0 %v3781_v26 }
 0x5c2   :  { %3765 = vmatpush.msra.mxu3 %v3670_v1  ;;  %3797 = vmatpush.msrb.mxu0 %v3780_v52 }
 0x5c4   :  { %3798 = vmatpush.msrb.mxu0 %v3779_v29 }
 0x5c6   :  { %3799 = vmatpush.msrb.mxu0 %v3778_v43 }
 0x5c8   :  { %3800 = vmatpush.msrb.mxu0 %v3777_v20 }
 0x5ca   :  { %3801 = vmatpush.msrb.mxu0 %v3776_v30 }
 0x5cc   :  { %3802 = vmatpush.msrb.mxu0 %v3775_v34 }
 0x5cd   :  { %v3475_v62 = vpop.f32.mrf.mxu0 }
 0x5ce   :  { %v3476_v22 = vadd.f32 %v3475_v62, %v3456_v6  ;;  %v3495_v41 = vpop.f32.mrf.mxu1  ;;  %3803 = vmatpush.msrb.mxu0 %v3774_v35 }
 0x5d0   :  { %v3496_v10 = vadd.f32 %v3495_v41, %v3476_v22  ;;  %3804 = vmatpush.msrb.mxu0 %v3773_v36 }
 0x5d2   :  { %3805 = vmatpush.msrb.mxu0 %v3772_v31 }
 0x5d4   :  { %3806 = vmatpush.msrb.mxu0 %v3771_v38 }
 0x5d5   :  { %v3515_v9 = vpop.f32.mrf.mxu2 }
 0x5d6   :  { %v3516_v15 = vadd.f32 %v3515_v9, %v3496_v10 }
 0x5de   :  { %v3535_v42 = vpop.f32.mrf.mxu3 }
 0x5df   :  { %v3536_v11 = vadd.f32 %v3535_v42, %v3516_v15 }
 0x60e   :  { %v3555_v39 = vpop.f32.mrf.mxu0 }
 0x60f   :  { %v3556_v13 = vadd.f32 %v3555_v39, %v3536_v11  ;;  %v3575_v12 = vpop.f32.mrf.mxu1 }
 0x611   :  { %v3576_v14 = vadd.f32 %v3575_v12, %v3556_v13 }
 0x616   :  { %v3595_v17 = vpop.f32.mrf.mxu2 }
 0x617   :  { %v3596_v18 = vadd.f32 %v3595_v17, %v3576_v14 }
 0x61b   :  { %v3615_v23 = vpop.f32.mrf.mxu3 }
 0x61c   :  { %v3616_v8 = vadd.f32 %v3615_v23, %v3596_v18 }
 0x61e   :  { %v3621_v56 = vmax.f32 %v3616_v8, 0.0 }
 0x620   :  { %3766 = vmatmul.f32.vlgmr.msra.gmra.mxu3 %v3621_v56 }
 0x631   :  { %v3707_v44 = vpop.f32.mrf.mxu0 }
 0x632   :  { %v3708_v57 = vadd.f32 %v3844_v40, %v3707_v44  ;;  %v3727_v37 = vpop.f32.mrf.mxu1 }
 0x634   :  { %v3728_v46 = vadd.f32 %v3727_v37, %v3708_v57 }
 0x638   :  { %v3747_v45 = vpop.f32.mrf.mxu2 }
 0x639   :  { %v3748_v32 = vadd.f32 %v3747_v45, %v3728_v46 }
 0x6a3   :  { %v3767_v61 = vpop.f32.mrf.mxu3 }
 0x6a4   :  { %v3768_v4 = vadd.f32 %v3767_v61, %v3748_v32 }
 0x6a6   :  { %v3770_v48 = vmax.f32 %v3768_v4, 0.0 }
 0x6a8   :  { %3807 = vmatmul.f32.vlgmr.msrb.gmra.mxu0 %v3770_v48 }
 0x725   :  { %v3808_v50 = vpop.f32.mrf.mxu0 }
 0x726   :  { %v3809_v51 = vadd.f32 %v3845_v49, %v3808_v50 }
 0x728   :  { %3811 = vst [vmem:[#allocation14] sm:$0xff] %v3809_v51 }
 0x729   :  { %3822 = dma.vmem_to_hbm [thread:$0]  %s3818_s6, 128, %s3820_s14, [#allocation4]  }
 0x72a   :  { %4119 = dma.done.wait [#allocation4], 128  }
 0x72b   :  { %4120 = vsyncadd [#allocation4], 4294967168 }
 0x72c   :  { %3827 = vsyncpa [#allocation3], 1 }
 0x72d   :  { %3828 = vsyncpa [#allocation6], 1 }
 0x72e   :  { %3829 = vsyncpa [#allocation9], 1 }
 0x72f   :  { %3830 = vsyncpa [#allocation12], 1 }
 0x730   :  { %3831 = vsyncpa [#allocation4], 1 }

</bundles_post_ra>
